<compile_context>
chip_gen: v7x
topology: tpu7x:2x2x1
jax: 0.10.0
libtpu: 0.0.40
codegen_flags: <defaults>
</compile_context>

<pallas_src>
import math

import jax
import jax.numpy as jnp
from jax.experimental import pallas as pl
from jax.experimental.pallas import tpu as pltpu

# ----------------------------- config (small, synthetic) -----------------------------
B        = 2      # batch of videos
T_IN     = 1      # input frames before the .repeat(1, 16, 1, 1, 1)
REPEAT   = 16     # frame-repeat factor from the module
C        = 3      # RGB
H = W    = 16     # spatial size (processor resize assumed already done)
TUBELET  = 2      # temporal patch (tubelet) size
PATCH    = 8      # spatial patch size
HIDDEN   = 128    # encoder width
HEADS    = 4
HEAD_DIM = HIDDEN // HEADS
MLP      = 4 * HIDDEN
LAYERS   = 2
EPS      = 1e-6

T_TOTAL  = T_IN * REPEAT
TP, HP, WP = T_TOTAL // TUBELET, H // PATCH, W // PATCH
N_TOKENS = TP * HP * WP
ROWS     = B * N_TOKENS                        # batch folded into the row axis
PATCH_K  = C * TUBELET * PATCH * PATCH         # Conv3d tubelet kernel size
SPATCH_K = C * PATCH * PATCH                   # spatial-only patch size after temporal fold
WA_COLS  = 3 * HIDDEN + HIDDEN + MLP           # fused [w_qkv | w_o | w1] slab width

assert T_IN == 1  # temporal fold of the x16 repeat assumes a single distinct input frame


# ----------------------------- fused encoder kernel -----------------------------


def _encoder_kernel(patch_ref, pe_w_ref, pe_b_ref,
                    wa_ref, w2_ref, bias_ref,
                    lnf_ref, cos_ref, sin_ref, rot_ref, mask_ref,
                    out_ref, x_sc):
    """One grid step = one transformer layer. Residual stream (ROWS, D) lives in x_sc."""
    layer = pl.program_id(0)

    @pl.when(layer == 0)
    def _():
        # Tubelet patch embedding (bf16 x bf16 -> f32). Processor normalization and the x16
        # frame repeat are already folded into pe_w / pe_b.
        tok = jnp.dot(patch_ref[...], pe_w_ref[...], preferred_element_type=jnp.float32)
        x_sc[...] = tok + pe_b_ref[...]

    def layer_norm(z, g, b):
        # single-pass stats: E[x], E[x^2]
        mu = jnp.mean(z, axis=-1, keepdims=True)
        ms = jnp.mean(z * z, axis=-1, keepdims=True)
        inv = jax.lax.rsqrt(ms - mu * mu + EPS)
        return (z - mu) * (inv * g) + b

    x = x_sc[...]                       # (ROWS, D) f32 residual stream
    wa = wa_ref[...]                    # (D, WA_COLS) bf16: [w_qkv | w_o | w1]
    bias = bias_ref[...]                # (8, MLP) f32 bias / LN slab
    cos = cos_ref[...]                  # (ROWS, D) f32 RoPE tables (pre-tiled over heads/batch)
    sin = sin_ref[...]
    rot = rot_ref[...]                  # (D, D) bf16 block-diag signed permutation (rotate-half)
    mask_bf = mask_ref[...]             # (HEADS*NT, D) bf16 head-block mask

    w_qkv = wa[:, 0:3 * HIDDEN]
    w_o   = wa[:, 3 * HIDDEN:4 * HIDDEN]
    w_1   = wa[:, 4 * HIDDEN:WA_COLS]
    b1    = bias[0:1, :]                              # (1, MLP)
    b_qkv = bias[1:2, 0:3 * HIDDEN]                   # (1, 3D) (scale already folded into Q part)
    b_o   = bias[2:3, 0:HIDDEN]
    b2    = bias[2:3, HIDDEN:2 * HIDDEN]
    ln1_g, ln1_b = bias[3:4, 0:HIDDEN], bias[4:5, 0:HIDDEN]
    ln2_g, ln2_b = bias[5:6, 0:HIDDEN], bias[6:7, 0:HIDDEN]

    # ---- attention: LN1 + fused QKV + full-width RoPE + head-packed lane-dense softmax ----
    h1 = layer_norm(x, ln1_g, ln1_b)
    qkv = jnp.dot(h1.astype(jnp.bfloat16), w_qkv,
                  preferred_element_type=jnp.float32) + b_qkv            # (ROWS, 3D) f32

    def rope(t):                        # rotate-half as a constant signed permutation matmul
        t_rot = jnp.dot(t.astype(jnp.bfloat16), rot,
                        preferred_element_type=jnp.float32)
        return t * cos + t_rot * sin

    q = rope(qkv[:, 0:HIDDEN]).astype(jnp.bfloat16)                      # (ROWS, D)
    k = rope(qkv[:, HIDDEN:2 * HIDDEN]).astype(jnp.bfloat16)
    v = qkv[:, 2 * HIDDEN:3 * HIDDEN].astype(jnp.bfloat16)

    attn_rows = []
    for bi in range(B):                 # attention is block-diagonal per video (batch folded)
        r0 = bi * N_TOKENS
        qb = q[r0:r0 + N_TOKENS, :]
        kb = k[r0:r0 + N_TOKENS, :]
        vb = v[r0:r0 + N_TOKENS, :]
        # Head-block-diagonal K/V layouts: one MXU matmul gives the full (NT, HEADS*NT) tile.
        k_big = jnp.tile(kb, (HEADS, 1)) * mask_bf                        # (HEADS*NT, D)
        v_big = jnp.tile(vb, (HEADS, 1)) * mask_bf
        s = jax.lax.dot_general(qb, k_big, (((1,), (1,)), ((), ())),
                                preferred_element_type=jnp.float32)       # (NT, HEADS*NT)
        # Row-global max >= every per-head max; softmax is shift-invariant per head block.
        s = s - jnp.max(s, axis=-1, keepdims=True)
        p = jnp.exp(s).astype(jnp.bfloat16)
        o_un  = jnp.dot(p, v_big, preferred_element_type=jnp.float32)     # heads already concat'd
        denom = jnp.dot(p, mask_bf, preferred_element_type=jnp.float32)   # per-head sums, bcast to D
        attn_rows.append(o_un * pl.reciprocal(denom, approx=True))
    attn = jnp.concatenate(attn_rows, axis=0)                             # (ROWS, D)
    x = x + jnp.dot(attn.astype(jnp.bfloat16), w_o,
                    preferred_element_type=jnp.float32) + b_o

    # ---- MLP (LN2 + GELU MLP), f32 epilogue ----
    h2 = layer_norm(x, ln2_g, ln2_b)
    m = jnp.dot(h2.astype(jnp.bfloat16), w_1,
                preferred_element_type=jnp.float32) + b1
    # TODO(synk): HF V-JEPA2 uses exact (erf) GELU; tanh approximation used for robust TPU lowering.
    m = jax.nn.gelu(m, approximate=True)
    x = x + jnp.dot(m.astype(jnp.bfloat16), w2_ref[...],
                    preferred_element_type=jnp.float32) + b2
    x_sc[...] = x

    @pl.when(layer == LAYERS - 1)
    def _():
        lnf = lnf_ref[...]
        out_ref[...] = layer_norm(x, lnf[0:1, :], lnf[1:2, :]).astype(out_ref.dtype)


def encoder_forward(patches, pe_w, pe_b, wa, w2, bias, lnf, cos, sin, rot, mask):
    const2 = lambda l: (0, 0)           # grid-invariant blocks: fetched once, stay resident
    layer3 = lambda l: (l, 0, 0)        # per-layer stacked slabs

    in_specs = [
        pl.BlockSpec((ROWS, SPATCH_K), const2),          # raw-pixel patches (bf16)
        pl.BlockSpec((SPATCH_K, HIDDEN), const2),        # folded patch-embed weight (bf16)
        pl.BlockSpec((1, HIDDEN), const2),               # folded patch-embed bias (f32)
        pl.BlockSpec((None, HIDDEN, WA_COLS), layer3),   # fused [w_qkv | w_o | w1] slab (bf16)
        pl.BlockSpec((None, MLP, HIDDEN), layer3),       # mlp down weight (bf16)
        pl.BlockSpec((None, 8, MLP), layer3),            # biases + ln1/ln2 gamma/beta slab (f32)
        pl.BlockSpec((2, HIDDEN), const2),               # final LN gamma+beta
        pl.BlockSpec((ROWS, HIDDEN), const2),            # RoPE cos (pre-tiled heads/batch)
        pl.BlockSpec((ROWS, HIDDEN), const2),            # RoPE sin
        pl.BlockSpec((HIDDEN, HIDDEN), const2),          # rotate-half signed permutation
        pl.BlockSpec((HEADS * N_TOKENS, HIDDEN), const2),  # head-block mask
    ]

    out = pl.pallas_call(
        _encoder_kernel,
        out_shape=jax.ShapeDtypeStruct((ROWS, HIDDEN), jnp.float32),
        grid=(LAYERS,),
        in_specs=in_specs,
        out_specs=pl.BlockSpec((ROWS, HIDDEN), const2),
        scratch_shapes=[pltpu.VMEM((ROWS, HIDDEN), jnp.float32)],
        compiler_params=pltpu.CompilerParams(
            dimension_semantics=("arbitrary",)),
    )(patches, pe_w, pe_b, wa, w2, bias, lnf, cos, sin, rot, mask)
    return out.reshape(B, N_TOKENS, HIDDEN)


# --------------------- JAX glue: folding / patches / RoPE / param packing ---------------------


def fold_patch_params(pw, pb, mean, std):
    # Fold (x/255 - mean)/std (per-channel affine) and the x16 frame repeat (both frames of
    # every tubelet are identical -> sum the tubelet-temporal weight slices) into the Conv3d
    # patch-embed weights. pw is (C*TUBELET*P*P, HIDDEN) flattened in (C, tt, ph, pw) order.
    w5 = pw.reshape(C, TUBELET, PATCH, PATCH, HIDDEN)
    w_t = jnp.sum(w5, axis=1)                                    # (C, P, P, HIDDEN)
    scale = (1.0 / (255.0 * std)).reshape(C, 1, 1, 1)
    shift = (-mean / std).reshape(C, 1, 1, 1)
    w_eff = (w_t * scale).reshape(SPATCH_K, HIDDEN)
    b_eff = pb + jnp.sum(w_t * shift, axis=(0, 1, 2))
    return w_eff, b_eff.reshape(1, HIDDEN)


def extract_spatial_patches(x):
    # x: (B, T_IN=1, C, H, W) raw pixels -> (B*N_TOKENS, C*P*P). All 16 repeated frames are
    # identical, so every temporal token block holds the same spatial patches; tile the
    # (HP*WP) patch rows across TP (token order = (t, h, w)), then fold batch into rows.
    Bv = x.shape[0]
    xf = x[:, 0]                                                 # (B, C, H, W)
    p = xf.reshape(Bv, C, HP, PATCH, WP, PATCH)
    p = p.transpose(0, 2, 4, 1, 3, 5).reshape(Bv, HP * WP, SPATCH_K)
    p = jnp.tile(p, (1, TP, 1))                                  # (B, N_TOKENS, SPATCH_K)
    return p.reshape(Bv * N_TOKENS, SPATCH_K)


def build_rope_tables():
    # Simplified 3D RoPE: HEAD_DIM split into (t, h, w) frequency chunks, fused into one
    # (NT, HEAD_DIM) cos/sin table, then tiled across heads and batch to (ROWS, HIDDEN) so
    # RoPE applies full-width in the kernel with a single rotate-half over each head block.
    # TODO(synk): exact HF Vjepa2RopeAttention frequency layout not reproduced bit-for-bit.
    d1 = (HEAD_DIM // 3) // 2 * 2
    d2 = d1
    d3 = HEAD_DIM - d1 - d2
    tt, hh, ww = jnp.meshgrid(jnp.arange(TP), jnp.arange(HP), jnp.arange(WP), indexing="ij")
    positions = [tt.reshape(-1), hh.reshape(-1), ww.reshape(-1)]
    angs = []
    for pos, d in zip(positions, (d1, d2, d3)):
        half = d // 2
        inv_freq = 1.0 / (10000.0 ** (jnp.arange(half, dtype=jnp.float32) / half))
        angs.append(pos[:, None].astype(jnp.float32) * inv_freq[None, :])
    ang = jnp.concatenate(angs, axis=-1)                          # (NT, HEAD_DIM // 2)
    cos_h = jnp.concatenate([jnp.cos(ang), jnp.cos(ang)], axis=-1)  # (NT, HEAD_DIM)
    sin_h = jnp.concatenate([jnp.sin(ang), jnp.sin(ang)], axis=-1)
    cos = jnp.tile(cos_h, (B, HEADS))                             # (ROWS, HIDDEN)
    sin = jnp.tile(sin_h, (B, HEADS))
    return cos, sin


def build_rope_rot_matrix():
    # Block-diagonal signed permutation R such that q @ R == rotate_half(q) per head block.
    half = HEAD_DIM // 2
    c = jnp.arange(HEAD_DIM)
    src = jnp.where(c < half, c + half, c - half)
    sign = jnp.where(c < half, -1.0, 1.0)
    r_head = jnp.zeros((HEAD_DIM, HEAD_DIM), jnp.float32).at[src, c].set(sign)
    return jnp.kron(jnp.eye(HEADS, dtype=jnp.float32), r_head).astype(jnp.bfloat16)


def build_head_mask():
    # mask[h*NT + j, d] = 1 iff hidden column d belongs to head h. Used for the head-packed
    # block-diagonal K/V layouts AND as the segmented-softmax summation matrix.
    row_head = jnp.repeat(jnp.arange(HEADS), N_TOKENS)
    col_head = jnp.arange(HIDDEN) // HEAD_DIM
    return (row_head[:, None] == col_head[None, :]).astype(jnp.bfloat16)


def pack_layer_slabs(params):
    # Consolidate per-layer tensors into 3 stacked slabs (3 DMA descriptors per layer) and
    # fold the 1/sqrt(HEAD_DIM) softmax scale into the Q columns of w_qkv / b_qkv.
    scale = 1.0 / math.sqrt(HEAD_DIM)
    qscale = jnp.concatenate([jnp.full((HIDDEN,), scale, jnp.float32),
                              jnp.ones((2 * HIDDEN,), jnp.float32)])
    w_qkv = params["w_qkv"] * qscale[None, None, :]
    b_qkv = params["b_qkv"] * qscale[None, None, :]
    wa = jnp.concatenate([w_qkv, params["w_o"], params["w1"]], axis=2).astype(jnp.bfloat16)
    w2 = params["w2"].astype(jnp.bfloat16)
    bias = jnp.zeros((LAYERS, 8, MLP), jnp.float32)
    bias = bias.at[:, 0, :].set(params["b1"][:, 0, :])
    bias = bias.at[:, 1, :3 * HIDDEN].set(b_qkv[:, 0, :])
    bias = bias.at[:, 2, :HIDDEN].set(params["b_o"][:, 0, :])
    bias = bias.at[:, 2, HIDDEN:2 * HIDDEN].set(params["b2"][:, 0, :])
    bias = bias.at[:, 3:7, :HIDDEN].set(params["ln"])
    return wa, w2, bias


def init_params(key):
    def dense(k, fan_in, fan_out):
        return jax.random.normal(k, (fan_in, fan_out), jnp.float32) * 0.02

    k_patch, k_layers = jax.random.split(key)
    patch_w = dense(k_patch, PATCH_K, HIDDEN)                    # Conv3d weight, (C,tt,ph,pw) flat
    patch_b = jnp.zeros((HIDDEN,), jnp.float32)

    wqkv, wo, w1, w2 = [], [], [], []
    layer_keys = jax.random.split(k_layers, LAYERS)
    for li in range(LAYERS):
        lk = jax.random.split(layer_keys[li], 6)
        wq, wk, wv = (dense(lk[0], HIDDEN, HIDDEN), dense(lk[1], HIDDEN, HIDDEN),
                      dense(lk[2], HIDDEN, HIDDEN))
        wqkv.append(jnp.concatenate([wq, wk, wv], axis=1))       # fused (HIDDEN, 3*HIDDEN)
        wo.append(dense(lk[3], HIDDEN, HIDDEN))
        w1.append(dense(lk[4], HIDDEN, MLP))
        w2.append(dense(lk[5], MLP, HIDDEN))

    ln_one = jnp.stack([jnp.ones(HIDDEN), jnp.zeros(HIDDEN),
                        jnp.ones(HIDDEN), jnp.zeros(HIDDEN)]).astype(jnp.float32)
    return dict(
        patch_w=patch_w, patch_b=patch_b,
        w_qkv=jnp.stack(wqkv), b_qkv=jnp.zeros((LAYERS, 1, 3 * HIDDEN), jnp.float32),
        w_o=jnp.stack(wo),     b_o=jnp.zeros((LAYERS, 1, HIDDEN), jnp.float32),
        w1=jnp.stack(w1),      b1=jnp.zeros((LAYERS, 1, MLP), jnp.float32),
        w2=jnp.stack(w2),      b2=jnp.zeros((LAYERS, 1, HIDDEN), jnp.float32),
        ln=jnp.tile(ln_one[None], (LAYERS, 1, 1)),
        lnf=jnp.stack([jnp.ones(HIDDEN), jnp.zeros(HIDDEN)]).astype(jnp.float32),
    )


# ----------------------------- full forward -----------------------------


def vjepa_forward(params, x):
    # Processor normalization + x16 repeat folded into patch-embed weights (no pixel kernel,
    # no tiled pixel tensor).
    # TODO(synk): processor resize/center-crop not implemented (input assumed at target size).
    mean = jnp.array([0.485, 0.456, 0.406], jnp.float32)
    std = jnp.array([0.229, 0.224, 0.225], jnp.float32)
    pe_w, pe_b = fold_patch_params(params["patch_w"], params["patch_b"], mean, std)
    pe_w = pe_w.astype(jnp.bfloat16)

    patches = extract_spatial_patches(x).astype(jnp.bfloat16)   # (ROWS, C*P*P) raw pixels
    cos, sin = build_rope_tables()
    rot = build_rope_rot_matrix()
    mask = build_head_mask()
    wa, w2, bias = pack_layer_slabs(params)
    return encoder_forward(patches, pe_w, pe_b, wa, w2, bias,
                           params["lnf"], cos, sin, rot, mask)


if __name__ == "__main__":
    key = jax.random.PRNGKey(0)
    kx, kp = jax.random.split(key)
    # raw video frames in [0, 255], (B, T, C, H, W)
    x = jax.random.uniform(kx, (B, T_IN, C, H, W), jnp.float32, 0.0, 255.0)
    params = init_params(kp)

    image_embeddings = jax.jit(vjepa_forward)(params, x)
    jax.block_until_ready(image_embeddings)

    assert image_embeddings.shape == (B, N_TOKENS, HIDDEN)
    assert bool(jnp.all(jnp.isfinite(image_embeddings)))
    print("KERNEL_OK")
</pallas_src>

<mosaic_0001>
module attributes {stable_mosaic.version = 11 : i64} {
  func.func @_encoder_kernel(%arg0: i32, %arg1: memref<64x192xbf16, #tpu.memory_space<vmem>>, %arg2: memref<192x128xbf16, #tpu.memory_space<vmem>>, %arg3: memref<1x128xf32, #tpu.memory_space<vmem>>, %arg4: memref<1x128x1024xbf16, #tpu.memory_space<vmem>>, %arg5: memref<1x512x128xbf16, #tpu.memory_space<vmem>>, %arg6: memref<1x8x512xf32, #tpu.memory_space<vmem>>, %arg7: memref<2x128xf32, #tpu.memory_space<vmem>>, %arg8: memref<64x128xf32, #tpu.memory_space<vmem>>, %arg9: memref<64x128xf32, #tpu.memory_space<vmem>>, %arg10: memref<128x128xbf16, #tpu.memory_space<vmem>>, %arg11: memref<128x128xbf16, #tpu.memory_space<vmem>>, %arg12: memref<64x128xf32, #tpu.memory_space<vmem>>, %arg13: memref<64x128xf32, #tpu.memory_space<vmem>>) attributes {dimension_semantics = [#tpu.dimension_semantics<arbitrary>], iteration_bounds = array<i64: 2>, scalar_prefetch = 0 : i64, scratch_operands = 1 : i64, tpu.core_type = #tpu.core_type<tc>, window_params = [{pipeline_mode = #tpu.pipeline_mode<synchronous>, transform_indices = @transform_0, window_bounds = array<i64: 64, 192>}, {pipeline_mode = #tpu.pipeline_mode<synchronous>, transform_indices = @transform_1, window_bounds = array<i64: 192, 128>}, {pipeline_mode = #tpu.pipeline_mode<synchronous>, transform_indices = @transform_2, window_bounds = array<i64: 1, 128>}, {transform_indices = @transform_3, window_bounds = array<i64: 1, 128, 1024>}, {transform_indices = @transform_4, window_bounds = array<i64: 1, 512, 128>}, {transform_indices = @transform_5, window_bounds = array<i64: 1, 8, 512>}, {pipeline_mode = #tpu.pipeline_mode<synchronous>, transform_indices = @transform_6, window_bounds = array<i64: 2, 128>}, {pipeline_mode = #tpu.pipeline_mode<synchronous>, transform_indices = @transform_7, window_bounds = array<i64: 64, 128>}, {pipeline_mode = #tpu.pipeline_mode<synchronous>, transform_indices = @transform_8, window_bounds = array<i64: 64, 128>}, {pipeline_mode = #tpu.pipeline_mode<synchronous>, transform_indices = @transform_9, window_bounds = array<i64: 128, 128>}, {pipeline_mode = #tpu.pipeline_mode<synchronous>, transform_indices = @transform_10, window_bounds = array<i64: 128, 128>}, {pipeline_mode = #tpu.pipeline_mode<synchronous>, transform_indices = @transform_11, window_bounds = array<i64: 64, 128>}]} {
    %c0_i32 = arith.constant 0 : i32
    %0 = arith.cmpi eq, %arg0, %c0_i32 : i32
    %1 = arith.extui %0 : i1 to i32
    %c0_i32_0 = arith.constant 0 : i32
    %2 = arith.cmpi ne, %1, %c0_i32_0 : i32
    scf.if %2 {
      %c0_49 = arith.constant 0 : index
      %c0_50 = arith.constant 0 : index
      %157 = vector.load %arg1[%c0_49, %c0_50] : memref<64x192xbf16, #tpu.memory_space<vmem>>, vector<64x192xbf16>
      %c0_51 = arith.constant 0 : index
      %c0_52 = arith.constant 0 : index
      %158 = vector.load %arg2[%c0_51, %c0_52] : memref<192x128xbf16, #tpu.memory_space<vmem>>, vector<192x128xbf16>
      %cst_53 = arith.constant dense<0.000000e+00> : vector<64x128xf32>
      %159 = tpu.matmul %157, %158, %cst_53 {dimension_numbers = #tpu.dot_dimension_numbers<[1], [0], [0], [1], [0, 0, 1, 1], [], []>} : vector<64x192xbf16>, vector<192x128xbf16>, vector<64x128xf32> -> vector<64x128xf32>
      %c0_54 = arith.constant 0 : index
      %c0_55 = arith.constant 0 : index
      %160 = vector.load %arg3[%c0_54, %c0_55] : memref<1x128xf32, #tpu.memory_space<vmem>>, vector<1x128xf32>
      %161 = vector.broadcast %160 : vector<1x128xf32> to vector<64x128xf32>
      %162 = arith.addf %159, %161 : vector<64x128xf32>
      %c0_56 = arith.constant 0 : index
      %c0_57 = arith.constant 0 : index
      %163 = vector.load %arg13[%c0_56, %c0_57] : memref<64x128xf32, #tpu.memory_space<vmem>>, vector<64x128xf32>
      tpu.vector_store %arg13[%c0_56, %c0_57], %162 {strides = array<i32>} : memref<64x128xf32, #tpu.memory_space<vmem>>, vector<64x128xf32>,
    } else {
    }
    %c0 = arith.constant 0 : index
    %c0_1 = arith.constant 0 : index
    %3 = vector.load %arg13[%c0, %c0_1] : memref<64x128xf32, #tpu.memory_space<vmem>>, vector<64x128xf32>
    %c0_2 = arith.constant 0 : index
    %c0_3 = arith.constant 0 : index
    %c0_4 = arith.constant 0 : index
    %4 = vector.load %arg4[%c0_2, %c0_3, %c0_4] : memref<1x128x1024xbf16, #tpu.memory_space<vmem>>, vector<1x128x1024xbf16>
    %5 = vector.shape_cast %4 : vector<1x128x1024xbf16> to vector<128x1024xbf16>
    %c0_5 = arith.constant 0 : index
    %c0_6 = arith.constant 0 : index
    %c0_7 = arith.constant 0 : index
    %6 = vector.load %arg6[%c0_5, %c0_6, %c0_7] : memref<1x8x512xf32, #tpu.memory_space<vmem>>, vector<1x8x512xf32>
    %7 = vector.shape_cast %6 : vector<1x8x512xf32> to vector<8x512xf32>
    %c0_8 = arith.constant 0 : index
    %c0_9 = arith.constant 0 : index
    %8 = vector.load %arg8[%c0_8, %c0_9] : memref<64x128xf32, #tpu.memory_space<vmem>>, vector<64x128xf32>
    %c0_10 = arith.constant 0 : index
    %c0_11 = arith.constant 0 : index
    %9 = vector.load %arg9[%c0_10, %c0_11] : memref<64x128xf32, #tpu.memory_space<vmem>>, vector<64x128xf32>
    %c0_12 = arith.constant 0 : index
    %c0_13 = arith.constant 0 : index
    %10 = vector.load %arg10[%c0_12, %c0_13] : memref<128x128xbf16, #tpu.memory_space<vmem>>, vector<128x128xbf16>
    %c0_14 = arith.constant 0 : index
    %c0_15 = arith.constant 0 : index
    %11 = vector.load %arg11[%c0_14, %c0_15] : memref<128x128xbf16, #tpu.memory_space<vmem>>, vector<128x128xbf16>
    %12 = vector.extract_strided_slice %5 {offsets = [0, 0], sizes = [128, 384], strides = [1, 1]} : vector<128x1024xbf16> to vector<128x384xbf16>
    %13 = vector.extract_strided_slice %5 {offsets = [0, 384], sizes = [128, 128], strides = [1, 1]} : vector<128x1024xbf16> to vector<128x128xbf16>
    %14 = vector.extract_strided_slice %5 {offsets = [0, 512], sizes = [128, 512], strides = [1, 1]} : vector<128x1024xbf16> to vector<128x512xbf16>
    %15 = vector.extract_strided_slice %7 {offsets = [0, 0], sizes = [1, 512], strides = [1, 1]} : vector<8x512xf32> to vector<1x512xf32>
    %16 = vector.extract_strided_slice %7 {offsets = [1, 0], sizes = [1, 384], strides = [1, 1]} : vector<8x512xf32> to vector<1x384xf32>
    %17 = vector.extract_strided_slice %7 {offsets = [2, 0], sizes = [1, 128], strides = [1, 1]} : vector<8x512xf32> to vector<1x128xf32>
    %18 = vector.extract_strided_slice %7 {offsets = [2, 128], sizes = [1, 128], strides = [1, 1]} : vector<8x512xf32> to vector<1x128xf32>
    %19 = vector.extract_strided_slice %7 {offsets = [3, 0], sizes = [1, 128], strides = [1, 1]} : vector<8x512xf32> to vector<1x128xf32>
    %20 = vector.extract_strided_slice %7 {offsets = [4, 0], sizes = [1, 128], strides = [1, 1]} : vector<8x512xf32> to vector<1x128xf32>
    %21 = vector.extract_strided_slice %7 {offsets = [5, 0], sizes = [1, 128], strides = [1, 1]} : vector<8x512xf32> to vector<1x128xf32>
    %22 = vector.extract_strided_slice %7 {offsets = [6, 0], sizes = [1, 128], strides = [1, 1]} : vector<8x512xf32> to vector<1x128xf32>
    %cst = arith.constant dense<0.000000e+00> : vector<64xf32>
    %23 = vector.multi_reduction <add>, %3, %cst [1] : vector<64x128xf32> to vector<64xf32>
    %24 = vector.shape_cast %23 : vector<64xf32> to vector<64x1xf32>
    %cst_16 = arith.constant 1.280000e+02 : f32
    %25 = vector.broadcast %cst_16 : f32 to vector<64x1xf32>
    %26 = arith.divf %24, %25 : vector<64x1xf32>
    %27 = arith.mulf %3, %3 : vector<64x128xf32>
    %cst_17 = arith.constant dense<0.000000e+00> : vector<64xf32>
    %28 = vector.multi_reduction <add>, %27, %cst_17 [1] : vector<64x128xf32> to vector<64xf32>
    %29 = vector.shape_cast %28 : vector<64xf32> to vector<64x1xf32>
    %cst_18 = arith.constant 1.280000e+02 : f32
    %30 = vector.broadcast %cst_18 : f32 to vector<64x1xf32>
    %31 = arith.divf %29, %30 : vector<64x1xf32>
    %32 = arith.mulf %26, %26 : vector<64x1xf32>
    %33 = arith.subf %31, %32 : vector<64x1xf32>
    %cst_19 = arith.constant 9.99999997E-7 : f32
    %34 = vector.broadcast %cst_19 : f32 to vector<64x1xf32>
    %35 = arith.addf %33, %34 : vector<64x1xf32>
    %36 = math.rsqrt %35 : vector<64x1xf32>
    %37 = vector.broadcast %26 : vector<64x1xf32> to vector<64x128xf32>
    %38 = arith.subf %3, %37 : vector<64x128xf32>
    %39 = vector.broadcast %36 : vector<64x1xf32> to vector<64x128xf32>
    %40 = vector.broadcast %19 : vector<1x128xf32> to vector<64x128xf32>
    %41 = arith.mulf %39, %40 : vector<64x128xf32>
    %42 = arith.mulf %38, %41 : vector<64x128xf32>
    %43 = vector.broadcast %20 : vector<1x128xf32> to vector<64x128xf32>
    %44 = arith.addf %42, %43 : vector<64x128xf32>
    %45 = arith.truncf %44 : vector<64x128xf32> to vector<64x128xbf16>
    %cst_20 = arith.constant dense<0.000000e+00> : vector<64x384xf32>
    %46 = tpu.matmul %45, %12, %cst_20 {dimension_numbers = #tpu.dot_dimension_numbers<[1], [0], [0], [1], [0, 0, 1, 1], [], []>} : vector<64x128xbf16>, vector<128x384xbf16>, vector<64x384xf32> -> vector<64x384xf32>
    %47 = vector.broadcast %16 : vector<1x384xf32> to vector<64x384xf32>
    %48 = arith.addf %46, %47 : vector<64x384xf32>
    %49 = vector.extract_strided_slice %48 {offsets = [0, 0], sizes = [64, 128], strides = [1, 1]} : vector<64x384xf32> to vector<64x128xf32>
    %50 = arith.truncf %49 : vector<64x128xf32> to vector<64x128xbf16>
    %cst_21 = arith.constant dense<0.000000e+00> : vector<64x128xf32>
    %51 = tpu.matmul %50, %10, %cst_21 {dimension_numbers = #tpu.dot_dimension_numbers<[1], [0], [0], [1], [0, 0, 1, 1], [], []>} : vector<64x128xbf16>, vector<128x128xbf16>, vector<64x128xf32> -> vector<64x128xf32>
    %52 = arith.mulf %49, %8 : vector<64x128xf32>
    %53 = arith.mulf %51, %9 : vector<64x128xf32>
    %54 = arith.addf %52, %53 : vector<64x128xf32>
    %55 = arith.truncf %54 : vector<64x128xf32> to vector<64x128xbf16>
    %56 = vector.extract_strided_slice %48 {offsets = [0, 128], sizes = [64, 128], strides = [1, 1]} : vector<64x384xf32> to vector<64x128xf32>
    %57 = arith.truncf %56 : vector<64x128xf32> to vector<64x128xbf16>
    %cst_22 = arith.constant dense<0.000000e+00> : vector<64x128xf32>
    %58 = tpu.matmul %57, %10, %cst_22 {dimension_numbers = #tpu.dot_dimension_numbers<[1], [0], [0], [1], [0, 0, 1, 1], [], []>} : vector<64x128xbf16>, vector<128x128xbf16>, vector<64x128xf32> -> vector<64x128xf32>
    %59 = arith.mulf %56, %8 : vector<64x128xf32>
    %60 = arith.mulf %58, %9 : vector<64x128xf32>
    %61 = arith.addf %59, %60 : vector<64x128xf32>
    %62 = arith.truncf %61 : vector<64x128xf32> to vector<64x128xbf16>
    %63 = vector.extract_strided_slice %48 {offsets = [0, 256], sizes = [64, 128], strides = [1, 1]} : vector<64x384xf32> to vector<64x128xf32>
    %64 = arith.truncf %63 : vector<64x128xf32> to vector<64x128xbf16>
    %65 = vector.extract_strided_slice %55 {offsets = [0, 0], sizes = [32, 128], strides = [1, 1]} : vector<64x128xbf16> to vector<32x128xbf16>
    %66 = vector.extract_strided_slice %62 {offsets = [0, 0], sizes = [32, 128], strides = [1, 1]} : vector<64x128xbf16> to vector<32x128xbf16>
    %67 = vector.extract_strided_slice %64 {offsets = [0, 0], sizes = [32, 128], strides = [1, 1]} : vector<64x128xbf16> to vector<32x128xbf16>
    %68 = tpu.concatenate %66, %66, %66, %66 in 0 : vector<32x128xbf16>, vector<32x128xbf16>, vector<32x128xbf16>, vector<32x128xbf16> -> vector<128x128xbf16>
    %69 = arith.mulf %68, %11 : vector<128x128xbf16>
    %70 = tpu.concatenate %67, %67, %67, %67 in 0 : vector<32x128xbf16>, vector<32x128xbf16>, vector<32x128xbf16>, vector<32x128xbf16> -> vector<128x128xbf16>
    %71 = arith.mulf %70, %11 : vector<128x128xbf16>
    %cst_23 = arith.constant dense<0.000000e+00> : vector<32x128xf32>
    %72 = tpu.matmul %65, %69, %cst_23 {dimension_numbers = #tpu.dot_dimension_numbers<[1], [1], [0], [0], [0, 0, 1, 0], [], []>} : vector<32x128xbf16>, vector<128x128xbf16>, vector<32x128xf32> -> vector<32x128xf32>
    %cst_24 = arith.constant dense<0xFF800000> : vector<32xf32>
    %73 = vector.multi_reduction <maximumf>, %72, %cst_24 [1] : vector<32x128xf32> to vector<32xf32>
    %74 = vector.shape_cast %73 : vector<32xf32> to vector<32x1xf32>
    %75 = vector.broadcast %74 : vector<32x1xf32> to vector<32x128xf32>
    %76 = arith.subf %72, %75 : vector<32x128xf32>
    %77 = math.exp %76 : vector<32x128xf32>
    %78 = arith.truncf %77 : vector<32x128xf32> to vector<32x128xbf16>
    %cst_25 = arith.constant dense<0.000000e+00> : vector<32x128xf32>
    %79 = tpu.matmul %78, %71, %cst_25 {dimension_numbers = #tpu.dot_dimension_numbers<[1], [0], [0], [1], [0, 0, 1, 1], [], []>} : vector<32x128xbf16>, vector<128x128xbf16>, vector<32x128xf32> -> vector<32x128xf32>
    %cst_26 = arith.constant dense<0.000000e+00> : vector<32x128xf32>
    %80 = tpu.matmul %78, %11, %cst_26 {dimension_numbers = #tpu.dot_dimension_numbers<[1], [0], [0], [1], [0, 0, 1, 1], [], []>} : vector<32x128xbf16>, vector<128x128xbf16>, vector<32x128xf32> -> vector<32x128xf32>
    %81 = tpu.reciprocal %80 {approx = true} : vector<32x128xf32> -> vector<32x128xf32>
    %82 = arith.mulf %79, %81 : vector<32x128xf32>
    %83 = vector.extract_strided_slice %55 {offsets = [32, 0], sizes = [32, 128], strides = [1, 1]} : vector<64x128xbf16> to vector<32x128xbf16>
    %84 = vector.extract_strided_slice %62 {offsets = [32, 0], sizes = [32, 128], strides = [1, 1]} : vector<64x128xbf16> to vector<32x128xbf16>
    %85 = vector.extract_strided_slice %64 {offsets = [32, 0], sizes = [32, 128], strides = [1, 1]} : vector<64x128xbf16> to vector<32x128xbf16>
    %86 = tpu.concatenate %84, %84, %84, %84 in 0 : vector<32x128xbf16>, vector<32x128xbf16>, vector<32x128xbf16>, vector<32x128xbf16> -> vector<128x128xbf16>
    %87 = arith.mulf %86, %11 : vector<128x128xbf16>
    %88 = tpu.concatenate %85, %85, %85, %85 in 0 : vector<32x128xbf16>, vector<32x128xbf16>, vector<32x128xbf16>, vector<32x128xbf16> -> vector<128x128xbf16>
    %89 = arith.mulf %88, %11 : vector<128x128xbf16>
    %cst_27 = arith.constant dense<0.000000e+00> : vector<32x128xf32>
    %90 = tpu.matmul %83, %87, %cst_27 {dimension_numbers = #tpu.dot_dimension_numbers<[1], [1], [0], [0], [0, 0, 1, 0], [], []>} : vector<32x128xbf16>, vector<128x128xbf16>, vector<32x128xf32> -> vector<32x128xf32>
    %cst_28 = arith.constant dense<0xFF800000> : vector<32xf32>
    %91 = vector.multi_reduction <maximumf>, %90, %cst_28 [1] : vector<32x128xf32> to vector<32xf32>
    %92 = vector.shape_cast %91 : vector<32xf32> to vector<32x1xf32>
    %93 = vector.broadcast %92 : vector<32x1xf32> to vector<32x128xf32>
    %94 = arith.subf %90, %93 : vector<32x128xf32>
    %95 = math.exp %94 : vector<32x128xf32>
    %96 = arith.truncf %95 : vector<32x128xf32> to vector<32x128xbf16>
    %cst_29 = arith.constant dense<0.000000e+00> : vector<32x128xf32>
    %97 = tpu.matmul %96, %89, %cst_29 {dimension_numbers = #tpu.dot_dimension_numbers<[1], [0], [0], [1], [0, 0, 1, 1], [], []>} : vector<32x128xbf16>, vector<128x128xbf16>, vector<32x128xf32> -> vector<32x128xf32>
    %cst_30 = arith.constant dense<0.000000e+00> : vector<32x128xf32>
    %98 = tpu.matmul %96, %11, %cst_30 {dimension_numbers = #tpu.dot_dimension_numbers<[1], [0], [0], [1], [0, 0, 1, 1], [], []>} : vector<32x128xbf16>, vector<128x128xbf16>, vector<32x128xf32> -> vector<32x128xf32>
    %99 = tpu.reciprocal %98 {approx = true} : vector<32x128xf32> -> vector<32x128xf32>
    %100 = arith.mulf %97, %99 : vector<32x128xf32>
    %101 = tpu.concatenate %82, %100 in 0 : vector<32x128xf32>, vector<32x128xf32> -> vector<64x128xf32>
    %102 = arith.truncf %101 : vector<64x128xf32> to vector<64x128xbf16>
    %cst_31 = arith.constant dense<0.000000e+00> : vector<64x128xf32>
    %103 = tpu.matmul %102, %13, %cst_31 {dimension_numbers = #tpu.dot_dimension_numbers<[1], [0], [0], [1], [0, 0, 1, 1], [], []>} : vector<64x128xbf16>, vector<128x128xbf16>, vector<64x128xf32> -> vector<64x128xf32>
    %104 = arith.addf %3, %103 : vector<64x128xf32>
    %105 = vector.broadcast %17 : vector<1x128xf32> to vector<64x128xf32>
    %106 = arith.addf %104, %105 : vector<64x128xf32>
    %cst_32 = arith.constant dense<0.000000e+00> : vector<64xf32>
    %107 = vector.multi_reduction <add>, %106, %cst_32 [1] : vector<64x128xf32> to vector<64xf32>
    %108 = vector.shape_cast %107 : vector<64xf32> to vector<64x1xf32>
    %cst_33 = arith.constant 1.280000e+02 : f32
    %109 = vector.broadcast %cst_33 : f32 to vector<64x1xf32>
    %110 = arith.divf %108, %109 : vector<64x1xf32>
    %111 = arith.mulf %106, %106 : vector<64x128xf32>
    %cst_34 = arith.constant dense<0.000000e+00> : vector<64xf32>
    %112 = vector.multi_reduction <add>, %111, %cst_34 [1] : vector<64x128xf32> to vector<64xf32>
    %113 = vector.shape_cast %112 : vector<64xf32> to vector<64x1xf32>
    %cst_35 = arith.constant 1.280000e+02 : f32
    %114 = vector.broadcast %cst_35 : f32 to vector<64x1xf32>
    %115 = arith.divf %113, %114 : vector<64x1xf32>
    %116 = arith.mulf %110, %110 : vector<64x1xf32>
    %117 = arith.subf %115, %116 : vector<64x1xf32>
    %cst_36 = arith.constant 9.99999997E-7 : f32
    %118 = vector.broadcast %cst_36 : f32 to vector<64x1xf32>
    %119 = arith.addf %117, %118 : vector<64x1xf32>
    %120 = math.rsqrt %119 : vector<64x1xf32>
    %121 = vector.broadcast %110 : vector<64x1xf32> to vector<64x128xf32>
    %122 = arith.subf %106, %121 : vector<64x128xf32>
    %123 = vector.broadcast %120 : vector<64x1xf32> to vector<64x128xf32>
    %124 = vector.broadcast %21 : vector<1x128xf32> to vector<64x128xf32>
    %125 = arith.mulf %123, %124 : vector<64x128xf32>
    %126 = arith.mulf %122, %125 : vector<64x128xf32>
    %127 = vector.broadcast %22 : vector<1x128xf32> to vector<64x128xf32>
    %128 = arith.addf %126, %127 : vector<64x128xf32>
    %129 = arith.truncf %128 : vector<64x128xf32> to vector<64x128xbf16>
    %cst_37 = arith.constant dense<0.000000e+00> : vector<64x512xf32>
    %130 = tpu.matmul %129, %14, %cst_37 {dimension_numbers = #tpu.dot_dimension_numbers<[1], [0], [0], [1], [0, 0, 1, 1], [], []>} : vector<64x128xbf16>, vector<128x512xbf16>, vector<64x512xf32> -> vector<64x512xf32>
    %131 = vector.broadcast %15 : vector<1x512xf32> to vector<64x512xf32>
    %132 = arith.addf %130, %131 : vector<64x512xf32>
    %133 = arith.mulf %132, %132 : vector<64x512xf32>
    %134 = arith.mulf %132, %133 : vector<64x512xf32>
    %cst_38 = arith.constant 4.471500e-02 : f32
    %135 = vector.broadcast %cst_38 : f32 to vector<64x512xf32>
    %136 = arith.mulf %135, %134 : vector<64x512xf32>
    %137 = arith.addf %132, %136 : vector<64x512xf32>
    %cst_39 = arith.constant 0.797884583 : f32
    %138 = vector.broadcast %cst_39 : f32 to vector<64x512xf32>
    %139 = arith.mulf %138, %137 : vector<64x512xf32>
    %140 = math.tanh %139 : vector<64x512xf32>
    %cst_40 = arith.constant 1.000000e+00 : f32
    %141 = vector.broadcast %cst_40 : f32 to vector<64x512xf32>
    %142 = arith.addf %141, %140 : vector<64x512xf32>
    %cst_41 = arith.constant 5.000000e-01 : f32
    %143 = vector.broadcast %cst_41 : f32 to vector<64x512xf32>
    %144 = arith.mulf %143, %142 : vector<64x512xf32>
    %145 = arith.mulf %132, %144 : vector<64x512xf32>
    %146 = arith.truncf %145 : vector<64x512xf32> to vector<64x512xbf16>
    %c0_42 = arith.constant 0 : index
    %c0_43 = arith.constant 0 : index
    %c0_44 = arith.constant 0 : index
    %147 = vector.load %arg5[%c0_42, %c0_43, %c0_44] : memref<1x512x128xbf16, #tpu.memory_space<vmem>>, vector<1x512x128xbf16>
    %148 = vector.shape_cast %147 : vector<1x512x128xbf16> to vector<512x128xbf16>
    %cst_45 = arith.constant dense<0.000000e+00> : vector<64x128xf32>
    %149 = tpu.matmul %146, %148, %cst_45 {dimension_numbers = #tpu.dot_dimension_numbers<[1], [0], [0], [1], [0, 0, 1, 1], [], []>} : vector<64x512xbf16>, vector<512x128xbf16>, vector<64x128xf32> -> vector<64x128xf32>
    %150 = arith.addf %106, %149 : vector<64x128xf32>
    %151 = vector.broadcast %18 : vector<1x128xf32> to vector<64x128xf32>
    %152 = arith.addf %150, %151 : vector<64x128xf32>
    %c0_46 = arith.constant 0 : index
    %c0_47 = arith.constant 0 : index
    %153 = vector.load %arg13[%c0_46, %c0_47] : memref<64x128xf32, #tpu.memory_space<vmem>>, vector<64x128xf32>
    tpu.vector_store %arg13[%c0_46, %c0_47], %152 {strides = array<i32>} : memref<64x128xf32, #tpu.memory_space<vmem>>, vector<64x128xf32>,
    %c1_i32 = arith.constant 1 : i32
    %154 = arith.cmpi eq, %arg0, %c1_i32 : i32
    %155 = arith.extui %154 : i1 to i32
    %c0_i32_48 = arith.constant 0 : i32
    %156 = arith.cmpi ne, %155, %c0_i32_48 : i32
    scf.if %156 {
      %c0_49 = arith.constant 0 : index
      %c0_50 = arith.constant 0 : index
      %157 = vector.load %arg7[%c0_49, %c0_50] : memref<2x128xf32, #tpu.memory_space<vmem>>, vector<2x128xf32>
      %158 = vector.extract_strided_slice %157 {offsets = [0, 0], sizes = [1, 128], strides = [1, 1]} : vector<2x128xf32> to vector<1x128xf32>
      %159 = vector.extract_strided_slice %157 {offsets = [1, 0], sizes = [1, 128], strides = [1, 1]} : vector<2x128xf32> to vector<1x128xf32>
      %cst_51 = arith.constant dense<0.000000e+00> : vector<64xf32>
      %160 = vector.multi_reduction <add>, %152, %cst_51 [1] : vector<64x128xf32> to vector<64xf32>
      %161 = vector.shape_cast %160 : vector<64xf32> to vector<64x1xf32>
      %cst_52 = arith.constant 1.280000e+02 : f32
      %162 = vector.broadcast %cst_52 : f32 to vector<64x1xf32>
      %163 = arith.divf %161, %162 : vector<64x1xf32>
      %164 = arith.mulf %152, %152 : vector<64x128xf32>
      %cst_53 = arith.constant dense<0.000000e+00> : vector<64xf32>
      %165 = vector.multi_reduction <add>, %164, %cst_53 [1] : vector<64x128xf32> to vector<64xf32>
      %166 = vector.shape_cast %165 : vector<64xf32> to vector<64x1xf32>
      %cst_54 = arith.constant 1.280000e+02 : f32
      %167 = vector.broadcast %cst_54 : f32 to vector<64x1xf32>
      %168 = arith.divf %166, %167 : vector<64x1xf32>
      %169 = arith.mulf %163, %163 : vector<64x1xf32>
      %170 = arith.subf %168, %169 : vector<64x1xf32>
      %cst_55 = arith.constant 9.99999997E-7 : f32
      %171 = vector.broadcast %cst_55 : f32 to vector<64x1xf32>
      %172 = arith.addf %170, %171 : vector<64x1xf32>
      %173 = math.rsqrt %172 : vector<64x1xf32>
      %174 = vector.broadcast %163 : vector<64x1xf32> to vector<64x128xf32>
      %175 = arith.subf %152, %174 : vector<64x128xf32>
      %176 = vector.broadcast %173 : vector<64x1xf32> to vector<64x128xf32>
      %177 = vector.broadcast %158 : vector<1x128xf32> to vector<64x128xf32>
      %178 = arith.mulf %176, %177 : vector<64x128xf32>
      %179 = arith.mulf %175, %178 : vector<64x128xf32>
      %180 = vector.broadcast %159 : vector<1x128xf32> to vector<64x128xf32>
      %181 = arith.addf %179, %180 : vector<64x128xf32>
      %c0_56 = arith.constant 0 : index
      %c0_57 = arith.constant 0 : index
      %182 = vector.load %arg12[%c0_56, %c0_57] : memref<64x128xf32, #tpu.memory_space<vmem>>, vector<64x128xf32>
      tpu.vector_store %arg12[%c0_56, %c0_57], %181 {strides = array<i32>} : memref<64x128xf32, #tpu.memory_space<vmem>>, vector<64x128xf32>,
    } else {
    }
    return
  }
  func.func @transform_0(%arg0: i32) -> (i32, i32) {
    %c0_i32 = arith.constant 0 : i32
    %c0_i32_0 = arith.constant 0 : i32
    %c0_i32_1 = arith.constant 0 : i32
    return %c0_i32, %c0_i32_0 : i32, i32
  }
  func.func @transform_1(%arg0: i32) -> (i32, i32) {
    %c0_i32 = arith.constant 0 : i32
    %c0_i32_0 = arith.constant 0 : i32
    %c0_i32_1 = arith.constant 0 : i32
    return %c0_i32, %c0_i32_0 : i32, i32
  }
  func.func @transform_2(%arg0: i32) -> (i32, i32) {
    %c0_i32 = arith.constant 0 : i32
    %c0_i32_0 = arith.constant 0 : i32
    %c0_i32_1 = arith.constant 0 : i32
    return %c0_i32, %c0_i32_0 : i32, i32
  }
  func.func @transform_3(%arg0: i32) -> (i32, i32, i32) {
    %c0_i32 = arith.constant 0 : i32
    %c0_i32_0 = arith.constant 0 : i32
    %c0_i32_1 = arith.constant 0 : i32
    return %arg0, %c0_i32, %c0_i32_0 : i32, i32, i32
  }
  func.func @transform_4(%arg0: i32) -> (i32, i32, i32) {
    %c0_i32 = arith.constant 0 : i32
    %c0_i32_0 = arith.constant 0 : i32
    %c0_i32_1 = arith.constant 0 : i32
    return %arg0, %c0_i32, %c0_i32_0 : i32, i32, i32
  }
  func.func @transform_5(%arg0: i32) -> (i32, i32, i32) {
    %c0_i32 = arith.constant 0 : i32
    %c0_i32_0 = arith.constant 0 : i32
    %c0_i32_1 = arith.constant 0 : i32
    return %arg0, %c0_i32, %c0_i32_0 : i32, i32, i32
  }
  func.func @transform_6(%arg0: i32) -> (i32, i32) {
    %c0_i32 = arith.constant 0 : i32
    %c0_i32_0 = arith.constant 0 : i32
    %c0_i32_1 = arith.constant 0 : i32
    return %c0_i32, %c0_i32_0 : i32, i32
  }
  func.func @transform_7(%arg0: i32) -> (i32, i32) {
    %c0_i32 = arith.constant 0 : i32
    %c0_i32_0 = arith.constant 0 : i32
    %c0_i32_1 = arith.constant 0 : i32
    return %c0_i32, %c0_i32_0 : i32, i32
  }
  func.func @transform_8(%arg0: i32) -> (i32, i32) {
    %c0_i32 = arith.constant 0 : i32
    %c0_i32_0 = arith.constant 0 : i32
    %c0_i32_1 = arith.constant 0 : i32
    return %c0_i32, %c0_i32_0 : i32, i32
  }
  func.func @transform_9(%arg0: i32) -> (i32, i32) {
    %c0_i32 = arith.constant 0 : i32
    %c0_i32_0 = arith.constant 0 : i32
    %c0_i32_1 = arith.constant 0 : i32
    return %c0_i32, %c0_i32_0 : i32, i32
  }
  func.func @transform_10(%arg0: i32) -> (i32, i32) {
    %c0_i32 = arith.constant 0 : i32
    %c0_i32_0 = arith.constant 0 : i32
    %c0_i32_1 = arith.constant 0 : i32
    return %c0_i32, %c0_i32_0 : i32, i32
  }
  func.func @transform_11(%arg0: i32) -> (i32, i32) {
    %c0_i32 = arith.constant 0 : i32
    %c0_i32_0 = arith.constant 0 : i32
    %c0_i32_1 = arith.constant 0 : i32
    return %c0_i32, %c0_i32_0 : i32, i32
  }
}

</mosaic_0001>

<bundles_post_ra>
// kernel: tile.21
= control target key start
LH: loop header
LB: loop body
LE: loop exit
PB: predicated region body
PF: predicated region fallthrough
CT: control target
= control target key end

     0   :  { %s628_s0 = inlined_call_operand.vmem [shape: f32[32,32], index: 0, kind: input, shape index: {}]   ;;  %s629_s1 = inlined_call_operand.vmem [shape: f32[2,32,4,32], index: 1, kind: output, shape index: {}]  }
   0x1   :  { %v4_v0 = vld [vmem:[%s628_s0] ss:$0 sm:$0xff]  ;;  %v237_v1 = vld [vmem:[%s628_s0 + $0x1] ss:$0 sm:$0xff]  ;;  %v240_v2 = vld [vmem:[%s628_s0 + $0x2] ss:$0 sm:$0xff] }
   0x2   :  { %5 = vst [vmem:[%s629_s1] sm:$0xf] %v4_v0  ;;  %236 = vst [vmem:[%s629_s1 + $0x80] sm:$0xf] %v4_v0  ;;  %v243_v3 = vld [vmem:[%s628_s0 + $0x3] ss:$0 sm:$0xff] }
   0x3   :  { %238 = vst [vmem:[%s629_s1 + $0x4] sm:$0xf] %v237_v1  ;;  %239 = vst [vmem:[%s629_s1 + $0x84] sm:$0xf] %v237_v1  ;;  %v246_v4 = vld [vmem:[%s628_s0 + $0x4] ss:$0 sm:$0xff] }
   0x4   :  { %241 = vst [vmem:[%s629_s1 + $0x8] sm:$0xf] %v240_v2  ;;  %242 = vst [vmem:[%s629_s1 + $0x88] sm:$0xf] %v240_v2  ;;  %v249_v5 = vld [vmem:[%s628_s0 + $0x5] ss:$0 sm:$0xff] }
   0x5   :  { %244 = vst [vmem:[%s629_s1 + $0xc] sm:$0xf] %v243_v3  ;;  %245 = vst [vmem:[%s629_s1 + $0x8c] sm:$0xf] %v243_v3  ;;  %v252_v6 = vld [vmem:[%s628_s0 + $0x6] ss:$0 sm:$0xff] }
   0x6   :  { %247 = vst [vmem:[%s629_s1 + $0x10] sm:$0xf] %v246_v4  ;;  %248 = vst [vmem:[%s629_s1 + $0x90] sm:$0xf] %v246_v4  ;;  %v255_v7 = vld [vmem:[%s628_s0 + $0x7] ss:$0 sm:$0xff] }
   0x7   :  { %250 = vst [vmem:[%s629_s1 + $0x14] sm:$0xf] %v249_v5  ;;  %251 = vst [vmem:[%s629_s1 + $0x94] sm:$0xf] %v249_v5  ;;  %v258_v8 = vld [vmem:[%s628_s0 + $0x8] ss:$0 sm:$0xff] }
   0x8   :  { %253 = vst [vmem:[%s629_s1 + $0x18] sm:$0xf] %v252_v6  ;;  %254 = vst [vmem:[%s629_s1 + $0x98] sm:$0xf] %v252_v6  ;;  %v261_v9 = vld [vmem:[%s628_s0 + $0x9] ss:$0 sm:$0xff] }
   0x9   :  { %256 = vst [vmem:[%s629_s1 + $0x1c] sm:$0xf] %v255_v7  ;;  %257 = vst [vmem:[%s629_s1 + $0x9c] sm:$0xf] %v255_v7  ;;  %v264_v10 = vld [vmem:[%s628_s0 + $0xa] ss:$0 sm:$0xff] }
   0xa   :  { %259 = vst [vmem:[%s629_s1 + $0x20] sm:$0xf] %v258_v8  ;;  %260 = vst [vmem:[%s629_s1 + $0xa0] sm:$0xf] %v258_v8  ;;  %v267_v11 = vld [vmem:[%s628_s0 + $0xb] ss:$0 sm:$0xff] }
   0xb   :  { %262 = vst [vmem:[%s629_s1 + $0x24] sm:$0xf] %v261_v9  ;;  %263 = vst [vmem:[%s629_s1 + $0xa4] sm:$0xf] %v261_v9  ;;  %v270_v12 = vld [vmem:[%s628_s0 + $0xc] ss:$0 sm:$0xff] }
   0xc   :  { %265 = vst [vmem:[%s629_s1 + $0x28] sm:$0xf] %v264_v10  ;;  %266 = vst [vmem:[%s629_s1 + $0xa8] sm:$0xf] %v264_v10  ;;  %v273_v13 = vld [vmem:[%s628_s0 + $0xd] ss:$0 sm:$0xff] }
   0xd   :  { %268 = vst [vmem:[%s629_s1 + $0x2c] sm:$0xf] %v267_v11  ;;  %269 = vst [vmem:[%s629_s1 + $0xac] sm:$0xf] %v267_v11  ;;  %v276_v14 = vld [vmem:[%s628_s0 + $0xe] ss:$0 sm:$0xff] }
   0xe   :  { %271 = vst [vmem:[%s629_s1 + $0x30] sm:$0xf] %v270_v12  ;;  %272 = vst [vmem:[%s629_s1 + $0xb0] sm:$0xf] %v270_v12  ;;  %v279_v15 = vld [vmem:[%s628_s0 + $0xf] ss:$0 sm:$0xff] }
   0xf   :  { %274 = vst [vmem:[%s629_s1 + $0x34] sm:$0xf] %v273_v13  ;;  %275 = vst [vmem:[%s629_s1 + $0xb4] sm:$0xf] %v273_v13  ;;  %v282_v16 = vld [vmem:[%s628_s0 + $0x10] ss:$0 sm:$0xff] }
  0x10   :  { %277 = vst [vmem:[%s629_s1 + $0x38] sm:$0xf] %v276_v14  ;;  %278 = vst [vmem:[%s629_s1 + $0xb8] sm:$0xf] %v276_v14  ;;  %v285_v17 = vld [vmem:[%s628_s0 + $0x11] ss:$0 sm:$0xff] }
  0x11   :  { %280 = vst [vmem:[%s629_s1 + $0x3c] sm:$0xf] %v279_v15  ;;  %281 = vst [vmem:[%s629_s1 + $0xbc] sm:$0xf] %v279_v15  ;;  %v288_v18 = vld [vmem:[%s628_s0 + $0x12] ss:$0 sm:$0xff] }
  0x12   :  { %283 = vst [vmem:[%s629_s1 + $0x40] sm:$0xf] %v282_v16  ;;  %284 = vst [vmem:[%s629_s1 + $0xc0] sm:$0xf] %v282_v16  ;;  %v291_v19 = vld [vmem:[%s628_s0 + $0x13] ss:$0 sm:$0xff] }
  0x13   :  { %286 = vst [vmem:[%s629_s1 + $0x44] sm:$0xf] %v285_v17  ;;  %287 = vst [vmem:[%s629_s1 + $0xc4] sm:$0xf] %v285_v17  ;;  %v294_v20 = vld [vmem:[%s628_s0 + $0x14] ss:$0 sm:$0xff] }
  0x14   :  { %289 = vst [vmem:[%s629_s1 + $0x48] sm:$0xf] %v288_v18  ;;  %290 = vst [vmem:[%s629_s1 + $0xc8] sm:$0xf] %v288_v18  ;;  %v297_v21 = vld [vmem:[%s628_s0 + $0x15] ss:$0 sm:$0xff] }
  0x15   :  { %292 = vst [vmem:[%s629_s1 + $0x4c] sm:$0xf] %v291_v19  ;;  %293 = vst [vmem:[%s629_s1 + $0xcc] sm:$0xf] %v291_v19  ;;  %v300_v22 = vld [vmem:[%s628_s0 + $0x16] ss:$0 sm:$0xff] }
  0x16   :  { %295 = vst [vmem:[%s629_s1 + $0x50] sm:$0xf] %v294_v20  ;;  %296 = vst [vmem:[%s629_s1 + $0xd0] sm:$0xf] %v294_v20  ;;  %v303_v23 = vld [vmem:[%s628_s0 + $0x17] ss:$0 sm:$0xff] }
  0x17   :  { %298 = vst [vmem:[%s629_s1 + $0x54] sm:$0xf] %v297_v21  ;;  %299 = vst [vmem:[%s629_s1 + $0xd4] sm:$0xf] %v297_v21  ;;  %v306_v24 = vld [vmem:[%s628_s0 + $0x18] ss:$0 sm:$0xff] }
  0x18   :  { %301 = vst [vmem:[%s629_s1 + $0x58] sm:$0xf] %v300_v22  ;;  %302 = vst [vmem:[%s629_s1 + $0xd8] sm:$0xf] %v300_v22  ;;  %v309_v25 = vld [vmem:[%s628_s0 + $0x19] ss:$0 sm:$0xff] }
  0x19   :  { %304 = vst [vmem:[%s629_s1 + $0x5c] sm:$0xf] %v303_v23  ;;  %305 = vst [vmem:[%s629_s1 + $0xdc] sm:$0xf] %v303_v23  ;;  %v312_v26 = vld [vmem:[%s628_s0 + $0x1a] ss:$0 sm:$0xff] }
  0x1a   :  { %307 = vst [vmem:[%s629_s1 + $0x60] sm:$0xf] %v306_v24  ;;  %308 = vst [vmem:[%s629_s1 + $0xe0] sm:$0xf] %v306_v24  ;;  %v315_v27 = vld [vmem:[%s628_s0 + $0x1b] ss:$0 sm:$0xff] }
  0x1b   :  { %310 = vst [vmem:[%s629_s1 + $0x64] sm:$0xf] %v309_v25  ;;  %311 = vst [vmem:[%s629_s1 + $0xe4] sm:$0xf] %v309_v25  ;;  %v318_v28 = vld [vmem:[%s628_s0 + $0x1c] ss:$0 sm:$0xff] }
  0x1c   :  { %313 = vst [vmem:[%s629_s1 + $0x68] sm:$0xf] %v312_v26  ;;  %314 = vst [vmem:[%s629_s1 + $0xe8] sm:$0xf] %v312_v26  ;;  %v321_v29 = vld [vmem:[%s628_s0 + $0x1d] ss:$0 sm:$0xff] }
  0x1d   :  { %316 = vst [vmem:[%s629_s1 + $0x6c] sm:$0xf] %v315_v27  ;;  %317 = vst [vmem:[%s629_s1 + $0xec] sm:$0xf] %v315_v27  ;;  %v324_v30 = vld [vmem:[%s628_s0 + $0x1e] ss:$0 sm:$0xff] }
  0x1e   :  { %319 = vst [vmem:[%s629_s1 + $0x70] sm:$0xf] %v318_v28  ;;  %320 = vst [vmem:[%s629_s1 + $0xf0] sm:$0xf] %v318_v28  ;;  %v327_v31 = vld [vmem:[%s628_s0 + $0x1f] ss:$0 sm:$0xff] }
  0x1f   :  { %322 = vst [vmem:[%s629_s1 + $0x74] sm:$0xf] %v321_v29  ;;  %323 = vst [vmem:[%s629_s1 + $0xf4] sm:$0xf] %v321_v29 }
  0x20   :  { %325 = vst [vmem:[%s629_s1 + $0x78] sm:$0xf] %v324_v30  ;;  %326 = vst [vmem:[%s629_s1 + $0xf8] sm:$0xf] %v324_v30 }
  0x21   :  { %328 = vst [vmem:[%s629_s1 + $0x7c] sm:$0xf] %v327_v31  ;;  %329 = vst [vmem:[%s629_s1 + $0xfc] sm:$0xf] %v327_v31 }

// kernel: tile.22
= control target key start
LH: loop header
LB: loop body
LE: loop exit
PB: predicated region body
PF: predicated region fallthrough
CT: control target
= control target key end

     0   :  { %vm322_vm0 = vcmask 1047556   ;;  %s806_s10 = smov 96   ;;  %vm324_vm1 = vcmask 261120   ;;  %s808_s28 = smov 32   ;;  %vm397_vm2 = vcmask 1048320   ;;  %vm484_vm3 = vcmask 785920   ;;  %s1195_s0 = inlined_call_operand.vmem [shape: f32[2,32,4,32], index: 0, kind: input, shape index: {}]   ;;  %s1196_s1 = inlined_call_operand.vmem [shape: f32[64,128], index: 1, kind: output, shape index: {}]  }
   0x1   :  { %v768_v0 = vld [vmem:[%s1195_s0 + $0x1c] sm:$0xf]  ;;  %v769_v1 = vld [vmem:[%s1195_s0 + $0x18] sm:$0xf]  ;;  %v770_v2 = vld [vmem:[%s1195_s0 + $0x14] sm:$0xf] }
   0x2   :  { %288 = vst [vmem:[#allocation0 + $0x38] sm:$0xf] %v768_v0  ;;  %293 = vst [vmem:[#allocation0 + $0x30] sm:$0xf] %v769_v1  ;;  %v771_v3 = vld [vmem:[%s1195_s0 + $0x10] sm:$0xf] }
   0x3   :  { %298 = vst [vmem:[#allocation0 + $0x28] sm:$0xf] %v770_v2  ;;  %v772_v4 = vld [vmem:[%s1195_s0 + $0xc] sm:$0xf]  ;;  %v773_v5 = vld [vmem:[%s1195_s0 + $0x8] sm:$0xf] }
   0x4   :  { %303 = vst [vmem:[#allocation0 + $0x20] sm:$0xf] %v771_v3  ;;  %308 = vst [vmem:[#allocation0 + $0x18] sm:$0xf] %v772_v4  ;;  %v774_v6 = vld [vmem:[%s1195_s0 + $0x4] sm:$0xf] }
   0x5   :  { %313 = vst [vmem:[#allocation0 + $0x10] sm:$0xf] %v773_v5  ;;  %v318_v7 = vld [vmem:[%s1195_s0] sm:$0xf]  ;;  %317 = vst [vmem:[#allocation0 + $0x8] sm:$0xf] %v774_v6 }
   0x6   :  { %319 = vst [vmem:[#allocation0] sm:$0xf] %v318_v7  ;;  %v760_v8 = vld [vmem:[%s1195_s0 + $0x3c] sm:$0xf]  ;;  %v761_v9 = vld [vmem:[%s1195_s0 + $0x38] sm:$0xf] }
   0x7   :  { %v762_v10 = vld [vmem:[%s1195_s0 + $0x34] sm:$0xf]  ;;  %248 = vst [vmem:[#allocation0 + $0x78] sm:$0xf] %v760_v8  ;;  %253 = vst [vmem:[#allocation0 + $0x70] sm:$0xf] %v761_v9 }
   0x8   :  { %258 = vst [vmem:[#allocation0 + $0x68] sm:$0xf] %v762_v10  ;;  %v763_v11 = vld [vmem:[%s1195_s0 + $0x30] sm:$0xf]  ;;  %v764_v12 = vld [vmem:[%s1195_s0 + $0x2c] sm:$0xf] }
   0x9   :  { %v765_v13 = vld [vmem:[%s1195_s0 + $0x28] sm:$0xf]  ;;  %263 = vst [vmem:[#allocation0 + $0x60] sm:$0xf] %v763_v11  ;;  %268 = vst [vmem:[#allocation0 + $0x58] sm:$0xf] %v764_v12 }
   0xa   :  { %273 = vst [vmem:[#allocation0 + $0x50] sm:$0xf] %v765_v13  ;;  %v766_v14 = vld [vmem:[%s1195_s0 + $0x24] sm:$0xf]  ;;  %v767_v15 = vld [vmem:[%s1195_s0 + $0x20] sm:$0xf] }
   0xb   :  { %v736_v16 = vld [vmem:[%s1195_s0 + $0x9c] sm:$0xf]  ;;  %278 = vst [vmem:[#allocation0 + $0x48] sm:$0xf] %v766_v14  ;;  %283 = vst [vmem:[#allocation0 + $0x40] sm:$0xf] %v767_v15 }
   0xc   :  { %128 = vst [vmem:[#allocation0 + $0x138] sm:$0xf] %v736_v16  ;;  %v737_v17 = vld [vmem:[%s1195_s0 + $0x98] sm:$0xf]  ;;  %v738_v18 = vld [vmem:[%s1195_s0 + $0x94] sm:$0xf] }
   0xd   :  { %v739_v19 = vld [vmem:[%s1195_s0 + $0x90] sm:$0xf]  ;;  %133 = vst [vmem:[#allocation0 + $0x130] sm:$0xf] %v737_v17  ;;  %138 = vst [vmem:[#allocation0 + $0x128] sm:$0xf] %v738_v18 }
   0xe   :  { %143 = vst [vmem:[#allocation0 + $0x120] sm:$0xf] %v739_v19  ;;  %v740_v20 = vld [vmem:[%s1195_s0 + $0x8c] sm:$0xf]  ;;  %v741_v21 = vld [vmem:[%s1195_s0 + $0x88] sm:$0xf] }
   0xf   :  { %v742_v22 = vld [vmem:[%s1195_s0 + $0x84] sm:$0xf]  ;;  %148 = vst [vmem:[#allocation0 + $0x118] sm:$0xf] %v740_v20  ;;  %153 = vst [vmem:[#allocation0 + $0x110] sm:$0xf] %v741_v21 }
  0x10   :  { %158 = vst [vmem:[#allocation0 + $0x108] sm:$0xf] %v742_v22  ;;  %v743_v23 = vld [vmem:[%s1195_s0 + $0x80] sm:$0xf]  ;;  %v728_v24 = vld [vmem:[%s1195_s0 + $0xbc] sm:$0xf] }
  0x11   :  { %v729_v25 = vld [vmem:[%s1195_s0 + $0xb8] sm:$0xf]  ;;  %163 = vst [vmem:[#allocation0 + $0x100] sm:$0xf] %v743_v23  ;;  %88 = vst [vmem:[#allocation0 + $0x178] sm:$0xf] %v728_v24 }
  0x12   :  { %v392_v26 = vld [vmem:[#allocation0 + $0x3] ss:$8 sm:$0xf0]   ;;  %93 = vst [vmem:[#allocation0 + $0x170] sm:$0xf] %v729_v25  ;;  %vm571_vm4 = vcmask 523520  }
  0x13   :  { %v730_v27 = vld [vmem:[%s1195_s0 + $0xb4] sm:$0xf]  ;;  %v390_v28 = vld [vmem:[#allocation0 + $0x3] ss:$8 sm:$0xf]  }
  0x14   :  { %98 = vst [vmem:[#allocation0 + $0x168] sm:$0xf] %v730_v27  ;;  %v731_v29 = vld [vmem:[%s1195_s0 + $0xb0] sm:$0xf]  ;;  %v394_v30 = vsel %vm322_vm0, %v392_v26, %v390_v28  ;;  %v732_v31 = vld [vmem:[%s1195_s0 + $0xac] sm:$0xf] }
  0x15   :  { %103 = vst [vmem:[#allocation0 + $0x160] sm:$0xf] %v731_v29  ;;  %v733_v32 = vld [vmem:[%s1195_s0 + $0xa8] sm:$0xf]  ;;  %v734_v33 = vld [vmem:[%s1195_s0 + $0xa4] sm:$0xf]  ;;  %395 = vrot.lane.b32.xlu0 %v394_v30, %s806_s10 }
  0x16   :  { %v413_v34 = vld [vmem:[#allocation0 + $0x43] ss:$8 sm:$0xf0]   ;;  %108 = vst [vmem:[#allocation0 + $0x158] sm:$0xf] %v732_v31 }
  0x17   :  { %113 = vst [vmem:[#allocation0 + $0x150] sm:$0xf] %v733_v32  ;;  %118 = vst [vmem:[#allocation0 + $0x148] sm:$0xf] %v734_v33  ;;  %v735_v35 = vld [vmem:[%s1195_s0 + $0xa0] sm:$0xf] }
  0x18   :  { %v411_v36 = vld [vmem:[#allocation0 + $0x43] ss:$8 sm:$0xf]   ;;  %123 = vst [vmem:[#allocation0 + $0x140] sm:$0xf] %v735_v35 }
  0x19   :  { %v752_v37 = vld [vmem:[%s1195_s0 + $0x5c] sm:$0xf]  ;;  %v415_v38 = vsel %vm322_vm0, %v413_v34, %v411_v36  ;;  %v402_v39 = vld [vmem:[#allocation0 + $0x103] ss:$8 sm:$0xf0]  }
  0x1a   :  { %208 = vst [vmem:[#allocation0 + $0xb8] sm:$0xf] %v752_v37  ;;  %v753_v40 = vld [vmem:[%s1195_s0 + $0x58] sm:$0xf]  ;;  %416 = vrot.lane.b32.xlu1 %v415_v38, %s806_s10  ;;  %v754_v41 = vld [vmem:[%s1195_s0 + $0x54] sm:$0xf] }
  0x1b   :  { %213 = vst [vmem:[#allocation0 + $0xb0] sm:$0xf] %v753_v40  ;;  %v755_v42 = vld [vmem:[%s1195_s0 + $0x50] sm:$0xf]  ;;  %v756_v43 = vld [vmem:[%s1195_s0 + $0x4c] sm:$0xf] }
  0x1c   :  { %v400_v44 = vld [vmem:[#allocation0 + $0x103] ss:$8 sm:$0xf]   ;;  %218 = vst [vmem:[#allocation0 + $0xa8] sm:$0xf] %v754_v41 }
  0x1d   :  { %223 = vst [vmem:[#allocation0 + $0xa0] sm:$0xf] %v755_v42  ;;  %228 = vst [vmem:[#allocation0 + $0x98] sm:$0xf] %v756_v43  ;;  %v757_v45 = vld [vmem:[%s1195_s0 + $0x48] sm:$0xf]  ;;  %v404_v46 = vsel %vm322_vm0, %v402_v39, %v400_v44 }
  0x1e   :  { %233 = vst [vmem:[#allocation0 + $0x90] sm:$0xf] %v757_v45  ;;  %v758_v47 = vld [vmem:[%s1195_s0 + $0x44] sm:$0xf]  ;;  %v759_v48 = vld [vmem:[%s1195_s0 + $0x40] sm:$0xf]  ;;  %405 = vrot.lane.b32.xlu0 %v404_v46, %s806_s10 }
  0x1f   :  { %v720_v49 = vld [vmem:[%s1195_s0 + $0xdc] sm:$0xf]  ;;  %v424_v50 = vld [vmem:[#allocation0 + $0x143] ss:$8 sm:$0xf0]  }
  0x20   :  { %238 = vst [vmem:[#allocation0 + $0x88] sm:$0xf] %v758_v47  ;;  %243 = vst [vmem:[#allocation0 + $0x80] sm:$0xf] %v759_v48  ;;  %v721_v51 = vld [vmem:[%s1195_s0 + $0xd8] sm:$0xf] }
  0x21   :  { %48 = vst [vmem:[#allocation0 + $0x1b8] sm:$0xf] %v720_v49  ;;  %53 = vst [vmem:[#allocation0 + $0x1b0] sm:$0xf] %v721_v51  ;;  %v722_v52 = vld [vmem:[%s1195_s0 + $0xd4] sm:$0xf] }
  0x22   :  { %v723_v53 = vld [vmem:[%s1195_s0 + $0xd0] sm:$0xf]  ;;  %v724_v54 = vld [vmem:[%s1195_s0 + $0xcc] sm:$0xf]  ;;  %58 = vst [vmem:[#allocation0 + $0x1a8] sm:$0xf] %v722_v52 }
  0x23   :  { %v422_v55 = vld [vmem:[#allocation0 + $0x143] ss:$8 sm:$0xf]   ;;  %63 = vst [vmem:[#allocation0 + $0x1a0] sm:$0xf] %v723_v53 }
  0x24   :  { %68 = vst [vmem:[#allocation0 + $0x198] sm:$0xf] %v724_v54  ;;  %v725_v56 = vld [vmem:[%s1195_s0 + $0xc8] sm:$0xf]  ;;  %v426_v57 = vsel %vm322_vm0, %v424_v50, %v422_v55  ;;  %v726_v58 = vld [vmem:[%s1195_s0 + $0xc4] sm:$0xf] }
  0x25   :  { %73 = vst [vmem:[#allocation0 + $0x190] sm:$0xf] %v725_v56  ;;  %v727_v59 = vld [vmem:[%s1195_s0 + $0xc0] sm:$0xf]  ;;  %v744_v60 = vld [vmem:[%s1195_s0 + $0x7c] sm:$0xf]  ;;  %427 = vrot.lane.b32.xlu1 %v426_v57, %s806_s10 }
  0x26   :  { %78 = vst [vmem:[#allocation0 + $0x188] sm:$0xf] %v726_v58  ;;  %83 = vst [vmem:[#allocation0 + $0x180] sm:$0xf] %v727_v59  ;;  %v745_v61 = vld [vmem:[%s1195_s0 + $0x78] sm:$0xf] }
  0x27   :  { %168 = vst [vmem:[#allocation0 + $0xf8] sm:$0xf] %v744_v60  ;;  %v746_v62 = vld [vmem:[%s1195_s0 + $0x74] sm:$0xf]  ;;  %v747_v63 = vld [vmem:[%s1195_s0 + $0x70] sm:$0xf] }
  0x28   :  { %v435_v0 = vld [vmem:[#allocation0 + $0x83] ss:$8 sm:$0xf0]   ;;  %173 = vst [vmem:[#allocation0 + $0xf0] sm:$0xf] %v745_v61 }
  0x29   :  { %178 = vst [vmem:[#allocation0 + $0xe8] sm:$0xf] %v746_v62  ;;  %183 = vst [vmem:[#allocation0 + $0xe0] sm:$0xf] %v747_v63  ;;  %v748_v1 = vld [vmem:[%s1195_s0 + $0x6c] sm:$0xf] }
  0x2a   :  { %188 = vst [vmem:[#allocation0 + $0xd8] sm:$0xf] %v748_v1  ;;  %v749_v2 = vld [vmem:[%s1195_s0 + $0x68] sm:$0xf]  ;;  %v750_v3 = vld [vmem:[%s1195_s0 + $0x64] sm:$0xf] }
  0x2b   :  { %v751_v4 = vld [vmem:[%s1195_s0 + $0x60] sm:$0xf]  ;;  %193 = vst [vmem:[#allocation0 + $0xd0] sm:$0xf] %v749_v2  ;;  %198 = vst [vmem:[#allocation0 + $0xc8] sm:$0xf] %v750_v3 }
  0x2c   :  { %v433_v5 = vld [vmem:[#allocation0 + $0x83] ss:$8 sm:$0xf]   ;;  %203 = vst [vmem:[#allocation0 + $0xc0] sm:$0xf] %v751_v4 }
  0x2d   :  { %v712_v6 = vld [vmem:[%s1195_s0 + $0xfc] sm:$0xf]  ;;  %v437_v7 = vsel %vm322_vm0, %v435_v0, %v433_v5  ;;  %v713_v8 = vld [vmem:[%s1195_s0 + $0xf8] sm:$0xf]  ;;  %v714_v9 = vld [vmem:[%s1195_s0 + $0xf4] sm:$0xf] }
  0x2e   :  { %8 = vst [vmem:[#allocation0 + $0x1f8] sm:$0xf] %v712_v6  ;;  %v715_v10 = vld [vmem:[%s1195_s0 + $0xf0] sm:$0xf]  ;;  %438 = vrot.lane.b32.xlu0 %v437_v7, %s806_s10  ;;  %13 = vst [vmem:[#allocation0 + $0x1f0] sm:$0xf] %v713_v8 }
  0x2f   :  { %v446_v11 = vld [vmem:[#allocation0 + $0x183] ss:$8 sm:$0xf0]   ;;  %18 = vst [vmem:[#allocation0 + $0x1e8] sm:$0xf] %v714_v9 }
  0x30   :  { %23 = vst [vmem:[#allocation0 + $0x1e0] sm:$0xf] %v715_v10  ;;  %v716_v12 = vld [vmem:[%s1195_s0 + $0xec] sm:$0xf]  ;;  %v717_v13 = vld [vmem:[%s1195_s0 + $0xe8] sm:$0xf] }
  0x31   :  { %28 = vst [vmem:[#allocation0 + $0x1d8] sm:$0xf] %v716_v12  ;;  %v718_v14 = vld [vmem:[%s1195_s0 + $0xe4] sm:$0xf]  ;;  %v719_v15 = vld [vmem:[%s1195_s0 + $0xe0] sm:$0xf] }
  0x32   :  { %v444_v16 = vld [vmem:[#allocation0 + $0x183] ss:$8 sm:$0xf]   ;;  %33 = vst [vmem:[#allocation0 + $0x1d0] sm:$0xf] %v717_v13  ;;  %s807_s0 = smov 64  }
  0x33   :  { %38 = vst [vmem:[#allocation0 + $0x1c8] sm:$0xf] %v718_v14  ;;  %43 = vst [vmem:[#allocation0 + $0x1c0] sm:$0xf] %v719_v15  ;;  %v448_v17 = vsel %vm322_vm0, %v446_v11, %v444_v16 }
  0x34   :  { %v457_v18 = vld [vmem:[#allocation0 + $0xc3] ss:$8 sm:$0xf0]   ;;  %449 = vrot.lane.b32.xlu1 %v448_v17, %s806_s10  ;;  %v477_v19 = vld [vmem:[#allocation0 + $0x2] ss:$8 sm:$0xf]  }
  0x35   :  { %v455_v20 = vld [vmem:[#allocation0 + $0xc3] ss:$8 sm:$0xf]   ;;  %v479_v21 = vld [vmem:[#allocation0 + $0x2] ss:$8 sm:$0xf0]  }
  0x36   :  { %v459_v22 = vsel %vm322_vm0, %v457_v18, %v455_v20  ;;  %v487_v24 = vld [vmem:[#allocation0 + $0x102] ss:$8 sm:$0xf]   ;;  %v481_v25 = vsel %vm322_vm0, %v479_v21, %v477_v19  ;;  %v564_v45 = vld [vmem:[#allocation0 + $0x1] ss:$8 sm:$0xf]  }
  0x37   :  { %460 = vrot.lane.b32.xlu0 %v459_v22, %s806_s10  ;;  %v468_v23 = vld [vmem:[#allocation0 + $0x1c3] ss:$8 sm:$0xf0]   ;;  %v489_v26 = vld [vmem:[#allocation0 + $0x102] ss:$8 sm:$0xf0]  }
  0x38   :  { %v498_v27 = vld [vmem:[#allocation0 + $0x42] ss:$8 sm:$0xf]   ;;  %v491_v31 = vsel %vm322_vm0, %v489_v26, %v487_v24  ;;  %v566_v48 = vld [vmem:[#allocation0 + $0x1] ss:$8 sm:$0xf0]  }
  0x39   :  { %v500_v29 = vld [vmem:[#allocation0 + $0x42] ss:$8 sm:$0xf0]   ;;  %v320_v49 = vld [vmem:[#allocation0] ss:$8 sm:$0xf]   ;;  %v568_v63 = vsel %vm322_vm0, %v566_v48, %v564_v45 }
  0x3a   :  { %v466_v28 = vld [vmem:[#allocation0 + $0x1c3] ss:$8 sm:$0xf]   ;;  %v502_v32 = vsel %vm322_vm0, %v500_v29, %v498_v27  ;;  %v509_v33 = vld [vmem:[#allocation0 + $0x142] ss:$8 sm:$0xf]  }
  0x3b   :  { %v470_v30 = vsel %vm322_vm0, %v468_v23, %v466_v28  ;;  %482 = vrot.lane.b32.xlu0 %v481_v25, %s807_s0  ;;  %v511_v34 = vld [vmem:[#allocation0 + $0x142] ss:$8 sm:$0xf0]   ;;  %v321_v50 = vld [vmem:[#allocation0] ss:$8 sm:$0xf0]  }
  0x3c   :  { %471 = vrot.lane.b32.xlu1 %v470_v30, %s806_s10  ;;  %v520_v35 = vld [vmem:[#allocation0 + $0x82] ss:$8 sm:$0xf]   ;;  %v513_v37 = vsel %vm322_vm0, %v511_v34, %v509_v33  ;;  %v327_v51 = vld [vmem:[#allocation0 + $0x40] ss:$8 sm:$0xf]   ;;  %v323_v52 = vsel %vm322_vm0, %v321_v50, %v320_v49 }
  0x3d   :  { %v522_v36 = vld [vmem:[#allocation0 + $0x82] ss:$8 sm:$0xf0]   ;;  %v329_v53 = vld [vmem:[#allocation0 + $0x40] ss:$8 sm:$0xf0]  }
  0x3e   :  { %v524_v38 = vsel %vm322_vm0, %v522_v36, %v520_v35  ;;  %v531_v39 = vld [vmem:[#allocation0 + $0x182] ss:$8 sm:$0xf]   ;;  %v354_v54 = vld [vmem:[#allocation0 + $0x100] ss:$8 sm:$0xf]   ;;  %v331_v59 = vsel %vm322_vm0, %v329_v53, %v327_v51 }
  0x3f   :  { %503 = vrot.lane.b32.xlu0 %v502_v32, %s807_s0  ;;  %v533_v40 = vld [vmem:[#allocation0 + $0x182] ss:$8 sm:$0xf0]   ;;  %v574_v55 = vld [vmem:[#allocation0 + $0x101] ss:$8 sm:$0xf]  }
  0x40   :  { %492 = vrot.lane.b32.xlu1 %v491_v31, %s807_s0  ;;  %v542_v41 = vld [vmem:[#allocation0 + $0xc2] ss:$8 sm:$0xf]   ;;  %v535_v46 = vsel %vm322_vm0, %v533_v40, %v531_v39  ;;  %v576_v56 = vld [vmem:[#allocation0 + $0x101] ss:$8 sm:$0xf0]  }
  0x41   :  { %v544_v42 = vld [vmem:[#allocation0 + $0xc2] ss:$8 sm:$0xf0]   ;;  %v585_v57 = vld [vmem:[#allocation0 + $0x41] ss:$8 sm:$0xf]   ;;  %v578_v13 = vsel %vm322_vm0, %v576_v56, %v574_v55 }
  0x42   :  { %v553_v43 = vld [vmem:[#allocation0 + $0x1c2] ss:$8 sm:$0xf]   ;;  %v546_v47 = vsel %vm322_vm0, %v544_v42, %v542_v41  ;;  %v587_v58 = vld [vmem:[#allocation0 + $0x41] ss:$8 sm:$0xf0]  }
  0x43   :  { %525 = vrot.lane.b32.xlu0 %v524_v38, %s807_s0  ;;  %v555_v44 = vld [vmem:[#allocation0 + $0x1c2] ss:$8 sm:$0xf0]   ;;  %325 = vst.msk [vmem:[%s1196_s1] sm:$0xff] %vm324_vm1, %v323_v52   ;;  %775 = vst.msk [vmem:[%s1196_s1 + $0x8] sm:$0xff] %vm324_vm1, %v331_v59   ;;  %v589_v14 = vsel %vm322_vm0, %v587_v58, %v585_v57 }
  0x44   :  { %514 = vrot.lane.b32.xlu1 %v513_v37, %s807_s0  ;;  %v356_v60 = vld [vmem:[#allocation0 + $0x100] ss:$8 sm:$0xf0]   ;;  %v557_v62 = vsel %vm322_vm0, %v555_v44, %v553_v43  ;;  %v596_v9 = vld [vmem:[#allocation0 + $0x141] ss:$8 sm:$0xf]  }
  0x45   :  { %v363_v61 = vld [vmem:[#allocation0 + $0x140] ss:$8 sm:$0xf]   ;;  %v358_v0 = vsel %vm322_vm0, %v356_v60, %v354_v54  ;;  %v598_v15 = vld [vmem:[#allocation0 + $0x141] ss:$8 sm:$0xf0]  }
  0x46   :  { %v365_v1 = vld [vmem:[#allocation0 + $0x140] ss:$8 sm:$0xf0]   ;;  %778 = vst.msk [vmem:[%s1196_s1 + $0x20] sm:$0xff] %vm324_vm1, %v358_v0   ;;  %v600_v21 = vsel %vm322_vm0, %v598_v15, %v596_v9 }
  0x47   :  { %547 = vrot.lane.b32.xlu0 %v546_v47, %s807_s0  ;;  %v336_v2 = vld [vmem:[#allocation0 + $0x80] ss:$8 sm:$0xf]   ;;  %v367_v3 = vsel %vm322_vm0, %v365_v1, %v363_v61  ;;  %v607_v18 = vld [vmem:[#allocation0 + $0x81] ss:$8 sm:$0xf]  }
  0x48   :  { %536 = vrot.lane.b32.xlu1 %v535_v46, %s807_s0  ;;  %v338_v4 = vld [vmem:[#allocation0 + $0x80] ss:$8 sm:$0xf0]   ;;  %779 = vst.msk [vmem:[%s1196_s1 + $0x28] sm:$0xff] %vm324_vm1, %v367_v3  }
  0x49   :  { %v372_v5 = vld [vmem:[#allocation0 + $0x180] ss:$8 sm:$0xf]   ;;  %v340_v6 = vsel %vm322_vm0, %v338_v4, %v336_v2  ;;  %v609_v19 = vld [vmem:[#allocation0 + $0x81] ss:$8 sm:$0xf0]  }
  0x4a   :  { %v374_v7 = vld [vmem:[#allocation0 + $0x180] ss:$8 sm:$0xf0]   ;;  %776 = vst.msk [vmem:[%s1196_s1 + $0x10] sm:$0xff] %vm324_vm1, %v340_v6   ;;  %v611_v22 = vsel %vm322_vm0, %v609_v19, %v607_v18 }
  0x4b   :  { %v345_v8 = vld [vmem:[#allocation0 + $0xc0] ss:$8 sm:$0xf]   ;;  %569 = vrot.lane.b32.xlu0 %v568_v63, %s808_s28  ;;  %v376_v10 = vsel %vm322_vm0, %v374_v7, %v372_v5  ;;  %v618_v23 = vld [vmem:[#allocation0 + $0x181] ss:$8 sm:$0xf]  }
  0x4c   :  { %558 = vrot.lane.b32.xlu1 %v557_v62, %s807_s0  ;;  %v347_v11 = vld [vmem:[#allocation0 + $0xc0] ss:$8 sm:$0xf0]   ;;  %780 = vst.msk [vmem:[%s1196_s1 + $0x30] sm:$0xff] %vm324_vm1, %v376_v10  }
  0x4d   :  { %v381_v12 = vld [vmem:[#allocation0 + $0x1c0] ss:$8 sm:$0xf]   ;;  %v349_v16 = vsel %vm322_vm0, %v347_v11, %v345_v8  ;;  %v620_v24 = vld [vmem:[#allocation0 + $0x181] ss:$8 sm:$0xf0]  }
  0x4e   :  { %v383_v17 = vld [vmem:[#allocation0 + $0x1c0] ss:$8 sm:$0xf0]   ;;  %777 = vst.msk [vmem:[%s1196_s1 + $0x18] sm:$0xff] %vm324_vm1, %v349_v16   ;;  %v622_v27 = vsel %vm322_vm0, %v620_v24, %v618_v23 }
  0x4f   :  { %v385_v20 = vsel %vm322_vm0, %v383_v17, %v381_v12  ;;  %590 = vrot.lane.b32.xlu0 %v589_v14, %s808_s28  ;;  %v629_v25 = vld [vmem:[#allocation0 + $0xc1] ss:$8 sm:$0xf]  }
  0x50   :  { %781 = vst.msk [vmem:[%s1196_s1 + $0x38] sm:$0xff] %vm324_vm1, %v385_v20   ;;  %579 = vrot.lane.b32.xlu1 %v578_v13, %s808_s28  ;;  %v631_v26 = vld [vmem:[#allocation0 + $0xc1] ss:$8 sm:$0xf0]  }
  0x51   :  { %v633_v28 = vsel %vm322_vm0, %v631_v26, %v629_v25  ;;  %v640_v29 = vld [vmem:[#allocation0 + $0x1c1] ss:$8 sm:$0xf]  }
  0x52   :  { %v642_v30 = vld [vmem:[#allocation0 + $0x1c1] ss:$8 sm:$0xf0]  }
  0x53   :  { %612 = vrot.lane.b32.xlu0 %v611_v22, %s808_s28  ;;  %v644_v31 = vsel %vm322_vm0, %v642_v30, %v640_v29 }
  0x54   :  { %601 = vrot.lane.b32.xlu1 %v600_v21, %s808_s28 }
  0x57   :  { %634 = vrot.lane.b32.xlu0 %v633_v28, %s808_s28 }
  0x58   :  { %623 = vrot.lane.b32.xlu1 %v622_v27, %s808_s28 }
  0x5c   :  { %645 = vrot.lane.b32.xlu1 %v644_v31, %s808_s28 }
  0x87   :  { %v396_v32 = vpop.permute.xlu0 %395  }
  0x88   :  { %398 = vst.msk [vmem:[%s1196_s1] sm:$0xff] %vm397_vm2, %v396_v32  }
  0x8c   :  { %v417_v33 = vpop.permute.xlu1 %416  }
  0x8d   :  { %783 = vst.msk [vmem:[%s1196_s1 + $0x8] sm:$0xff] %vm397_vm2, %v417_v33  }
  0x90   :  { %v406_v34 = vpop.permute.xlu0 %405  }
  0x91   :  { %782 = vst.msk [vmem:[%s1196_s1 + $0x20] sm:$0xff] %vm397_vm2, %v406_v34  }
  0x97   :  { %v428_v35 = vpop.permute.xlu1 %427  }
  0x98   :  { %784 = vst.msk [vmem:[%s1196_s1 + $0x28] sm:$0xff] %vm397_vm2, %v428_v35  }
  0xa0   :  { %v439_v36 = vpop.permute.xlu0 %438  }
  0xa1   :  { %785 = vst.msk [vmem:[%s1196_s1 + $0x10] sm:$0xff] %vm397_vm2, %v439_v36  }
  0xa6   :  { %v450_v37 = vpop.permute.xlu1 %449  }
  0xa7   :  { %786 = vst.msk [vmem:[%s1196_s1 + $0x30] sm:$0xff] %vm397_vm2, %v450_v37  }
  0xa9   :  { %v461_v38 = vpop.permute.xlu0 %460  }
  0xaa   :  { %787 = vst.msk [vmem:[%s1196_s1 + $0x18] sm:$0xff] %vm397_vm2, %v461_v38  }
  0xad   :  { %v483_v40 = vpop.permute.xlu0 %482  }
  0xae   :  { %v472_v39 = vpop.permute.xlu1 %471   ;;  %485 = vst.msk [vmem:[%s1196_s1] sm:$0xff] %vm484_vm3, %v483_v40  }
  0xaf   :  { %788 = vst.msk [vmem:[%s1196_s1 + $0x38] sm:$0xff] %vm397_vm2, %v472_v39  }
  0xb1   :  { %v504_v42 = vpop.permute.xlu0 %503  }
  0xb2   :  { %v493_v41 = vpop.permute.xlu1 %492   ;;  %790 = vst.msk [vmem:[%s1196_s1 + $0x8] sm:$0xff] %vm484_vm3, %v504_v42  }
  0xb3   :  { %789 = vst.msk [vmem:[%s1196_s1 + $0x20] sm:$0xff] %vm484_vm3, %v493_v41  }
  0xb5   :  { %v526_v44 = vpop.permute.xlu0 %525  }
  0xb6   :  { %v515_v43 = vpop.permute.xlu1 %514   ;;  %792 = vst.msk [vmem:[%s1196_s1 + $0x10] sm:$0xff] %vm484_vm3, %v526_v44  }
  0xb7   :  { %791 = vst.msk [vmem:[%s1196_s1 + $0x28] sm:$0xff] %vm484_vm3, %v515_v43  }
  0xb9   :  { %v548_v46 = vpop.permute.xlu0 %547  }
  0xba   :  { %v537_v45 = vpop.permute.xlu1 %536   ;;  %794 = vst.msk [vmem:[%s1196_s1 + $0x18] sm:$0xff] %vm484_vm3, %v548_v46  }
  0xbb   :  { %793 = vst.msk [vmem:[%s1196_s1 + $0x30] sm:$0xff] %vm484_vm3, %v537_v45  }
  0xbd   :  { %v570_v48 = vpop.permute.xlu0 %569  }
  0xbe   :  { %v559_v47 = vpop.permute.xlu1 %558   ;;  %572 = vst.msk [vmem:[%s1196_s1] sm:$0xff] %vm571_vm4, %v570_v48  }
  0xbf   :  { %795 = vst.msk [vmem:[%s1196_s1 + $0x38] sm:$0xff] %vm484_vm3, %v559_v47  }
  0xc1   :  { %v591_v50 = vpop.permute.xlu0 %590  }
  0xc2   :  { %v580_v49 = vpop.permute.xlu1 %579   ;;  %797 = vst.msk [vmem:[%s1196_s1 + $0x8] sm:$0xff] %vm571_vm4, %v591_v50  }
  0xc3   :  { %796 = vst.msk [vmem:[%s1196_s1 + $0x20] sm:$0xff] %vm571_vm4, %v580_v49  }
  0xc5   :  { %v613_v52 = vpop.permute.xlu0 %612  }
  0xc6   :  { %v602_v51 = vpop.permute.xlu1 %601   ;;  %799 = vst.msk [vmem:[%s1196_s1 + $0x10] sm:$0xff] %vm571_vm4, %v613_v52  }
  0xc7   :  { %798 = vst.msk [vmem:[%s1196_s1 + $0x28] sm:$0xff] %vm571_vm4, %v602_v51  }
  0xc9   :  { %v635_v54 = vpop.permute.xlu0 %634  }
  0xca   :  { %v624_v53 = vpop.permute.xlu1 %623   ;;  %801 = vst.msk [vmem:[%s1196_s1 + $0x18] sm:$0xff] %vm571_vm4, %v635_v54  }
  0xcb   :  { %800 = vst.msk [vmem:[%s1196_s1 + $0x30] sm:$0xff] %vm571_vm4, %v624_v53  }
  0xce   :  { %v646_v55 = vpop.permute.xlu1 %645  }
  0xcf   :  { %802 = vst.msk [vmem:[%s1196_s1 + $0x38] sm:$0xff] %vm571_vm4, %v646_v55  }

// kernel: eq.10
= control target key start
LH: loop header
LB: loop body
LE: loop exit
PB: predicated region body
PF: predicated region fallthrough
CT: control target
= control target key end

     0   :  { %vm7_vm0 = vcmask 261120   ;;  %s37_s8 = smov 32   ;;  %s38_s9 = smov 64   ;;  %vm13_vm1 = vcmask 1048320   ;;  %vm19_vm2 = vcmask 785920   ;;  %vm25_vm3 = vcmask 523520   ;;  %s55_s0 = inlined_call_operand.vmem [shape: s32[4,32], index: 0, kind: input, shape index: {}]   ;;  %s56_s1 = inlined_call_operand.vmem [shape: s32[128], index: 1, kind: output, shape index: {}]  }
   0x1   :  { %v4_v0 = vld [vmem:[%s55_s0] sm:$0xf]  ;;  %s36_s0 = smov 96  }
   0x2   :  { %5 = vst [vmem:[#allocation1] sm:$0xf] %v4_v0 }
   0x9   :  { %v10_v1 = vld [vmem:[#allocation1 + $0x3] sm:$0x1]   ;;  %v22_v2 = vld [vmem:[#allocation1 + $0x1] sm:$0x1]   ;;  %v6_v3 = vld [vmem:[#allocation1] sm:$0x1]  }
   0xa   :  { %11 = vrot.lane.b32.xlu0 %v10_v1, %s36_s0  ;;  %23 = vrot.lane.b32.xlu1 %v22_v2, %s37_s8  ;;  %v16_v4 = vld [vmem:[#allocation1 + $0x2] sm:$0x1]   ;;  %8 = vst.msk [vmem:[#allocation0] sm:$0x1] %vm7_vm0, %v6_v3  }
   0xe   :  { %17 = vrot.lane.b32.xlu0 %v16_v4, %s38_s9 }
  0x7c   :  { %v12_v5 = vpop.permute.xlu0 %11   ;;  %v24_v6 = vpop.permute.xlu1 %23  }
  0x7d   :  { %14 = vst.msk [vmem:[#allocation0] sm:$0x1] %vm13_vm1, %v12_v5  }
  0x80   :  { %v18_v7 = vpop.permute.xlu0 %17  }
  0x81   :  { %20 = vst.msk [vmem:[#allocation0] sm:$0x1] %vm19_vm2, %v18_v7  }
  0x82   :  { %26 = vst.msk [vmem:[#allocation0] sm:$0x1] %vm25_vm3, %v24_v6  }
  0x89   :  { %v30_v8 = vld [vmem:[#allocation0] sm:$0x1] }
  0x8a   :  { %32 = vst [vmem:[%s56_s1] sm:$0x1] %v30_v8 }

// kernel: vjepa_forward.1
= control target key start
LH: loop header
LB: loop body
LE: loop exit
PB: predicated region body
PF: predicated region fallthrough
CT: control target
= control target key end

     0   :  { %16 = vsyncpa [#allocation4], 0  ;;  %s4335_s17 = smov 0   ;;  %s5593_s0 = inlined_call_operand.vmem [shape: bf16[64,192], index: 0, kind: input, shape index: {}]   ;;  %s5594_s1 = inlined_call_operand.vmem [shape: bf16[192,128], index: 1, kind: input, shape index: {}]   ;;  %s5595_s2 = inlined_call_operand.vmem [shape: f32[1,128], index: 2, kind: input, shape index: {}]   ;;  %s5596_s3 = inlined_call_operand.vmem [shape: bf16[2,128,1024], index: 3, kind: input, shape index: {}]   ;;  %s5597_s4 = inlined_call_operand.vmem [shape: bf16[2,512,128], index: 4, kind: input, shape index: {}]   ;;  %s5598_s5 = inlined_call_operand.vmem [shape: f32[2,8,512], index: 5, kind: input, shape index: {}]   ;;  %s5599_s6 = inlined_call_operand.vmem [shape: f32[2,128], index: 6, kind: input, shape index: {}]   ;;  %s5600_s7 = inlined_call_operand.vmem [shape: f32[64,128], index: 7, kind: input, shape index: {}]   ;;  %s5601_s8 = inlined_call_operand.vmem [shape: f32[64,128], index: 8, kind: input, shape index: {}]   ;;  %s5602_s9 = inlined_call_operand.vmem [shape: bf16[128,128], index: 9, kind: input, shape index: {}]   ;;  %s5603_s10 = inlined_call_operand.vmem [shape: bf16[128,128], index: 10, kind: input, shape index: {}]   ;;  %s5604_s11 = inlined_call_operand.hbm [shape: f32[64,128], index: 11, kind: output, shape index: {}]  }
   0x1 LB: > { %s4341_s18 = sadd.s32 4294967295, %s4268_s17   ;;  %p3375_p0 = scmp.ge.s32.totalorder %s4268_s17, 1  ;;  %s4268_s17 = sphi %s4335_s17, %s22_s17  }
   0x2   : > { %p353_p1 = scmp.lt.s32.totalorder %s4268_s17, 3 }
   0x4   : > { %p354_p2 = pnand %p3375_p0, %p353_p1 }
   0x6   : > { %357 = sbr.rel (%p354_p2) target bundleno = 2785 (0xae1), region = 64 }
   0xd   : > { %p398_p3 = scmp.lt.s32.totalorder %s4341_s18, 1  ;;  %p3382_p4 = scmp.ne.s32.totalorder %s4341_s18, 0 }
   0xe   : > { %v3991_v0 = vld [vmem:[%s5594_s1] sm:$0xff] (!%p3382_p4)   ;;  %v4270_v1 = vmov (!%p3382_p4), 0   ;;  %v3992_v2 = vld [vmem:[%s5594_s1 + $0x8] sm:$0xff] (!%p3382_p4)   ;;  %v3993_v3 = vld [vmem:[%s5594_s1 + $0x10] sm:$0xff] (!%p3382_p4)   ;;  %vm565_vm0 = vcmask (!%p3382_p4), 523264  }
   0xf   : > { %s399_s19 = scalar_select %p398_p3, %s4341_s18, 1 }
  0x10   : > { %417 = sbr.rel (%p3382_p4) target bundleno = 289 (0x121), region = 68  ;;  %578 = vmatprep.subr.bf16.mxu0 (!%p3382_p4), %v4270_v1  ;;  %3932 = vmatprep.subr.bf16.mxu1 (!%p3382_p4), %v4270_v1  ;;  %v3994_v4 = vld [vmem:[%s5594_s1 + $0x18] sm:$0xff] (!%p3382_p4)   ;;  %v4005_v5 = vld [vmem:[%s5593_s0 + $0x4] ss:$8 sps:$4 sm:$0xff] (!%p3382_p4)   ;;  %v3997_v9 = vld [vmem:[%s5594_s1 + $0x30] sm:$0xff] (!%p3382_p4)  }
  0x11   : > { %s3525_s20 = sshll.u32 %s399_s19, 9  ;;  %s3526_s21 = sshll.u32 %s399_s19, 8  ;;  %579 = vmatpush1.bf16.msra.mxu0 (!%p3382_p4), %v3991_v0  ;;  %3944 = vmatpush1.bf16.msra.mxu1 (!%p3382_p4), %v3991_v0  ;;  %v3995_v6 = vld [vmem:[%s5594_s1 + $0x20] sm:$0xff] (!%p3382_p4)   ;;  %v3996_v8 = vld [vmem:[%s5594_s1 + $0x28] sm:$0xff] (!%p3382_p4)   ;;  %v3998_v10 = vld [vmem:[%s5594_s1 + $0x38] sm:$0xff] (!%p3382_p4)  }
  0x12   : > { %s4350_s24 = scalar_lea.vmem %s5596_s3, %s3525_s20  ;;  %s4355_s27 = scalar_lea.vmem %s5597_s4, %s3526_s21  ;;  %580 = vmatprep.subr.bf16.mxu0 (!%p3382_p4), %v4270_v1  ;;  %3933 = vmatprep.subr.bf16.mxu1 (!%p3382_p4), %v4270_v1  ;;  %v4008_v7 = vld [vmem:[%s5593_s0 + $0x24] ss:$8 sps:$4 sm:$0xff] (!%p3382_p4)   ;;  %v4001_v13 = vld [vmem:[%s5594_s1 + $0x50] sm:$0xff] (!%p3382_p4)   ;;  %v4002_v14 = vld [vmem:[%s5594_s1 + $0x58] sm:$0xff] (!%p3382_p4)  }
  0x13   : > { %s3527_s28 = sshll.u32 %s399_s19, 5  ;;  %3404 = vmatprep.mubr.msk.bf16.mxu0 (!%p3382_p4), %vm565_vm0, %v4005_v5  ;;  %3406 = vmatprep.mubr.msk.bf16.mxu1 (!%p3382_p4), %vm565_vm0, %v4008_v7  ;;  %v3999_v11 = vld [vmem:[%s5594_s1 + $0x40] sm:$0xff] (!%p3382_p4)   ;;  %v4000_v12 = vld [vmem:[%s5594_s1 + $0x48] sm:$0xff] (!%p3382_p4)   ;;  %v4009_v17 = vld [vmem:[%s5593_s0 + $0x14] ss:$8 sps:$4 sm:$0xff] (!%p3382_p4)  }
  0x14   : > { %s4360_s12 = scalar_lea.vmem %s5598_s5, %s3527_s28  ;;  %v4003_v15 = vld [vmem:[%s5593_s0] ss:$8 sps:$4 sm:$0xff] (!%p3382_p4)   ;;  %v4011_v18 = vld [vmem:[%s5593_s0 + $0x34] ss:$8 sps:$4 sm:$0xff] (!%p3382_p4)   ;;  %v4013_v19 = vld [vmem:[%s5593_s0 + $0x10] ss:$8 sps:$4 sm:$0xff] (!%p3382_p4)  }
  0x15   : > { %581 = vmatpush1.bf16.msra.mxu0 (!%p3382_p4), %v3992_v2  ;;  %3945 = vmatpush1.bf16.msra.mxu1 (!%p3382_p4), %v3992_v2  ;;  %v4006_v16 = vld [vmem:[%s5593_s0 + $0x20] ss:$8 sps:$4 sm:$0xff] (!%p3382_p4)   ;;  %v4014_v20 = vld [vmem:[%s5593_s0 + $0x30] ss:$8 sps:$4 sm:$0xff] (!%p3382_p4)  }
  0x16   : > { %582 = vmatprep.subr.bf16.mxu0 (!%p3382_p4), %v4270_v1  ;;  %3934 = vmatprep.subr.bf16.mxu1 (!%p3382_p4), %v4270_v1  ;;  %v3383_v21 = vld [vmem:[%s5595_s2] ss:$0 sm:$0xff] (!%p3382_p4) }
  0x19   : > { %583 = vmatpush1.bf16.msra.mxu0 %v3993_v3  ;;  %3946 = vmatpush1.bf16.msra.mxu1 %v3993_v3 }
  0x1a   : > { %584 = vmatprep.subr.bf16.mxu0 %v4270_v1  ;;  %3935 = vmatprep.subr.bf16.mxu1 %v4270_v1 }
  0x1d   : > { %585 = vmatpush1.bf16.msra.mxu0 %v3994_v4  ;;  %3947 = vmatpush1.bf16.msra.mxu1 %v3994_v4 }
  0x1e   : > { %586 = vmatprep.subr.bf16.mxu0 %v4270_v1  ;;  %3936 = vmatprep.subr.bf16.mxu1 %v4270_v1 }
  0x21   : > { %587 = vmatpush1.bf16.msra.mxu0 %v3995_v6  ;;  %3948 = vmatpush1.bf16.msra.mxu1 %v3995_v6 }
  0x22   : > { %588 = vmatprep.subr.bf16.mxu0 %v4270_v1  ;;  %3937 = vmatprep.subr.bf16.mxu1 %v4270_v1 }
  0x25   : > { %589 = vmatpush1.bf16.msra.mxu0 %v3996_v8  ;;  %3949 = vmatpush1.bf16.msra.mxu1 %v3996_v8 }
  0x26   : > { %590 = vmatprep.subr.bf16.mxu0 %v4270_v1  ;;  %3938 = vmatprep.subr.bf16.mxu1 %v4270_v1 }
  0x29   : > { %591 = vmatpush1.bf16.msra.mxu0 %v3997_v9  ;;  %3950 = vmatpush1.bf16.msra.mxu1 %v3997_v9 }
  0x2a   : > { %592 = vmatprep.subr.bf16.mxu0 %v4270_v1  ;;  %3939 = vmatprep.subr.bf16.mxu1 %v4270_v1 }
  0x2d   : > { %593 = vmatpush1.bf16.msra.mxu0 %v3998_v10  ;;  %3951 = vmatpush1.bf16.msra.mxu1 %v3998_v10 }
  0x2e   : > { %594 = vmatprep.subr.bf16.mxu0 %v4270_v1  ;;  %3940 = vmatprep.subr.bf16.mxu1 %v4270_v1 }
  0x31   : > { %595 = vmatpush1.bf16.msra.mxu0 %v3999_v11  ;;  %3952 = vmatpush1.bf16.msra.mxu1 %v3999_v11 }
  0x32   : > { %596 = vmatprep.subr.bf16.mxu0 %v4270_v1  ;;  %3941 = vmatprep.subr.bf16.mxu1 %v4270_v1 }
  0x35   : > { %597 = vmatpush1.bf16.msra.mxu0 %v4000_v12  ;;  %3953 = vmatpush1.bf16.msra.mxu1 %v4000_v12 }
  0x36   : > { %598 = vmatprep.subr.bf16.mxu0 %v4270_v1  ;;  %3942 = vmatprep.subr.bf16.mxu1 %v4270_v1 }
  0x39   : > { %599 = vmatpush1.bf16.msra.mxu0 %v4001_v13  ;;  %3954 = vmatpush1.bf16.msra.mxu1 %v4001_v13 }
  0x3a   : > { %600 = vmatprep.subr.bf16.mxu0 %v4270_v1  ;;  %3943 = vmatprep.subr.bf16.mxu1 %v4270_v1 }
  0x3d   : > { %601 = vmatpush1.bf16.msra.mxu0 %v4002_v14  ;;  %3955 = vmatpush1.bf16.msra.mxu1 %v4002_v14 }
  0x40   : > { %611 = vmatmul.mubr.bf16.vlgmr.msra.gmra.mrb[0].mxu0 %v4003_v15  ;;  %627 = vmatmul.mubr.bf16.vlgmr.msra.gmra.mrb[0].mxu1 %v4006_v16 }
  0x41   : > { %3405 = vmatprep.mubr.msk.bf16.mxu0 %vm565_vm0, %v4009_v17  ;;  %3407 = vmatprep.mubr.msk.bf16.mxu1 %vm565_vm0, %v4011_v18 }
  0x48   : > { %619 = vmatmul.mubr.bf16.gmra.mrb[4].mxu0 %v4013_v19  ;;  %635 = vmatmul.mubr.bf16.gmra.mrb[4].mxu1 %v4014_v20 }
 0x113   : > { %v612_v22 = vpop.f32.mrb[0].mxu0  ;;  %v628_v23 = vpop.f32.mrb[0].mxu1 }
 0x114   : > { %v613_v24 = vadd.f32 %v3383_v21, %v612_v22  ;;  %v629_v25 = vadd.f32 %v3383_v21, %v628_v23  ;;  %v614_v26 = vpop.f32.mrb[1].mxu0  ;;  %v630_v27 = vpop.f32.mrb[1].mxu1 }
 0x115   : > { %v615_v28 = vpop.f32.mrb[2].mxu0  ;;  %v631_v29 = vpop.f32.mrb[2].mxu1 }
 0x116   : > { %643 = vst [vmem:[#allocation2] sm:$0xff] %v613_v24  ;;  %647 = vst [vmem:[#allocation2 + $0x20] sm:$0xff] %v629_v25  ;;  %v616_v30 = vadd.f32 %v3383_v21, %v615_v28  ;;  %v632_v31 = vadd.f32 %v3383_v21, %v631_v29  ;;  %v617_v32 = vpop.f32.mrb[3].mxu0  ;;  %v633_v33 = vpop.f32.mrb[3].mxu1 }
 0x118   : > { %644 = vst [vmem:[#allocation2 + $0x8] sm:$0xff] %v616_v30  ;;  %648 = vst [vmem:[#allocation2 + $0x28] sm:$0xff] %v632_v31 }
 0x11b   : > { %v620_v34 = vpop.f32.mrb[4].mxu0  ;;  %v636_v35 = vpop.f32.mrb[4].mxu1 }
 0x11c   : > { %v621_v36 = vadd.f32 %v3383_v21, %v620_v34  ;;  %v637_v37 = vadd.f32 %v3383_v21, %v636_v35  ;;  %v622_v38 = vpop.f32.mrb[5].mxu0  ;;  %v638_v39 = vpop.f32.mrb[5].mxu1 }
 0x11d   : > { %v623_v40 = vpop.f32.mrb[6].mxu0  ;;  %v639_v41 = vpop.f32.mrb[6].mxu1 }
 0x11e   : > { %645 = vst [vmem:[#allocation2 + $0x10] sm:$0xff] %v621_v36  ;;  %649 = vst [vmem:[#allocation2 + $0x30] sm:$0xff] %v637_v37  ;;  %v624_v42 = vadd.f32 %v3383_v21, %v623_v40  ;;  %v640_v43 = vadd.f32 %v3383_v21, %v639_v41  ;;  %v625_v44 = vpop.f32.mrb[7].mxu0  ;;  %v641_v45 = vpop.f32.mrb[7].mxu1 }
 0x120   : > { %646 = vst [vmem:[#allocation2 + $0x18] sm:$0xff] %v624_v42  ;;  %650 = vst [vmem:[#allocation2 + $0x38] sm:$0xff] %v640_v43 }
 0x121 PF: > { %v4430_v46 = vld [vmem:[#allocation2] sm:$0xff]  ;;  %v4432_v47 = vld [vmem:[#allocation2 + $0x8] sm:$0xff]  ;;  %p3520_p5 = scmp.ne.s32.totalorder %s4341_s18, 1 }
 0x122   : > { %775 = vadd.xlane.f32.xlu0 %v4430_v46  ;;  %v800_v48 = vmul.f32 %v4430_v46, %v4430_v46  ;;  %v659_v49 = vld [vmem:[%s4350_s24] sm:$0xff]  ;;  %v801_v50 = vmul.f32 %v4432_v47, %v4432_v47  ;;  %v4454_v59 = vld [vmem:[#allocation2 + $0x28] sm:$0xff] }
 0x123   : > { %v663_v51 = vld [vmem:[%s4350_s24 + $0x20] sm:$0xff]  ;;  %v805_v1 = vmul.f32 %v4454_v59, %v4454_v59  ;;  %v660_v4 = vld [vmem:[%s4350_s24 + $0x8] sm:$0xff] }
 0x124   : > { %808 = vadd.xlane.f32.xlu1 %v800_v48  ;;  %v3409_v53 = vcombine.high %v659_v49, %v663_v51  ;;  %v4452_v57 = vld [vmem:[#allocation2 + $0x20] sm:$0xff]  ;;  %v3408_v58 = vcombine.low %v659_v49, %v663_v51  ;;  %v664_v7 = vld [vmem:[%s4350_s24 + $0x28] sm:$0xff] }
 0x125   : > { %v4441_v52 = vld [vmem:[#allocation2 + $0x10] sm:$0xff]  ;;  %v667_v60 = vld [vmem:[%s4350_s24 + $0x40] sm:$0xff]  ;;  %v804_v63 = vmul.f32 %v4452_v57, %v4452_v57  ;;  %v3410_v8 = vcombine.low %v660_v4, %v664_v7  ;;  %v668_v13 = vld [vmem:[%s4350_s24 + $0x48] sm:$0xff]  ;;  %v4482_v20 = vcombine.high %v660_v4, %v664_v7 }
 0x126   : > { %777 = vadd.xlane.f32.xlu0 %v4432_v47  ;;  %1048 = vmatprep.subr.bf16.mxu0 %v3409_v53  ;;  %v802_v55 = vmul.f32 %v4441_v52, %v4441_v52  ;;  %v671_v61 = vld [vmem:[%s4350_s24 + $0x60] sm:$0xff]  ;;  %v4467_v5 = vld [vmem:[#allocation2 + $0x30] sm:$0xff]  ;;  %v672_v15 = vld [vmem:[%s4350_s24 + $0x68] sm:$0xff] }
 0x127   : > { %v4444_v54 = vld [vmem:[#allocation2 + $0x18] sm:$0xff]  ;;  %1049 = vmatpush1.bf16.msra.mxu0 %v3408_v58  ;;  %v3412_v62 = vcombine.high %v667_v60, %v671_v61  ;;  %v3411_v0 = vcombine.low %v667_v60, %v671_v61  ;;  %v675_v2 = vld [vmem:[%s4350_s24 + $0x80] sm:$0xff]  ;;  %3716 = vmatprep.subr.bf16.mxu1 %v3410_v8  ;;  %v806_v16 = vmul.f32 %v4467_v5, %v4467_v5  ;;  %v676_v23 = vld [vmem:[%s4350_s24 + $0x88] sm:$0xff] }
 0x128   : > { %810 = vadd.xlane.f32.xlu1 %v801_v50  ;;  %v803_v56 = vmul.f32 %v4444_v54, %v4444_v54  ;;  %v679_v3 = vld [vmem:[%s4350_s24 + $0xa0] sm:$0xff]  ;;  %v4470_v10 = vld [vmem:[#allocation2 + $0x38] sm:$0xff]  ;;  %3717 = vmatpush3.bf16.msra.mxu1 %v3410_v8  ;;  %v3413_v17 = vcombine.low %v668_v13, %v672_v15  ;;  %v680_v25 = vld [vmem:[%s4350_s24 + $0xa8] sm:$0xff] }
 0x129   : > { %1050 = vmatprep.subr.bf16.mxu0 %v3412_v62  ;;  %v3415_v6 = vcombine.high %v675_v2, %v679_v3  ;;  %v3414_v9 = vcombine.low %v675_v2, %v679_v3  ;;  %v683_v11 = vld [vmem:[%s4350_s24 + $0xc0] sm:$0xff]  ;;  %v807_v19 = vmul.f32 %v4470_v10, %v4470_v10  ;;  %v3416_v26 = vcombine.low %v676_v23, %v680_v25  ;;  %v684_v30 = vld [vmem:[%s4350_s24 + $0xc8] sm:$0xff] }
 0x12a   : > { %779 = vadd.xlane.f32.xlu0 %v4441_v52  ;;  %v687_v12 = vld [vmem:[%s4350_s24 + $0xe0] sm:$0xff]  ;;  %3718 = vmatprep.subr.bf16.mxu1 %v3413_v17  ;;  %v688_v32 = vld [vmem:[%s4350_s24 + $0xe8] sm:$0xff] }
 0x12b   : > { %1051 = vmatpush1.bf16.msra.mxu0 %v3411_v0  ;;  %v3418_v14 = vcombine.high %v683_v11, %v687_v12  ;;  %v3417_v18 = vcombine.low %v683_v11, %v687_v12  ;;  %v691_v21 = vld [vmem:[%s4350_s24 + $0x100] sm:$0xff]  ;;  %v3419_v33 = vcombine.low %v684_v30, %v688_v32  ;;  %v692_v37 = vld [vmem:[%s4350_s24 + $0x108] sm:$0xff] }
 0x12c   : > { %781 = vadd.xlane.f32.xlu1 %v4444_v54  ;;  %1052 = vmatprep.subr.bf16.mxu0 %v3415_v6  ;;  %v695_v22 = vld [vmem:[%s4350_s24 + $0x120] sm:$0xff]  ;;  %v696_v39 = vld [vmem:[%s4350_s24 + $0x128] sm:$0xff]  ;;  %v872_v6 = vlaneseq }
 0x12d   : > { %3719 = vmatpush3.bf16.msra.mxu1 %v3413_v17  ;;  %v3421_v24 = vcombine.high %v691_v21, %v695_v22  ;;  %v3420_v27 = vcombine.low %v691_v21, %v695_v22  ;;  %v699_v28 = vld [vmem:[%s4350_s24 + $0x140] sm:$0xff]  ;;  %v3422_v40 = vcombine.low %v692_v37, %v696_v39  ;;  %v700_v44 = vld [vmem:[%s4350_s24 + $0x148] sm:$0xff] }
 0x12e   : > { %812 = vadd.xlane.f32.xlu0 %v802_v55  ;;  %3720 = vmatprep.subr.bf16.mxu1 %v3416_v26  ;;  %v703_v29 = vld [vmem:[%s4350_s24 + $0x160] sm:$0xff]  ;;  %v704_v48 = vld [vmem:[%s4350_s24 + $0x168] sm:$0xff]  ;;  %v4512_v15 = vshrl.u32 %v872_v6, 7 }
 0x12f   : > { %1053 = vmatpush1.bf16.msra.mxu0 %v3414_v9  ;;  %v3424_v31 = vcombine.high %v699_v28, %v703_v29  ;;  %v3423_v34 = vcombine.low %v699_v28, %v703_v29  ;;  %v707_v35 = vld [vmem:[%s4350_s24 + $0x180] sm:$0xff]  ;;  %v3425_v49 = vcombine.low %v700_v44, %v704_v48  ;;  %v708_v51 = vld [vmem:[%s4350_s24 + $0x188] sm:$0xff] }
 0x130   : > { %814 = vadd.xlane.f32.xlu1 %v803_v56  ;;  %1054 = vmatprep.subr.bf16.mxu0 %v3418_v14  ;;  %v711_v36 = vld [vmem:[%s4350_s24 + $0x1a0] sm:$0xff]  ;;  %v712_v53 = vld [vmem:[%s4350_s24 + $0x1a8] sm:$0xff]  ;;  %v4271_v56 = vmov 0  }
 0x131   : > { %3721 = vmatpush3.bf16.msra.mxu1 %v3416_v26  ;;  %v3427_v38 = vcombine.high %v707_v35, %v711_v36  ;;  %v3426_v41 = vcombine.low %v707_v35, %v711_v36  ;;  %v715_v42 = vld [vmem:[%s4350_s24 + $0x1c0] sm:$0xff]  ;;  %v3428_v55 = vcombine.low %v708_v51, %v712_v53  ;;  %1080 = vmatprep.mubr.bf16.mxu0 %v4271_v56  ;;  %v716_v58 = vld [vmem:[%s4350_s24 + $0x1c8] sm:$0xff] }
 0x132   : > { %783 = vadd.xlane.f32.xlu0 %v4452_v57  ;;  %3722 = vmatprep.subr.bf16.mxu1 %v3419_v33  ;;  %v719_v43 = vld [vmem:[%s4350_s24 + $0x1e0] sm:$0xff]  ;;  %v720_v60 = vld [vmem:[%s4350_s24 + $0x1e8] sm:$0xff] }
 0x133   : > { %1055 = vmatpush1.bf16.msra.mxu0 %v3417_v18  ;;  %v3430_v45 = vcombine.high %v715_v42, %v719_v43  ;;  %v3429_v50 = vcombine.low %v715_v42, %v719_v43  ;;  %v3431_v61 = vcombine.low %v716_v58, %v720_v60  ;;  %v4508_v62 = vld [vmem:[%s5602_s9] sm:$0xff]   ;;  %v894_v43 = vsub.s32 4, %v4512_v15 }
 0x134   : > { %785 = vadd.xlane.f32.xlu1 %v4454_v59  ;;  %1056 = vmatprep.subr.bf16.mxu0 %v3421_v24  ;;  %v874_v24 = vsub.s32 3, %v4512_v15  ;;  %v4522_v26 = vld [vmem:[%s4360_s12] sm:$0xff] }
 0x135   : > { %3723 = vmatpush3.bf16.msra.mxu1 %v3419_v33 }
 0x136   : > { %816 = vadd.xlane.f32.xlu0 %v804_v63  ;;  %3724 = vmatprep.subr.bf16.mxu1 %v3422_v40  ;;  %v4527_v32 = vrot.slane %v4522_v26, %v874_v24 }
 0x137   : > { %1057 = vmatpush1.bf16.msra.mxu0 %v3420_v27 }
 0x138   : > { %818 = vadd.xlane.f32.xlu1 %v805_v1  ;;  %1058 = vmatprep.subr.bf16.mxu0 %v3424_v31 }
 0x139   : > { %3725 = vmatpush3.bf16.msra.mxu1 %v3422_v40 }
 0x13a   : > { %787 = vadd.xlane.f32.xlu0 %v4467_v5  ;;  %3726 = vmatprep.subr.bf16.mxu1 %v3425_v49 }
 0x13b   : > { %1059 = vmatpush1.bf16.msra.mxu0 %v3423_v34 }
 0x13c   : > { %789 = vadd.xlane.f32.xlu1 %v4470_v10  ;;  %1060 = vmatprep.subr.bf16.mxu0 %v3427_v38 }
 0x13d   : > { %3727 = vmatpush3.bf16.msra.mxu1 %v3425_v49 }
 0x13e   : > { %820 = vadd.xlane.f32.xlu0 %v806_v16  ;;  %3728 = vmatprep.subr.bf16.mxu1 %v3428_v55 }
 0x13f   : > { %1061 = vmatpush1.bf16.msra.mxu0 %v3426_v41 }
 0x140   : > { %822 = vadd.xlane.f32.xlu1 %v807_v19  ;;  %1062 = vmatprep.subr.bf16.mxu0 %v3430_v45 }
 0x141   : > { %3729 = vmatpush3.bf16.msra.mxu1 %v3428_v55 }
 0x142   : > { %3730 = vmatprep.subr.bf16.mxu1 %v3431_v61 }
 0x143   : > { %1063 = vmatpush1.bf16.msra.mxu0 %v3429_v50 }
 0x144   : > { %3740 = vmatprep.subr.bf16.mxu0 %v4508_v62 }
 0x145   : > { %3731 = vmatpush3.bf16.msra.mxu1 %v3431_v61 }
 0x146   : > { %3764 = vmatprep.subr.bf16.mxu1 %v4508_v62 }
 0x1af   : > { %v776_v63 = vpop.xlane.xlu0 %775 }
 0x1b0   : > { %v792_v0 = vmul.f32 0.0078125, %v776_v63  ;;  %v4543_v63 = vrot.slane %v4522_v26, %v894_v43 }
 0x1b1   : > { %v809_v1 = vpop.xlane.xlu1 %808 }
 0x1b2   : > { %v832_v2 = vmul.f32 %v792_v0, %v792_v0  ;;  %v824_v3 = vmul.f32 0.0078125, %v809_v1  ;;  %v864_v45 = vsub.f32 %v4430_v46, %v792_v0 }
 0x1b3   : > { %v778_v4 = vpop.xlane.xlu0 %777 }
 0x1b4   : > { %v840_v7 = vsub.f32 %v824_v3, %v832_v2  ;;  %v793_v8 = vmul.f32 0.0078125, %v778_v4 }
 0x1b5   : > { %v811_v9 = vpop.xlane.xlu1 %810 }
 0x1b6   : > { %v848_v11 = vadd.f32 1e-06, %v840_v7  ;;  %v833_v12 = vmul.f32 %v793_v8, %v793_v8  ;;  %v825_v13 = vmul.f32 0.0078125, %v811_v9  ;;  %v865_v55 = vsub.f32 %v4432_v47, %v793_v8 }
 0x1b7   : > { %v780_v14 = vpop.xlane.xlu0 %779 }
 0x1b8   : > { %4063 = vrsqrt.f32 %v848_v11  ;;  %v841_v16 = vsub.f32 %v825_v13, %v833_v12  ;;  %v4514_v17 = vmul.f32 0.0078125, %v780_v14 }
 0x1b9   : > { %v782_v18 = vpop.xlane.xlu1 %781 }
 0x1ba   : > { %v849_v19 = vadd.f32 1e-06, %v841_v16  ;;  %v834_v21 = vmul.f32 %v4514_v17, %v4514_v17  ;;  %v4518_v22 = vmul.f32 0.0078125, %v782_v18  ;;  %v866_v13 = vsub.f32 %v4441_v52, %v4514_v17 }
 0x1bb   : > { %v813_v23 = vpop.xlane.xlu0 %812 }
 0x1bc   : > { %4065 = vrsqrt.f32 %v849_v19  ;;  %v826_v25 = vmul.f32 0.0078125, %v813_v23  ;;  %v835_v28 = vmul.f32 %v4518_v22, %v4518_v22 }
 0x1bd   : > { %v815_v27 = vpop.xlane.xlu1 %814 }
 0x1be   : > { %v842_v29 = vsub.f32 %v826_v25, %v834_v21  ;;  %v827_v30 = vmul.f32 0.0078125, %v815_v27  ;;  %v4016_v21 = vld [vmem:[%s5602_s9 + $0x8] sm:$0xff]   ;;  %v867_v27 = vsub.f32 %v4444_v54, %v4518_v22 }
 0x1bf   : > { %v784_v31 = vpop.xlane.xlu0 %783 }
 0x1c0   : > { %v850_v33 = vadd.f32 1e-06, %v842_v29  ;;  %v843_v34 = vsub.f32 %v827_v30, %v835_v28  ;;  %v4529_v35 = vmul.f32 0.0078125, %v784_v31  ;;  %v4017_v31 = vld [vmem:[%s5602_s9 + $0x10] sm:$0xff]  }
 0x1c1   : > { %v786_v36 = vpop.xlane.xlu1 %785 }
 0x1c2   : > { %v4064_v37 = vpop.eup %4063  ;;  %4067 = vrsqrt.f32 %v850_v33  ;;  %v851_v38 = vadd.f32 1e-06, %v843_v34  ;;  %v836_v39 = vmul.f32 %v4529_v35, %v4529_v35  ;;  %v4533_v40 = vmul.f32 0.0078125, %v786_v36 }
 0x1c3   : > { %v817_v41 = vpop.xlane.xlu0 %816  ;;  %v876_v42 = vmul.f32 %v4064_v37, %v4527_v32  ;;  %v868_v54 = vsub.f32 %v4452_v57, %v4529_v35 }
 0x1c4   : > { %4069 = vrsqrt.f32 %v851_v38  ;;  %v828_v44 = vmul.f32 0.0078125, %v817_v41  ;;  %v837_v48 = vmul.f32 %v4533_v40, %v4533_v40  ;;  %v869_v37 = vsub.f32 %v4454_v59, %v4533_v40  ;;  %v4019_v40 = vld [vmem:[%s5602_s9 + $0x20] sm:$0xff]  }
 0x1c5   : > { %v819_v49 = vpop.xlane.xlu1 %818  ;;  %v884_v61 = vmul.f32 %v876_v42, %v864_v45  ;;  %v4018_v42 = vld [vmem:[%s5602_s9 + $0x18] sm:$0xff]  }
 0x1c6   : > { %v4066_v50 = vpop.eup %4065  ;;  %v844_v51 = vsub.f32 %v828_v44, %v836_v39  ;;  %v829_v53 = vmul.f32 0.0078125, %v819_v49 }
 0x1c7   : > { %v788_v58 = vpop.xlane.xlu0 %787  ;;  %v877_v60 = vmul.f32 %v4066_v50, %v4527_v32  ;;  %v896_v8 = vadd.f32 %v4543_v63, %v884_v61  ;;  %v4021_v61 = vld [vmem:[%s5602_s9 + $0x30] sm:$0xff]  }
 0x1c8   : > { %v852_v1 = vadd.f32 1e-06, %v844_v51  ;;  %v845_v2 = vsub.f32 %v829_v53, %v837_v48  ;;  %v4545_v3 = vmul.f32 0.0078125, %v788_v58 }
 0x1c9   : > { %v790_v46 = vpop.xlane.xlu1 %789  ;;  %v885_v0 = vmul.f32 %v877_v60, %v865_v55 }
 0x1ca   : > { %4071 = vrsqrt.f32 %v852_v1  ;;  %v853_v4 = vadd.f32 1e-06, %v845_v2  ;;  %v838_v6 = vmul.f32 %v4545_v3, %v4545_v3  ;;  %v4549_v7 = vmul.f32 0.0078125, %v790_v46  ;;  %v724_v2 = vld [vmem:[%s4360_s12 + $0x8] sm:$0xff] }
 0x1cb   : > { %v821_v47 = vpop.xlane.xlu0 %820  ;;  %v897_v9 = vadd.f32 %v4543_v63, %v885_v0  ;;  %v870_v44 = vsub.f32 %v4467_v5, %v4545_v3  ;;  %v4606_v1 = vsub.s32 1, %v4512_v15 }
 0x1cc   : > { %v4068_v11 = vpop.eup %4067  ;;  %4073 = vrsqrt.f32 %v853_v4  ;;  %v830_v12 = vmul.f32 0.0078125, %v821_v47  ;;  %v839_v14 = vmul.f32 %v4549_v7, %v4549_v7 }
 0x1cd   : > { %v823_v16 = vpop.xlane.xlu1 %822  ;;  %v904_v18 = vpack.c.bf16 %v897_v9, %v896_v8  ;;  %v878_v19 = vmul.f32 %v4068_v11, %v4527_v32  ;;  %5614 = vst [vmem:[#allocation6_spill] sm:$0xff] %v4606_v1  ;;  %v4611_v3 = vrot.slane %v4522_v26, %v4606_v1  ;;  %v4614_v0 = vrot.slane %v724_v2, %v4606_v1  ;;  %v725_v26 = vld [vmem:[%s4360_s12 + $0x10] sm:$0xff] }
 0x1ce   : > { %v4070_v23 = vpop.eup %4069  ;;  %v846_v24 = vsub.f32 %v830_v12, %v838_v6  ;;  %v831_v25 = vmul.f32 0.0078125, %v823_v16  ;;  %v4639_v16 = vld [vmem:[%s5600_s7 + $0x10] sm:$0xff] }
 0x1cf   : > { %1081 = vmatmul.mubr.bf16.vlgmr.msra.gmra.mrb[0].mxu0 %v904_v18  ;;  %3732 = vmatprep.mubr.bf16.mxu1 %v904_v18  ;;  %v879_v52 = vmul.f32 %v4070_v23, %v4527_v32  ;;  %v886_v17 = vmul.f32 %v878_v19, %v866_v13 }
 0x1d0   : > { %v854_v28 = vadd.f32 1e-06, %v846_v24  ;;  %v847_v29 = vsub.f32 %v831_v25, %v839_v14  ;;  %1090 = vmatprep.mubr.bf16.mxu0 %v4271_v56  ;;  %3741 = vmatpush3.bf16.msra.mxu0 %v4508_v62  ;;  %v4634_v14 = vrot.slane %v725_v26, %v4606_v1  ;;  %v4645_v25 = vld [vmem:[%s5600_s7 + $0x18] sm:$0xff] }
 0x1d1   : > { %v887_v30 = vmul.f32 %v879_v52, %v867_v27  ;;  %3742 = vmatprep.subr.bf16.mxu0 %v4016_v21  ;;  %v898_v22 = vadd.f32 %v4543_v63, %v886_v17 }
 0x1d2   : > { %4075 = vrsqrt.f32 %v854_v28  ;;  %v855_v33 = vadd.f32 1e-06, %v847_v29 }
 0x1d3   : > { %v899_v34 = vadd.f32 %v4543_v63, %v887_v30 }
 0x1d4   : > { %v4072_v36 = vpop.eup %4071  ;;  %4077 = vrsqrt.f32 %v855_v33  ;;  %3743 = vmatpush3.bf16.msra.mxu0 %v4016_v21 }
 0x1d5   : > { %v905_v38 = vpack.c.bf16 %v899_v34, %v898_v22  ;;  %v880_v39 = vmul.f32 %v4072_v36, %v4527_v32  ;;  %3744 = vmatprep.subr.bf16.mxu0 %v4017_v31 }
 0x1d6   : > { %v4074_v41 = vpop.eup %4073 }
 0x1d7   : > { %1091 = vmatmul.mubr.bf16.gmra.mrb[4].mxu0 %v905_v38  ;;  %3733 = vmatmul.mubr.bf16.vlgmr.msra.gmra.mrb[0].mxu1 %v905_v38  ;;  %v881_v57 = vmul.f32 %v4074_v41, %v4527_v32  ;;  %v888_v35 = vmul.f32 %v880_v39, %v868_v54 }
 0x1d8   : > { %1100 = vmatprep.mubr.bf16.mxu0 %v4271_v56  ;;  %3765 = vmatpush3.bf16.msra.mxu1 %v4508_v62  ;;  %v871_v62 = vsub.f32 %v4470_v10, %v4549_v7 }
 0x1d9   : > { %v889_v43 = vmul.f32 %v881_v57, %v869_v37  ;;  %v900_v59 = vadd.f32 %v4543_v63, %v888_v35  ;;  %3766 = vmatprep.subr.bf16.mxu1 %v4016_v21  ;;  %3745 = vmatpush3.bf16.msra.mxu0 %v4017_v31  ;;  %v4664_v37 = vld [vmem:[%s5603_s10] sm:$0xff]   ;;  %v4678_v35 = vld [vmem:[%s5603_s10 + $0x8] sm:$0xff]  }
 0x1da   : > { %3746 = vmatprep.subr.bf16.mxu0 %v4018_v42 }
 0x1db   : > { %v901_v45 = vadd.f32 %v4543_v63, %v889_v43 }
 0x1dc   : > { %v4076_v48 = vpop.eup %4075  ;;  %3767 = vmatpush3.bf16.msra.mxu1 %v4016_v21 }
 0x1dd   : > { %v906_v49 = vpack.c.bf16 %v901_v45, %v900_v59  ;;  %v882_v50 = vmul.f32 %v4076_v48, %v4527_v32  ;;  %3768 = vmatprep.subr.bf16.mxu1 %v4017_v31  ;;  %3747 = vmatpush3.bf16.msra.mxu0 %v4018_v42 }
 0x1de   : > { %v4078_v51 = vpop.eup %4077  ;;  %3748 = vmatprep.subr.bf16.mxu0 %v4019_v40 }
 0x1df   : > { %1101 = vmatmul.mubr.bf16.gmra.mrb[8].mxu0 %v906_v49  ;;  %v883_v53 = vmul.f32 %v4078_v51, %v4527_v32  ;;  %v890_v55 = vmul.f32 %v882_v50, %v870_v44  ;;  %3736 = vmatprep.mubr.bf16.mxu1 %v906_v49  ;;  %v4020_v32 = vld [vmem:[%s5602_s9 + $0x28] sm:$0xff]   ;;  %v4693_v49 = vld [vmem:[%s5603_s10 + $0x10] sm:$0xff]  }
 0x1e0   : > { %1110 = vmatprep.mubr.bf16.mxu0 %v4271_v56  ;;  %3769 = vmatpush3.bf16.msra.mxu1 %v4017_v31 }
 0x1e1   : > { %v891_v5 = vmul.f32 %v883_v53, %v871_v62  ;;  %v902_v58 = vadd.f32 %v4543_v63, %v890_v55  ;;  %3770 = vmatprep.subr.bf16.mxu1 %v4018_v42  ;;  %3749 = vmatpush3.bf16.msra.mxu0 %v4019_v40 }
 0x1e2   : > { %3750 = vmatprep.subr.bf16.mxu0 %v4020_v32 }
 0x1e3   : > { %v903_v10 = vadd.f32 %v4543_v63, %v891_v5  ;;  %v4022_v63 = vld [vmem:[%s5602_s9 + $0x38] sm:$0xff]  }
 0x1e4   : > { %3771 = vmatpush3.bf16.msra.mxu1 %v4018_v42 }
 0x1e5   : > { %v907_v60 = vpack.c.bf16 %v903_v10, %v902_v58  ;;  %3772 = vmatprep.subr.bf16.mxu1 %v4019_v40  ;;  %3751 = vmatpush3.bf16.msra.mxu0 %v4020_v32  ;;  %v4710_v10 = vld [vmem:[%s5603_s10 + $0x18] sm:$0xff]  }
 0x1e6   : > { %3752 = vmatprep.subr.bf16.mxu0 %v4021_v61 }
 0x1e7   : > { %1111 = vmatmul.mubr.bf16.gmra.mrb[12].mxu0 %v907_v60  ;;  %3737 = vmatmul.mubr.bf16.gmra.mrb[4].mxu1 %v907_v60  ;;  %v4715_v60 = vld [vmem:[%s5600_s7 + $0x30] sm:$0xff] }
 0x1e8   : > { %3773 = vmatpush3.bf16.msra.mxu1 %v4019_v40 }
 0x1e9   : > { %3774 = vmatprep.subr.bf16.mxu1 %v4020_v32  ;;  %3753 = vmatpush3.bf16.msra.mxu0 %v4021_v61 }
 0x1ea   : > { %3754 = vmatprep.subr.bf16.mxu0 %v4022_v63 }
 0x1ec   : > { %3775 = vmatpush3.bf16.msra.mxu1 %v4020_v32 }
 0x1ed   : > { %3776 = vmatprep.subr.bf16.mxu1 %v4021_v61  ;;  %3755 = vmatpush3.bf16.msra.mxu0 %v4022_v63 }
 0x1f0   : > { %3777 = vmatpush3.bf16.msra.mxu1 %v4021_v61 }
 0x1f1   : > { %3778 = vmatprep.subr.bf16.mxu1 %v4022_v63 }
 0x1f4   : > { %3779 = vmatpush3.bf16.msra.mxu1 %v4022_v63 }
 0x2a2   : > { %v1082_v46 = vpop.f32.mrb[0].mxu0 }
 0x2a3   : > { %v1084_v4 = vpop.f32.mrb[1].mxu0  ;;  %v4617_v7 = vadd.f32 %v1082_v46, %v4611_v3 }
 0x2a4   : > { %v1086_v6 = vpop.f32.mrb[2].mxu0  ;;  %v4623_v9 = vadd.f32 %v1084_v4, %v4614_v0 }
 0x2a5   : > { %v4620_v47 = vadd.f32 %v1086_v6, %v4611_v3  ;;  %v1088_v8 = vpop.f32.mrb[3].mxu0 }
 0x2a6   : > { %v4626_v11 = vadd.f32 %v1088_v8, %v4614_v0  ;;  %v4725_v8 = vld [vmem:[%s5600_s7 + $0x38] sm:$0xff] }
 0x2a7   : > { %v1186_v12 = vpack.c.bf16 %v4620_v47, %v4617_v7 }
 0x2a8   : > { %v1331_v13 = vpack.c.bf16 %v4626_v11, %v4623_v9 }
 0x2a9   : > { %3756 = vmatprep.mubr.bf16.mxu0 %v1186_v12 }
 0x2aa   : > { %v1092_v18 = vpop.f32.mrb[4].mxu0  ;;  %v3734_v19 = vpop.f32.mrb[0].mxu1  ;;  %3780 = vmatprep.mubr.bf16.mxu1 %v1331_v13  ;;  %v4732_v13 = vld [vmem:[%s5603_s10 + $0x20] sm:$0xff]  }
 0x2ab   : > { %v1093_v21 = vadd.f32 %v1092_v18, %v4611_v3  ;;  %v1094_v23 = vpop.f32.mrb[5].mxu0  ;;  %v1155_v24 = vpop.f32.mrb[1].mxu1  ;;  %v1164_v28 = vadd.f32 %v3734_v19, %v4634_v14 }
 0x2ac   : > { %v1096_v27 = vpop.f32.mrb[6].mxu0  ;;  %v3735_v52 = vpop.f32.mrb[2].mxu1  ;;  %v4654_v54 = vadd.f32 %v1094_v23, %v4614_v0  ;;  %v1156_v22 = vadd.f32 %v1155_v24, %v4634_v14 }
 0x2ad   : > { %v4648_v17 = vmul.f32 %v1093_v21, %v4639_v16  ;;  %v1097_v29 = vadd.f32 %v1096_v27, %v4611_v3  ;;  %v1167_v30 = vadd.f32 %v3735_v52, %v4634_v14  ;;  %v1098_v31 = vpop.f32.mrb[7].mxu0  ;;  %v1158_v33 = vpop.f32.mrb[3].mxu1 }
 0x2ae   : > { %v4658_v34 = vadd.f32 %v1098_v31, %v4614_v0  ;;  %v1159_v36 = vadd.f32 %v1158_v33, %v4634_v14 }
 0x2af   : > { %v1187_v38 = vpack.c.bf16 %v1097_v29, %v1093_v21  ;;  %v4667_v39 = vmul.f32 %v1097_v29, %v4645_v25  ;;  %v4669_v41 = vpack.c.bf16 %v1167_v30, %v1164_v28 }
 0x2b0   : > { %v1332_v42 = vpack.c.bf16 %v4658_v34, %v4654_v54  ;;  %v4673_v57 = vpack.c.bf16 %v1159_v36, %v1156_v22 }
 0x2b1   : > { %3757 = vmatmul.mubr.bf16.vlgmr.msra.gmra.mrb[16].mxu0 %v1187_v38  ;;  %v1489_v45 = vmul.bf16 %v4678_v35, %v4669_v41  ;;  %v1491_v12 = vmul.bf16 %v4710_v10, %v4669_v41  ;;  %v4765_v38 = vld [vmem:[%s5603_s10 + $0x30] sm:$0xff]  }
 0x2b2   : > { %3781 = vmatmul.mubr.bf16.vlgmr.msra.gmra.mrb[8].mxu1 %v1332_v42  ;;  %v1488_v43 = vmul.bf16 %v4664_v37, %v4673_v57  ;;  %v1102_v59 = vpop.f32.mrb[8].mxu0  ;;  %v1490_v58 = vmul.bf16 %v4693_v49, %v4673_v57  ;;  %v1492_v22 = vmul.bf16 %v4732_v13, %v4673_v57  ;;  %v1494_v42 = vmul.bf16 %v4765_v38, %v4673_v57  ;;  %v737_v57 = vld [vmem:[%s5601_s8 + $0x10] sm:$0xff] }
 0x2b3   : > { %v4683_v40 = vadd.f32 %v1102_v59, %v4611_v3  ;;  %v1104_v44 = vpop.f32.mrb[9].mxu0 }
 0x2b4   : > { %3808 = vmatprep.subr.bf16.mxu1 %v1488_v43  ;;  %v4688_v48 = vadd.f32 %v1104_v44, %v4614_v0  ;;  %v1106_v62 = vpop.f32.mrb[10].mxu0  ;;  %v727_v44 = vld [vmem:[%s5600_s7] sm:$0xff] }
 0x2b5   : > { %3809 = vmatpush3.bf16.msra.mxu1 %v1488_v43  ;;  %v4696_v50 = vadd.f32 %v1106_v62, %v4611_v3  ;;  %v1108_v51 = vpop.f32.mrb[11].mxu0  ;;  %v4772_v43 = vld [vmem:[%s5603_s10 + $0x38] sm:$0xff]  }
 0x2b6   : > { %3810 = vmatprep.subr.bf16.mxu1 %v1489_v45  ;;  %v4699_v53 = vadd.f32 %v1108_v51, %v4614_v0  ;;  %v1495_v59 = vmul.bf16 %v4772_v43, %v4669_v41  ;;  %v738_v51 = vld [vmem:[%s5601_s8 + $0x18] sm:$0xff] }
 0x2b7   : > { %v1188_v55 = vpack.c.bf16 %v4696_v50, %v4683_v40 }
 0x2b8   : > { %v1333_v5 = vpack.c.bf16 %v4699_v53, %v4688_v48 }
 0x2b9   : > { %3811 = vmatpush3.bf16.msra.mxu1 %v1489_v45  ;;  %3760 = vmatprep.mubr.bf16.mxu0 %v1188_v55  ;;  %v728_v45 = vld [vmem:[%s5600_s7 + $0x8] sm:$0xff]  ;;  %v1303_v55 = vmul.f32 %v4617_v7, %v727_v44  ;;  %v1403_v7 = vmul.f32 %v4658_v34, %v4645_v25 }
 0x2ba   : > { %v1112_v32 = vpop.f32.mrb[12].mxu0  ;;  %3812 = vmatprep.subr.bf16.mxu1 %v1490_v58  ;;  %3784 = vmatprep.mubr.bf16.mxu1 %v1333_v5  ;;  %v3738_v61 = vpop.f32.mrb[4].mxu1  ;;  %v1400_v5 = vmul.f32 %v4623_v9, %v727_v44 }
 0x2bb   : > { %v1113_v63 = vadd.f32 %v1112_v32, %v4611_v3  ;;  %v1114_v2 = vpop.f32.mrb[13].mxu0  ;;  %v1180_v46 = vadd.f32 %v3738_v61, %v4634_v14  ;;  %v1171_v4 = vpop.f32.mrb[5].mxu1 }
 0x2bc   : > { %v4720_v6 = vadd.f32 %v1114_v2, %v4614_v0  ;;  %v1116_v26 = vpop.f32.mrb[14].mxu0  ;;  %v1172_v18 = vadd.f32 %v1171_v4, %v4634_v14  ;;  %v3739_v19 = vpop.f32.mrb[6].mxu1  ;;  %v1304_v2 = vmul.f32 %v4620_v47, %v728_v45 }
 0x2bd   : > { %v4736_v21 = vmul.f32 %v1113_v63, %v4715_v60  ;;  %v1117_v23 = vadd.f32 %v1116_v26, %v4611_v3  ;;  %v1118_v24 = vpop.f32.mrb[15].mxu0  ;;  %3813 = vmatpush3.bf16.msra.mxu1 %v1490_v58  ;;  %v1183_v27 = vadd.f32 %v3739_v19, %v4634_v14  ;;  %v1174_v52 = vpop.f32.mrb[7].mxu1 }
 0x2be   : > { %v4741_v28 = vadd.f32 %v1118_v24, %v4614_v0  ;;  %3814 = vmatprep.subr.bf16.mxu1 %v1491_v12  ;;  %v1175_v29 = vadd.f32 %v1174_v52, %v4634_v14  ;;  %v4756_v0 = vld [vmem:[%s5603_s10 + $0x28] sm:$0xff]  }
 0x2bf   : > { %v1189_v30 = vpack.c.bf16 %v1117_v23, %v1113_v63  ;;  %v4745_v31 = vmul.f32 %v1117_v23, %v4725_v8  ;;  %v4747_v33 = vpack.c.bf16 %v1183_v27, %v1180_v46  ;;  %v1493_v14 = vmul.bf16 %v4756_v0, %v4669_v41  ;;  %v735_v41 = vld [vmem:[%s5601_s8] sm:$0xff]  ;;  %v736_v63 = vld [vmem:[%s5601_s8 + $0x8] sm:$0xff] }
 0x2c0   : > { %v1334_v3 = vpack.c.bf16 %v4741_v28, %v4720_v6  ;;  %v4758_v36 = vpack.c.bf16 %v1175_v29, %v1172_v18  ;;  %v1402_v46 = vmul.f32 %v4654_v54, %v4639_v16  ;;  %v1401_v16 = vmul.f32 %v4626_v11, %v728_v45  ;;  %v732_v45 = vld [vmem:[%s5600_s7 + $0x28] sm:$0xff] }
 0x2c1   : > { %3761 = vmatmul.mubr.bf16.gmra.mrb[20].mxu0 %v1189_v30  ;;  %3815 = vmatpush3.bf16.msra.mxu1 %v1491_v12 }
 0x2c2   : > { %3785 = vmatmul.mubr.bf16.gmra.mrb[12].mxu1 %v1334_v3  ;;  %3816 = vmatprep.subr.bf16.mxu1 %v1492_v22 }
 0x2c5   : > { %3817 = vmatpush3.bf16.msra.mxu1 %v1492_v22 }
 0x2c6   : > { %3818 = vmatprep.subr.bf16.mxu1 %v1493_v14 }
 0x2c9   : > { %3819 = vmatpush3.bf16.msra.mxu1 %v1493_v14 }
 0x2ca   : > { %3820 = vmatprep.subr.bf16.mxu1 %v1494_v42 }
 0x2cd   : > { %3821 = vmatpush3.bf16.msra.mxu1 %v1494_v42 }
 0x2ce   : > { %3822 = vmatprep.subr.bf16.mxu1 %v1495_v59 }
 0x2d1   : > { %3823 = vmatpush3.bf16.msra.mxu1 %v1495_v59 }
 0x2d2   : > { %3828 = vmatprep.subr.bf16.mxu1 %v4664_v37 }
 0x384   : > { %v3758_v62 = vpop.f32.mrb[16].mxu0 }
 0x385   : > { %v1313_v58 = vmul.f32 %v3758_v62, %v737_v57  ;;  %v1272_v32 = vpop.f32.mrb[17].mxu0  ;;  %v3782_v61 = vpop.f32.mrb[8].mxu1  ;;  %v741_v62 = vld [vmem:[%s5601_s8 + $0x30] sm:$0xff] }
 0x386   : > { %v1311_v4 = vmul.f32 %v1272_v32, %v735_v41  ;;  %v1410_v26 = vmul.f32 %v3782_v61, %v737_v57  ;;  %v3759_v12 = vpop.f32.mrb[18].mxu0  ;;  %v1369_v18 = vpop.f32.mrb[9].mxu1  ;;  %v1308_v61 = vmul.f32 %v4696_v50, %v732_v45 }
 0x387   : > { %v4803_v9 = vadd.f32 %v1313_v58, %v4648_v17  ;;  %v1314_v19 = vmul.f32 %v3759_v12, %v738_v51  ;;  %v1408_v23 = vmul.f32 %v1369_v18, %v735_v41  ;;  %v1275_v24 = vpop.f32.mrb[19].mxu0  ;;  %v3783_v27 = vpop.f32.mrb[10].mxu1  ;;  %v1406_v12 = vmul.f32 %v4720_v6, %v4715_v60 }
 0x388   : > { %v1319_v52 = vadd.f32 %v1311_v4, %v1303_v55  ;;  %v1418_v29 = vadd.f32 %v1410_v26, %v1402_v46  ;;  %v1312_v47 = vmul.f32 %v1275_v24, %v736_v63  ;;  %v1411_v30 = vmul.f32 %v3783_v27, %v738_v51  ;;  %v1372_v3 = vpop.f32.mrb[11].mxu1  ;;  %v739_v51 = vld [vmem:[%s5601_s8 + $0x20] sm:$0xff]  ;;  %v740_v4 = vld [vmem:[%s5601_s8 + $0x28] sm:$0xff] }
 0x389   : > { %v4807_v54 = vadd.f32 %v1314_v19, %v4667_v39  ;;  %v1416_v22 = vadd.f32 %v1408_v23, %v1400_v5  ;;  %v1409_v14 = vmul.f32 %v1372_v3, %v736_v63  ;;  %v731_v39 = vld [vmem:[%s5600_s7 + $0x20] sm:$0xff]  ;;  %v742_v5 = vld [vmem:[%s5601_s8 + $0x38] sm:$0xff]  ;;  %v1405_v26 = vmul.f32 %v4699_v53, %v732_v45 }
 0x38a   : > { %v1320_v25 = vadd.f32 %v1312_v47, %v1304_v2  ;;  %v1419_v34 = vadd.f32 %v1411_v30, %v1403_v7  ;;  %v1307_v58 = vmul.f32 %v4683_v40, %v731_v39  ;;  %v1404_v32 = vmul.f32 %v4688_v48, %v731_v39 }
 0x38b   : > { %v1328_v17 = vpack.c.bf16 %v4807_v54, %v4803_v9  ;;  %v1417_v42 = vadd.f32 %v1409_v14, %v1401_v16  ;;  %v1407_v48 = vmul.f32 %v4741_v28, %v4725_v8 }
 0x38c   : > { %v4811_v59 = vpack.c.bf16 %v1419_v34, %v1418_v29  ;;  %v1327_v44 = vpack.c.bf16 %v1320_v25, %v1319_v52 }
 0x38d   : > { %v1424_v57 = vpack.c.bf16 %v1417_v42, %v1416_v22 }
 0x38e   : > { %3804 = vmatprep.mubr.bf16.mxu0 %v1327_v44  ;;  %v1481_v11 = vmul.bf16 %v4678_v35, %v4811_v59  ;;  %v1483_v44 = vmul.bf16 %v4710_v10, %v4811_v59  ;;  %v1487_v39 = vmul.bf16 %v4772_v43, %v4811_v59 }
 0x38f   : > { %v1480_v41 = vmul.bf16 %v4664_v37, %v1424_v57  ;;  %v1482_v22 = vmul.bf16 %v4693_v49, %v1424_v57 }
 0x391   : > { %3788 = vmatprep.subr.bf16.mxu0 %v1480_v41 }
 0x392   : > { %3789 = vmatpush3.bf16.xpose.msra.mxu0 %v1480_v41  ;;  %v1485_v41 = vmul.bf16 %v4756_v0, %v4811_v59 }
 0x393   : > { %3790 = vmatprep.subr.bf16.mxu0 %v1481_v11 }
 0x394   : > { %v3762_v55 = vpop.f32.mrb[20].mxu0 }
 0x395   : > { %v1317_v63 = vmul.f32 %v3762_v55, %v741_v62  ;;  %v1288_v2 = vpop.f32.mrb[21].mxu0  ;;  %v3786_v46 = vpop.f32.mrb[12].mxu1 }
 0x396   : > { %v1315_v18 = vmul.f32 %v1288_v2, %v739_v51  ;;  %v1414_v7 = vmul.f32 %v3786_v46, %v741_v62  ;;  %v3763_v19 = vpop.f32.mrb[22].mxu0  ;;  %v1385_v40 = vpop.f32.mrb[13].mxu1 }
 0x397   : > { %v4843_v50 = vadd.f32 %v1317_v63, %v4736_v21  ;;  %v1318_v23 = vmul.f32 %v3763_v19, %v742_v5  ;;  %v1412_v24 = vmul.f32 %v1385_v40, %v739_v51  ;;  %v1291_v27 = vpop.f32.mrb[23].mxu0  ;;  %v3787_v52 = vpop.f32.mrb[14].mxu1 }
 0x398   : > { %v1323_v29 = vadd.f32 %v1315_v18, %v1307_v58  ;;  %v1422_v47 = vadd.f32 %v1414_v7, %v1406_v12  ;;  %v1316_v53 = vmul.f32 %v1291_v27, %v740_v4  ;;  %v1415_v30 = vmul.f32 %v3787_v52, %v742_v5  ;;  %v1388_v3 = vpop.f32.mrb[15].mxu1 }
 0x399   : > { %v1326_v60 = vadd.f32 %v1318_v23, %v4745_v31  ;;  %v1420_v6 = vadd.f32 %v1412_v24, %v1404_v32  ;;  %v1413_v16 = vmul.f32 %v1388_v3, %v740_v4  ;;  %v1484_v31 = vmul.bf16 %v4732_v13, %v1424_v57 }
 0x39a   : > { %v1324_v14 = vadd.f32 %v1316_v53, %v1308_v61  ;;  %v1423_v8 = vadd.f32 %v1415_v30, %v1407_v48  ;;  %3791 = vmatpush3.bf16.xpose.msra.mxu0 %v1481_v11  ;;  %v1486_v11 = vmul.bf16 %v4765_v38, %v1424_v57  ;;  %v1681_v3 = vmul.bf16 %v4664_v37, %v4758_v36 }
 0x39b   : > { %v1330_v21 = vpack.c.bf16 %v1326_v60, %v4843_v50  ;;  %v1421_v28 = vadd.f32 %v1413_v16, %v1405_v26  ;;  %3792 = vmatprep.subr.bf16.mxu0 %v1482_v22  ;;  %v1682_v60 = vmul.bf16 %v4678_v35, %v4747_v33 }
 0x39c   : > { %v1427_v25 = vpack.c.bf16 %v1423_v8, %v1422_v47  ;;  %v1329_v34 = vpack.c.bf16 %v1324_v14, %v1323_v29 }
 0x39d   : > { %v1426_v42 = vpack.c.bf16 %v1421_v28, %v1420_v6  ;;  %v1683_v6 = vmul.bf16 %v4693_v49, %v4758_v36 }
 0x39e   : > { %v1674_v62 = vmul.bf16 %v4678_v35, %v1427_v25  ;;  %v1676_v59 = vmul.bf16 %v4710_v10, %v1427_v25  ;;  %v1678_v9 = vmul.bf16 %v4756_v0, %v1427_v25 }
 0x39f   : > { %v1673_v45 = vmul.bf16 %v4664_v37, %v1426_v42  ;;  %v1675_v57 = vmul.bf16 %v4693_v49, %v1426_v42  ;;  %v1677_v51 = vmul.bf16 %v4732_v13, %v1426_v42  ;;  %v1679_v54 = vmul.bf16 %v4765_v38, %v1426_v42 }
 0x3a2   : > { %3793 = vmatpush3.bf16.xpose.msra.mxu0 %v1482_v22  ;;  %v1684_v22 = vmul.bf16 %v4710_v10, %v4747_v33 }
 0x3a3   : > { %3794 = vmatprep.subr.bf16.mxu0 %v1483_v44 }
 0x3aa   : > { %3795 = vmatpush3.bf16.xpose.msra.mxu0 %v1483_v44 }
 0x3ab   : > { %3796 = vmatprep.subr.bf16.mxu0 %v1484_v31 }
 0x3b2   : > { %3797 = vmatpush3.bf16.xpose.msra.mxu0 %v1484_v31 }
 0x3b3   : > { %3798 = vmatprep.subr.bf16.mxu0 %v1485_v41 }
 0x3ba   : > { %3799 = vmatpush3.bf16.xpose.msra.mxu0 %v1485_v41 }
 0x3bb   : > { %3800 = vmatprep.subr.bf16.mxu0 %v1486_v11 }
 0x3c2   : > { %3801 = vmatpush3.bf16.xpose.msra.mxu0 %v1486_v11 }
 0x3c3   : > { %3802 = vmatprep.subr.bf16.mxu0 %v1487_v39 }
 0x3ca   : > { %3803 = vmatpush3.bf16.xpose.msra.mxu0 %v1487_v39  ;;  %v1686_v39 = vmul.bf16 %v4756_v0, %v4747_v33 }
 0x3cb   : > { %3848 = vmatprep.subr.bf16.mxu0 %v1673_v45 }
 0x3d1   : > { %3805 = vmatmul.mubr.bf16.vlgmr.msra.gmra.mrb[24].mxu0 %v1328_v17  ;;  %v1680_v17 = vmul.bf16 %v4772_v43, %v1427_v25 }
 0x3d2   : > { %3849 = vmatpush3.bf16.xpose.msra.mxu0 %v1673_v45  ;;  %3864 = vmatprep.mubr.bf16.mxu0 %v1329_v34  ;;  %v1685_v34 = vmul.bf16 %v4732_v13, %v4758_v36 }
 0x3d3   : > { %3850 = vmatprep.subr.bf16.mxu0 %v1674_v62 }
 0x3da   : > { %3851 = vmatpush3.bf16.xpose.msra.mxu0 %v1674_v62  ;;  %v1687_v62 = vmul.bf16 %v4765_v38, %v4758_v36  ;;  %v4194_v36 = vld [vmem:[%s4350_s24 + $0xa8] sm:$0xff] }
 0x3db   : > { %3852 = vmatprep.subr.bf16.mxu0 %v1675_v57 }
 0x3e2   : > { %3853 = vmatpush3.bf16.xpose.msra.mxu0 %v1675_v57 }
 0x3e3   : > { %3854 = vmatprep.subr.bf16.mxu0 %v1676_v59 }
 0x3ea   : > { %3855 = vmatpush3.bf16.xpose.msra.mxu0 %v1676_v59  ;;  %v1688_v59 = vmul.bf16 %v4772_v43, %v4747_v33 }
 0x3eb   : > { %3856 = vmatprep.subr.bf16.mxu0 %v1677_v51 }
 0x3f2   : > { %3857 = vmatpush3.bf16.xpose.msra.mxu0 %v1677_v51 }
 0x3f3   : > { %3858 = vmatprep.subr.bf16.mxu0 %v1678_v9 }
 0x3fa   : > { %3859 = vmatpush3.bf16.xpose.msra.mxu0 %v1678_v9 }
 0x3fb   : > { %3860 = vmatprep.subr.bf16.mxu0 %v1679_v54 }
 0x402   : > { %3861 = vmatpush3.bf16.xpose.msra.mxu0 %v1679_v54 }
 0x403   : > { %3862 = vmatprep.subr.bf16.mxu0 %v1680_v17 }
 0x40a   : > { %3863 = vmatpush3.bf16.xpose.msra.mxu0 %v1680_v17 }
 0x40b   : > { %3908 = vmatprep.subr.bf16.mxu0 %v4482_v20 }
 0x411   : > { %3865 = vmatmul.mubr.bf16.vlgmr.msra.gmra.mrb[28].mxu0 %v1330_v21 }
 0x412   : > { %3909 = vmatpush3.bf16.msra.mxu0 %v4482_v20 }
 0x4a4   : > { %v3806_v55 = vpop.f32.mrb[24].mxu0 }
 0x4a5   : > { %v1530_v5 = vpop.f32.mrb[25].mxu0 }
 0x4a6   : > { %1545 = vmax.xlane.f32.xlu0 %v1530_v5  ;;  %v3807_v58 = vpop.f32.mrb[26].mxu0 }
 0x4a7   : > { %v1533_v32 = vpop.f32.mrb[27].mxu0 }
 0x4a8   : > { %1547 = vmax.xlane.f32.xlu1 %v1533_v32 }
 0x4aa   : > { %1549 = vmax.xlane.f32.xlu0 %v3806_v55 }
 0x4ac   : > { %1551 = vmax.xlane.f32.xlu1 %v3807_v58 }
 0x4e4   : > { %v4869_v61 = vpop.f32.mrb[28].mxu0 }
 0x4e5   : > { %v1723_v63 = vpop.f32.mrb[29].mxu0 }
 0x4e6   : > { %1738 = vmax.xlane.f32.xlu0 %v1723_v63  ;;  %v4871_v2 = vpop.f32.mrb[30].mxu0 }
 0x4e7   : > { %v4873_v46 = vpop.f32.mrb[31].mxu0 }
 0x4e8   : > { %1740 = vmax.xlane.f32.xlu1 %v4873_v46 }
 0x4ea   : > { %1742 = vmax.xlane.f32.xlu0 %v4869_v61 }
 0x4ec   : > { %1744 = vmax.xlane.f32.xlu1 %v4871_v2 }
 0x533   : > { %v1546_v20 = vpop.xlane.xlu0 %1545 }
 0x534   : > { %v1553_v4 = vsub.f32 %v1530_v5, %v1546_v20 }
 0x535   : > { %v1548_v26 = vpop.xlane.xlu1 %1547 }
 0x536   : > { %v1557_v12 = vmul.f32 1.442695, %v1553_v4  ;;  %v1554_v18 = vsub.f32 %v1533_v32, %v1548_v26  ;;  %v4203_v4 = vld [vmem:[%s4350_s24 + $0x1c8] sm:$0xff] }
 0x537   : > { %v1550_v7 = vpop.xlane.xlu0 %1549  ;;  %v4204_v26 = vld [vmem:[%s4350_s24 + $0x1e8] sm:$0xff] }
 0x538   : > { %v1559_v19 = vmul.f32 1.442695, %v1554_v18  ;;  %v1555_v40 = vsub.f32 %v3806_v55, %v1550_v7  ;;  %4079 = vpow2.f32 %v1557_v12  ;;  %v3455_v12 = vcombine.high %v4203_v4, %v4204_v26 }
 0x539   : > { %v1552_v48 = vpop.xlane.xlu1 %1551 }
 0x53a   : > { %4081 = vpow2.f32 %v1559_v19  ;;  %v1561_v50 = vmul.f32 1.442695, %v1555_v40  ;;  %v1556_v23 = vsub.f32 %v3807_v58, %v1552_v48  ;;  %v4198_v58 = vld [vmem:[%s4350_s24 + $0x128] sm:$0xff] }
 0x53c   : > { %v1563_v24 = vmul.f32 1.442695, %v1556_v23  ;;  %4083 = vpow2.f32 %v1561_v50 }
 0x53e   : > { %4085 = vpow2.f32 %v1563_v24 }
 0x542   : > { %v4080_v27 = vpop.eup %4079 }
 0x544   : > { %v4082_v52 = vpop.eup %4081 }
 0x545   : > { %v1565_v29 = vpack.c.bf16 %v4082_v52, %v4080_v27 }
 0x546   : > { %v4084_v47 = vpop.eup %4083 }
 0x547   : > { %3824 = vmatprep.mubr.bf16.mxu1 %v1565_v29 }
 0x548   : > { %v4086_v53 = vpop.eup %4085 }
 0x549   : > { %v1566_v30 = vpack.c.bf16 %v4086_v53, %v4084_v47 }
 0x54b   : > { %3825 = vmatmul.mubr.bf16.vlgmr.msra.gmra.mrb[16].mxu1 %v1566_v30 }
 0x54c   : > { %3829 = vmatpush3.bf16.msra.mxu1 %v4664_v37  ;;  %3844 = vmatprep.mubr.bf16.mxu1 %v1565_v29 }
 0x54d   : > { %3830 = vmatprep.subr.bf16.mxu1 %v4678_v35 }
 0x550   : > { %3831 = vmatpush3.bf16.msra.mxu1 %v4678_v35 }
 0x551   : > { %3832 = vmatprep.subr.bf16.mxu1 %v4693_v49 }
 0x554   : > { %3833 = vmatpush3.bf16.msra.mxu1 %v4693_v49 }
 0x555   : > { %3834 = vmatprep.subr.bf16.mxu1 %v4710_v10 }
 0x558   : > { %3835 = vmatpush3.bf16.msra.mxu1 %v4710_v10 }
 0x559   : > { %3836 = vmatprep.subr.bf16.mxu1 %v4732_v13 }
 0x55c   : > { %3837 = vmatpush3.bf16.msra.mxu1 %v4732_v13 }
 0x55d   : > { %3838 = vmatprep.subr.bf16.mxu1 %v4756_v0 }
 0x560   : > { %3839 = vmatpush3.bf16.msra.mxu1 %v4756_v0 }
 0x561   : > { %3840 = vmatprep.subr.bf16.mxu1 %v4765_v38 }
 0x564   : > { %3841 = vmatpush3.bf16.msra.mxu1 %v4765_v38 }
 0x565   : > { %3842 = vmatprep.subr.bf16.mxu1 %v4772_v43 }
 0x568   : > { %3843 = vmatpush3.bf16.msra.mxu1 %v4772_v43 }
 0x569   : > { %3868 = vmatprep.subr.bf16.mxu1 %v1681_v3 }
 0x56b   : > { %3845 = vmatmul.mubr.bf16.vlgmr.msra.gmra.mrb[20].mxu1 %v1566_v30 }
 0x56c   : > { %3869 = vmatpush3.bf16.msra.mxu1 %v1681_v3 }
 0x56d   : > { %3870 = vmatprep.subr.bf16.mxu1 %v1682_v60 }
 0x570   : > { %3871 = vmatpush3.bf16.msra.mxu1 %v1682_v60 }
 0x571   : > { %3872 = vmatprep.subr.bf16.mxu1 %v1683_v6 }
 0x573   : > { %v1739_v16 = vpop.xlane.xlu0 %1738 }
 0x574   : > { %3873 = vmatpush3.bf16.msra.mxu1 %v1683_v6  ;;  %v1746_v14 = vsub.f32 %v1723_v63, %v1739_v16  ;;  %v4200_v63 = vld [vmem:[%s4350_s24 + $0x168] sm:$0xff] }
 0x575   : > { %3874 = vmatprep.subr.bf16.mxu1 %v1684_v22  ;;  %v1741_v8 = vpop.xlane.xlu1 %1740 }
 0x576   : > { %v1750_v21 = vmul.f32 1.442695, %v1746_v14  ;;  %v1747_v28 = vsub.f32 %v4873_v46, %v1741_v8  ;;  %v4202_v46 = vld [vmem:[%s4350_s24 + $0x1a8] sm:$0xff] }
 0x577   : > { %v1743_v25 = vpop.xlane.xlu0 %1742 }
 0x578   : > { %v1752_v42 = vmul.f32 1.442695, %v1747_v28  ;;  %3875 = vmatpush3.bf16.msra.mxu1 %v1684_v22  ;;  %v1748_v44 = vsub.f32 %v4869_v61, %v1743_v25  ;;  %4087 = vpow2.f32 %v1750_v21  ;;  %v4199_v61 = vld [vmem:[%s4350_s24 + $0x148] sm:$0xff] }
 0x579   : > { %3876 = vmatprep.subr.bf16.mxu1 %v1685_v34  ;;  %v1745_v31 = vpop.xlane.xlu1 %1744 }
 0x57a   : > { %4089 = vpow2.f32 %v1752_v42  ;;  %v1754_v41 = vmul.f32 1.442695, %v1748_v44  ;;  %v1749_v11 = vsub.f32 %v4871_v2, %v1745_v31  ;;  %v4201_v2 = vld [vmem:[%s4350_s24 + $0x188] sm:$0xff] }
 0x57b   : > { %v3454_v20 = vcombine.high %v4201_v2, %v4202_v46 }
 0x57c   : > { %v1756_v45 = vmul.f32 1.442695, %v1749_v11  ;;  %3877 = vmatpush3.bf16.msra.mxu1 %v1685_v34  ;;  %4091 = vpow2.f32 %v1754_v41 }
 0x57d   : > { %3878 = vmatprep.subr.bf16.mxu1 %v1686_v39 }
 0x57e   : > { %4093 = vpow2.f32 %v1756_v45 }
 0x580   : > { %3879 = vmatpush3.bf16.msra.mxu1 %v1686_v39 }
 0x581   : > { %3880 = vmatprep.subr.bf16.mxu1 %v1687_v62 }
 0x582   : > { %v4088_v57 = vpop.eup %4087 }
 0x584   : > { %v4090_v51 = vpop.eup %4089  ;;  %3881 = vmatpush3.bf16.msra.mxu1 %v1687_v62 }
 0x585   : > { %3882 = vmatprep.subr.bf16.mxu1 %v1688_v59  ;;  %v1758_v9 = vpack.c.bf16 %v4090_v51, %v4088_v57 }
 0x586   : > { %v4092_v54 = vpop.eup %4091 }
 0x587   : > { %3884 = vmatprep.mubr.bf16.mxu1 %v1758_v9 }
 0x588   : > { %v4094_v17 = vpop.eup %4093  ;;  %3883 = vmatpush3.bf16.msra.mxu1 %v1688_v59 }
 0x589   : > { %3888 = vmatprep.subr.bf16.mxu1 %v4664_v37  ;;  %v1759_v55 = vpack.c.bf16 %v4094_v17, %v4092_v54  ;;  %v665_v54 = vld [vmem:[%s4350_s24 + $0x30] sm:$0xff]  ;;  %v662_v17 = vld [vmem:[%s4350_s24 + $0x18] sm:$0xff] }
 0x58b   : > { %3885 = vmatmul.mubr.bf16.vlgmr.msra.gmra.mrb[24].mxu1 %v1759_v55 }
 0x58c   : > { %3889 = vmatpush3.bf16.msra.mxu1 %v4664_v37  ;;  %3904 = vmatprep.mubr.bf16.mxu1 %v1758_v9  ;;  %v4191_v37 = vld [vmem:[%s4350_s24 + $0x48] sm:$0xff]  ;;  %v661_v9 = vld [vmem:[%s4350_s24 + $0x10] sm:$0xff] }
 0x58d   : > { %3890 = vmatprep.subr.bf16.mxu1 %v4678_v35 }
 0x590   : > { %3891 = vmatpush3.bf16.msra.mxu1 %v4678_v35  ;;  %v4192_v35 = vld [vmem:[%s4350_s24 + $0x68] sm:$0xff] }
 0x591   : > { %3892 = vmatprep.subr.bf16.mxu1 %v4693_v49  ;;  %v3449_v33 = vcombine.high %v4191_v37, %v4192_v35  ;;  %v3457_v37 = vcombine.high %v661_v9, %v665_v54  ;;  %v666_v35 = vld [vmem:[%s4350_s24 + $0x38] sm:$0xff] }
 0x593   : > { %3910 = vmatprep.subr.bf16.mxu0 %v3449_v33 }
 0x594   : > { %3893 = vmatpush3.bf16.msra.mxu1 %v4693_v49  ;;  %v4193_v49 = vld [vmem:[%s4350_s24 + $0x88] sm:$0xff]  ;;  %3911 = vmatpush3.bf16.msra.mxu0 %v3449_v33  ;;  %v3458_v33 = vcombine.low %v662_v17, %v666_v35 }
 0x595   : > { %3894 = vmatprep.subr.bf16.mxu1 %v4710_v10  ;;  %v3450_v5 = vcombine.high %v4193_v49, %v4194_v36  ;;  %v3459_v49 = vcombine.high %v662_v17, %v666_v35  ;;  %v5605_v36 = vsub.s32 2, %v4512_v15  ;;  %v701_v17 = vld [vmem:[%s4350_s24 + $0x150] sm:$0xff] }
 0x597   : > { %3912 = vmatprep.subr.bf16.mxu0 %v3450_v5 }
 0x598   : > { %3895 = vmatpush3.bf16.msra.mxu1 %v4710_v10  ;;  %3913 = vmatpush3.bf16.msra.mxu0 %v3450_v5  ;;  %v4195_v10 = vld [vmem:[%s4350_s24 + $0xc8] sm:$0xff] }
 0x599   : > { %3896 = vmatprep.subr.bf16.mxu1 %v4732_v13 }
 0x59c   : > { %3897 = vmatpush3.bf16.msra.mxu1 %v4732_v13  ;;  %v4196_v13 = vld [vmem:[%s4350_s24 + $0xe8] sm:$0xff] }
 0x59d   : > { %3898 = vmatprep.subr.bf16.mxu1 %v4756_v0 }
 0x5a0   : > { %3899 = vmatpush3.bf16.msra.mxu1 %v4756_v0  ;;  %v3451_v0 = vcombine.high %v4195_v10, %v4196_v13  ;;  %v4950_v10 = vld [vmem:[%s4360_s12] sm:$0xff] }
 0x5a1   : > { %3900 = vmatprep.subr.bf16.mxu1 %v4765_v38  ;;  %v4955_v13 = vrot.slane %v4950_v10, %v5605_v36 }
 0x5a2   : > { %3914 = vmatprep.subr.bf16.mxu0 %v3451_v0 }
 0x5a3   : > { %3915 = vmatpush3.bf16.msra.mxu0 %v3451_v0 }
 0x5a4   : > { %3901 = vmatpush3.bf16.msra.mxu1 %v4765_v38  ;;  %v4197_v38 = vld [vmem:[%s4350_s24 + $0x108] sm:$0xff] }
 0x5a5   : > { %3902 = vmatprep.subr.bf16.mxu1 %v4772_v43  ;;  %v3452_v32 = vcombine.high %v4197_v38, %v4198_v58  ;;  %v4206_v38 = vld [vmem:[#allocation2] sm:$0xff] }
 0x5a7   : > { %3916 = vmatprep.subr.bf16.mxu0 %v3452_v32 }
 0x5a8   : > { %3903 = vmatpush3.bf16.msra.mxu1 %v4772_v43  ;;  %v3453_v43 = vcombine.high %v4199_v61, %v4200_v63  ;;  %3917 = vmatpush3.bf16.msra.mxu0 %v3452_v32 }
 0x5a9   : > { %2295 = vmatprep.subr.bf16.mxu1 %v3457_v37  ;;  %v702_v37 = vld [vmem:[%s4350_s24 + $0x158] sm:$0xff] }
 0x5aa   : > { %3918 = vmatprep.subr.bf16.mxu0 %v3453_v43 }
 0x5ab   : > { %3905 = vmatmul.mubr.bf16.vlgmr.msra.gmra.mrb[28].mxu1 %v1759_v55  ;;  %v3456_v55 = vcombine.low %v661_v9, %v665_v54 }
 0x5ac   : > { %2327 = vmatprep.mubr.bf16.mxu1 %v4271_v56  ;;  %3919 = vmatpush3.bf16.msra.mxu0 %v3453_v43  ;;  %v4207_v43 = vld [vmem:[#allocation2 + $0x8] sm:$0xff] }
 0x5ad   : > { %3920 = vmatprep.subr.bf16.mxu0 %v3454_v20  ;;  %2296 = vmatpush1.bf16.msra.mxu1 %v3456_v55  ;;  %v705_v55 = vld [vmem:[%s4350_s24 + $0x170] sm:$0xff] }
 0x5ae   : > { %v3477_v35 = vcombine.high %v701_v17, %v705_v55 }
 0x5b0   : > { %3921 = vmatpush3.bf16.msra.mxu0 %v3454_v20  ;;  %v4208_v20 = vld [vmem:[#allocation2 + $0x10] sm:$0xff] }
 0x5b1   : > { %3922 = vmatprep.subr.bf16.mxu0 %v3455_v12 }
 0x5b4   : > { %3923 = vmatpush3.bf16.msra.mxu0 %v3455_v12  ;;  %v4209_v12 = vld [vmem:[#allocation2 + $0x18] sm:$0xff] }
 0x5b5   : > { %2368 = vmatprep.subr.bf16.mxu0 %v3459_v49  ;;  %v3476_v49 = vcombine.low %v701_v17, %v705_v55 }
 0x61e   : > { %v3826_v18 = vpop.f32.mrb[16].mxu1 }
 0x61f   : > { %v1601_v7 = vpop.f32.mrb[17].mxu1 }
 0x620   : > { %v3827_v19 = vpop.f32.mrb[18].mxu1 }
 0x621   : > { %v1604_v40 = vpop.f32.mrb[19].mxu1 }
 0x63e   : > { %v3846_v48 = vpop.f32.mrb[20].mxu1 }
 0x63f   : > { %4095 = vrcp.f32 %v3846_v48  ;;  %v1650_v50 = vpop.f32.mrb[21].mxu1 }
 0x640   : > { %4097 = vrcp.f32 %v1650_v50  ;;  %v3847_v23 = vpop.f32.mrb[22].mxu1 }
 0x641   : > { %4099 = vrcp.f32 %v3847_v23  ;;  %v1653_v24 = vpop.f32.mrb[23].mxu1  ;;  %v669_v23 = vld [vmem:[%s4350_s24 + $0x50] sm:$0xff] }
 0x642   : > { %4101 = vrcp.f32 %v1653_v24  ;;  %v673_v24 = vld [vmem:[%s4350_s24 + $0x70] sm:$0xff] }
 0x649   : > { %v4096_v27 = vpop.eup %4095 }
 0x64a   : > { %v4098_v52 = vpop.eup %4097  ;;  %v1671_v29 = vmul.f32 %v4096_v27, %v3826_v18  ;;  %v670_v27 = vld [vmem:[%s4350_s24 + $0x58] sm:$0xff] }
 0x64b   : > { %v4100_v47 = vpop.eup %4099  ;;  %v1669_v53 = vmul.f32 %v4098_v52, %v1601_v7  ;;  %v3461_v52 = vcombine.high %v669_v23, %v673_v24 }
 0x64c   : > { %v4102_v30 = vpop.eup %4101  ;;  %v1672_v3 = vmul.f32 %v4100_v47, %v3827_v19  ;;  %v3460_v47 = vcombine.low %v669_v23, %v673_v24 }
 0x64d   : > { %v1670_v60 = vmul.f32 %v4102_v30, %v1604_v40  ;;  %2297 = vmatprep.subr.bf16.mxu1 %v3461_v52 }
 0x64e   : > { %v1867_v6 = vpack.c.bf16 %v1672_v3, %v1671_v29  ;;  %v674_v29 = vld [vmem:[%s4350_s24 + $0x78] sm:$0xff]  ;;  %2298 = vmatpush1.bf16.msra.mxu1 %v3460_v47  ;;  %v677_v3 = vld [vmem:[%s4350_s24 + $0x90] sm:$0xff] }
 0x64f   : > { %v1866_v16 = vpack.c.bf16 %v1670_v60, %v1669_v53  ;;  %v3462_v53 = vcombine.low %v670_v27, %v674_v29  ;;  %v3463_v30 = vcombine.high %v670_v27, %v674_v29  ;;  %v681_v60 = vld [vmem:[%s4350_s24 + $0xb0] sm:$0xff]  ;;  %v4210_v29 = vld [vmem:[#allocation2 + $0x20] sm:$0xff] }
 0x651   : > { %3924 = vmatprep.mubr.bf16.mxu0 %v1866_v16  ;;  %v3465_v16 = vcombine.high %v677_v3, %v681_v60 }
 0x652   : > { %3925 = vmatmul.mubr.bf16.vlgmr.msra.gmra.mrb[32].mxu0 %v1867_v6  ;;  %v678_v6 = vld [vmem:[%s4350_s24 + $0x98] sm:$0xff] }
 0x653   : > { %2369 = vmatpush1.bf16.msra.mxu0 %v3458_v33  ;;  %2299 = vmatprep.subr.bf16.mxu1 %v3465_v16  ;;  %v706_v33 = vld [vmem:[%s4350_s24 + $0x178] sm:$0xff] }
 0x654   : > { %2370 = vmatprep.subr.bf16.mxu0 %v3463_v30 }
 0x657   : > { %2371 = vmatpush1.bf16.msra.mxu0 %v3462_v53 }
 0x65e   : > { %v3886_v22 = vpop.f32.mrb[24].mxu1 }
 0x65f   : > { %v1794_v14 = vpop.f32.mrb[25].mxu1 }
 0x660   : > { %v3887_v8 = vpop.f32.mrb[26].mxu1 }
 0x661   : > { %v1797_v21 = vpop.f32.mrb[27].mxu1 }
 0x67e   : > { %v3906_v28 = vpop.f32.mrb[28].mxu1 }
 0x67f   : > { %4103 = vrcp.f32 %v3906_v28  ;;  %v1843_v25 = vpop.f32.mrb[29].mxu1  ;;  %v685_v28 = vld [vmem:[%s4350_s24 + $0xd0] sm:$0xff] }
 0x680   : > { %4105 = vrcp.f32 %v1843_v25  ;;  %v3907_v34 = vpop.f32.mrb[30].mxu1  ;;  %v689_v25 = vld [vmem:[%s4350_s24 + $0xf0] sm:$0xff] }
 0x681   : > { %4107 = vrcp.f32 %v3907_v34  ;;  %v1846_v42 = vpop.f32.mrb[31].mxu1  ;;  %v686_v34 = vld [vmem:[%s4350_s24 + $0xd8] sm:$0xff] }
 0x682   : > { %4109 = vrcp.f32 %v1846_v42  ;;  %v3469_v42 = vcombine.high %v685_v28, %v689_v25 }
 0x689   : > { %v4104_v44 = vpop.eup %4103 }
 0x68a   : > { %v4106_v31 = vpop.eup %4105  ;;  %v1864_v41 = vmul.f32 %v4104_v44, %v3886_v22  ;;  %v682_v22 = vld [vmem:[%s4350_s24 + $0xb8] sm:$0xff] }
 0x68b   : > { %v4108_v11 = vpop.eup %4107  ;;  %v1862_v39 = vmul.f32 %v4106_v31, %v1794_v14  ;;  %v3464_v14 = vcombine.low %v677_v3, %v681_v60  ;;  %v690_v44 = vld [vmem:[%s4350_s24 + $0xf8] sm:$0xff]  ;;  %v3468_v31 = vcombine.low %v685_v28, %v689_v25  ;;  %v4211_v60 = vld [vmem:[#allocation2 + $0x28] sm:$0xff] }
 0x68c   : > { %v4110_v45 = vpop.eup %4109  ;;  %v1865_v62 = vmul.f32 %v4108_v11, %v3887_v8  ;;  %v3466_v8 = vcombine.low %v678_v6, %v682_v22  ;;  %v3471_v11 = vcombine.high %v686_v34, %v690_v44 }
 0x68d   : > { %v1863_v57 = vmul.f32 %v4110_v45, %v1797_v21  ;;  %v3467_v21 = vcombine.high %v678_v6, %v682_v22  ;;  %2300 = vmatpush1.bf16.msra.mxu1 %v3464_v14  ;;  %v697_v45 = vld [vmem:[%s4350_s24 + $0x130] sm:$0xff] }
 0x68e   : > { %v1869_v59 = vpack.c.bf16 %v1865_v62, %v1864_v41  ;;  %v3470_v41 = vcombine.low %v686_v34, %v690_v44  ;;  %2301 = vmatprep.subr.bf16.mxu1 %v3469_v42  ;;  %v694_v62 = vld [vmem:[%s4350_s24 + $0x118] sm:$0xff]  ;;  %v4212_v22 = vld [vmem:[#allocation2 + $0x30] sm:$0xff] }
 0x68f   : > { %v1868_v51 = vpack.c.bf16 %v1863_v57, %v1862_v39  ;;  %2372 = vmatprep.subr.bf16.mxu0 %v3467_v21  ;;  %v693_v39 = vld [vmem:[%s4350_s24 + $0x110] sm:$0xff]  ;;  %v4213_v21 = vld [vmem:[#allocation2 + $0x38] sm:$0xff] }
 0x690   : > { %2373 = vmatpush1.bf16.msra.mxu0 %v3466_v8  ;;  %v3473_v57 = vcombine.high %v693_v39, %v697_v45 }
 0x691   : > { %3928 = vmatprep.mubr.bf16.mxu0 %v1868_v51  ;;  %2374 = vmatprep.subr.bf16.mxu0 %v3471_v11  ;;  %v3472_v51 = vcombine.low %v693_v39, %v697_v45 }
 0x692   : > { %3929 = vmatmul.mubr.bf16.gmra.mrb[36].mxu0 %v1869_v59  ;;  %2302 = vmatpush1.bf16.msra.mxu1 %v3468_v31  ;;  %v698_v59 = vld [vmem:[%s4350_s24 + $0x138] sm:$0xff] }
 0x693   : > { %2400 = vmatprep.mubr.bf16.mxu0 %v4271_v56  ;;  %v3474_v9 = vcombine.low %v694_v62, %v698_v59  ;;  %v3475_v54 = vcombine.high %v694_v62, %v698_v59  ;;  %2303 = vmatprep.subr.bf16.mxu1 %v3473_v57 }
 0x694   : > { %2375 = vmatpush1.bf16.msra.mxu0 %v3470_v41 }
 0x695   : > { %2376 = vmatprep.subr.bf16.mxu0 %v3475_v54 }
 0x696   : > { %2304 = vmatpush1.bf16.msra.mxu1 %v3472_v51 }
 0x697   : > { %2305 = vmatprep.subr.bf16.mxu1 %v3477_v35 }
 0x698   : > { %2377 = vmatpush1.bf16.msra.mxu0 %v3474_v9 }
 0x69a   : > { %2306 = vmatpush1.bf16.msra.mxu1 %v3476_v49 }
 0x725   : > { %v3926_v5 = vpop.f32.mrb[32].mxu0 }
 0x726   : > { %v1936_v0 = vpop.f32.mrb[33].mxu0  ;;  %v1969_v4 = vadd.f32 %v4208_v20, %v3926_v5  ;;  %v3478_v5 = vcombine.low %v702_v37, %v706_v33  ;;  %v717_v20 = vld [vmem:[%s4350_s24 + $0x1d0] sm:$0xff] }
 0x727   : > { %v1967_v58 = vadd.f32 %v4206_v38, %v1936_v0  ;;  %v3927_v32 = vpop.f32.mrb[34].mxu0  ;;  %v3479_v0 = vcombine.high %v702_v37, %v706_v33  ;;  %v709_v38 = vld [vmem:[%s4350_s24 + $0x190] sm:$0xff] }
 0x728   : > { %v1939_v61 = vpop.f32.mrb[35].mxu0  ;;  %v1970_v18 = vadd.f32 %v4209_v12, %v3927_v32  ;;  %v4970_v19 = vadd.f32 %v4955_v13, %v1969_v4  ;;  %v710_v32 = vld [vmem:[%s4350_s24 + $0x198] sm:$0xff]  ;;  %v721_v4 = vld [vmem:[%s4350_s24 + $0x1f0] sm:$0xff] }
 0x729   : > { %v4958_v63 = vadd.f32 %v4955_v13, %v1967_v58  ;;  %v1968_v2 = vadd.f32 %v4207_v43, %v1939_v61  ;;  %v713_v58 = vld [vmem:[%s4350_s24 + $0x1b0] sm:$0xff]  ;;  %2378 = vmatprep.subr.bf16.mxu0 %v3479_v0  ;;  %v3484_v23 = vcombine.low %v717_v20, %v721_v4 }
 0x72a   : > { %5615 = vst [vmem:[#allocation7_spill] sm:$0xff] %v4970_v19  ;;  %v4973_v40 = vadd.f32 %v4955_v13, %v1970_v18  ;;  %v2013_v48 = vmul.f32 %v4970_v19, %v4970_v19  ;;  %v3480_v61 = vcombine.low %v709_v38, %v713_v58  ;;  %v3481_v43 = vcombine.high %v709_v38, %v713_v58 }
 0x72b   : > { %v4961_v46 = vadd.f32 %v4955_v13, %v1968_v2  ;;  %1987 = vadd.xlane.f32.xlu0 %v4958_v63  ;;  %v2011_v26 = vmul.f32 %v4958_v63, %v4958_v63  ;;  %v714_v2 = vld [vmem:[%s4350_s24 + $0x1b8] sm:$0xff]  ;;  %2379 = vmatpush1.bf16.msra.mxu0 %v3478_v5  ;;  %v3485_v18 = vcombine.high %v717_v20, %v721_v4 }
 0x72c   : > { %5616 = vst [vmem:[#allocation8_spill] sm:$0xff] %v4973_v40  ;;  %v2014_v50 = vmul.f32 %v4973_v40, %v4973_v40  ;;  %v3483_v12 = vcombine.high %v710_v32, %v714_v2  ;;  %2307 = vmatprep.subr.bf16.mxu1 %v3481_v43 }
 0x72d   : > { %1989 = vadd.xlane.f32.xlu1 %v4961_v46  ;;  %v2012_v7 = vmul.f32 %v4961_v46, %v4961_v46  ;;  %2308 = vmatpush1.bf16.msra.mxu1 %v3480_v61  ;;  %v2085_v61 = vsub.s32 5, %v4512_v15 }
 0x72e   : > { %2380 = vmatprep.subr.bf16.mxu0 %v3483_v12  ;;  %2309 = vmatprep.subr.bf16.mxu1 %v3485_v18 }
 0x72f   : > { %2019 = vadd.xlane.f32.xlu0 %v2011_v26  ;;  %v3482_v26 = vcombine.low %v710_v32, %v714_v2  ;;  %v5035_v12 = vrot.slane %v4950_v10, %v2085_v61 }
 0x731   : > { %2021 = vadd.xlane.f32.xlu1 %v2012_v7  ;;  %v718_v7 = vld [vmem:[%s4350_s24 + $0x1d8] sm:$0xff]  ;;  %2381 = vmatpush1.bf16.msra.mxu0 %v3482_v26 }
 0x732   : > { %2310 = vmatpush1.bf16.msra.mxu1 %v3484_v23 }
 0x733   : > { %1991 = vadd.xlane.f32.xlu0 %v4970_v19 }
 0x735   : > { %1993 = vadd.xlane.f32.xlu1 %v4973_v40 }
 0x737   : > { %2023 = vadd.xlane.f32.xlu0 %v2013_v48  ;;  %v722_v48 = vld [vmem:[%s4350_s24 + $0x1f8] sm:$0xff] }
 0x738   : > { %v3486_v24 = vcombine.low %v718_v7, %v722_v48 }
 0x739   : > { %2025 = vadd.xlane.f32.xlu1 %v2014_v50  ;;  %v3487_v50 = vcombine.high %v718_v7, %v722_v48  ;;  %v2105_v7 = vsub.s32 6, %v4512_v15 }
 0x73b   : > { %2382 = vmatprep.subr.bf16.mxu0 %v3487_v50 }
 0x73c   : > { %2383 = vmatpush1.bf16.msra.mxu0 %v3486_v24 }
 0x765   : > { %v3930_v27 = vpop.f32.mrb[36].mxu0 }
 0x766   : > { %v1952_v52 = vpop.f32.mrb[37].mxu0  ;;  %v1973_v14 = vadd.f32 %v4212_v22, %v3930_v27 }
 0x767   : > { %v1971_v47 = vadd.f32 %v4210_v29, %v1952_v52  ;;  %v3931_v53 = vpop.f32.mrb[38].mxu0 }
 0x768   : > { %v1955_v30 = vpop.f32.mrb[39].mxu0  ;;  %v1974_v28 = vadd.f32 %v4213_v21, %v3931_v53  ;;  %v5022_v34 = vadd.f32 %v4955_v13, %v1973_v14 }
 0x769   : > { %v5010_v3 = vadd.f32 %v4955_v13, %v1971_v47  ;;  %v1972_v6 = vadd.f32 %v4211_v60, %v1955_v30  ;;  %v5043_v47 = vrot.slane %v4950_v10, %v2105_v7 }
 0x76a   : > { %5619 = vst [vmem:[#allocation11_spill] sm:$0xff] %v5022_v34  ;;  %v5025_v42 = vadd.f32 %v4955_v13, %v1974_v28  ;;  %v2017_v44 = vmul.f32 %v5022_v34, %v5022_v34 }
 0x76b   : > { %5617 = vst [vmem:[#allocation9_spill] sm:$0xff] %v5010_v3  ;;  %v5013_v16 = vadd.f32 %v4955_v13, %v1972_v6  ;;  %1995 = vadd.xlane.f32.xlu0 %v5010_v3  ;;  %v2015_v8 = vmul.f32 %v5010_v3, %v5010_v3 }
 0x76c   : > { %5620 = vst [vmem:[#allocation12_spill] sm:$0xff] %v5025_v42  ;;  %v2018_v31 = vmul.f32 %v5025_v42, %v5025_v42 }
 0x76d   : > { %5618 = vst [vmem:[#allocation10_spill] sm:$0xff] %v5013_v16  ;;  %1997 = vadd.xlane.f32.xlu1 %v5013_v16  ;;  %v2016_v25 = vmul.f32 %v5013_v16, %v5013_v16 }
 0x76f   : > { %2027 = vadd.xlane.f32.xlu0 %v2015_v8 }
 0x771   : > { %2029 = vadd.xlane.f32.xlu1 %v2016_v25 }
 0x773   : > { %1999 = vadd.xlane.f32.xlu0 %v5022_v34 }
 0x775   : > { %2001 = vadd.xlane.f32.xlu1 %v5025_v42 }
 0x777   : > { %2031 = vadd.xlane.f32.xlu0 %v2017_v44 }
 0x779   : > { %2033 = vadd.xlane.f32.xlu1 %v2018_v31 }
 0x7b8   : > { %v1988_v41 = vpop.xlane.xlu0 %1987 }
 0x7b9   : > { %v2003_v11 = vmul.f32 0.0078125, %v1988_v41 }
 0x7ba   : > { %v1990_v39 = vpop.xlane.xlu1 %1989 }
 0x7bb   : > { %v2004_v45 = vmul.f32 0.0078125, %v1990_v39  ;;  %v2043_v57 = vmul.f32 %v2003_v11, %v2003_v11  ;;  %v2075_v50 = vsub.f32 %v4958_v63, %v2003_v11 }
 0x7bc   : > { %v2020_v62 = vpop.xlane.xlu0 %2019 }
 0x7bd   : > { %v2035_v13 = vmul.f32 0.0078125, %v2020_v62  ;;  %v2044_v51 = vmul.f32 %v2004_v45, %v2004_v45  ;;  %v2076_v27 = vsub.f32 %v4961_v46, %v2004_v45 }
 0x7be   : > { %v2022_v59 = vpop.xlane.xlu1 %2021 }
 0x7bf   : > { %v2051_v9 = vsub.f32 %v2035_v13, %v2043_v57  ;;  %v2036_v54 = vmul.f32 0.0078125, %v2022_v59 }
 0x7c0   : > { %v1992_v17 = vpop.xlane.xlu0 %1991 }
 0x7c1   : > { %v2059_v55 = vadd.f32 1e-06, %v2051_v9  ;;  %v2052_v37 = vsub.f32 %v2036_v54, %v2044_v51  ;;  %v2005_v35 = vmul.f32 0.0078125, %v1992_v17 }
 0x7c2   : > { %v1994_v33 = vpop.xlane.xlu1 %1993 }
 0x7c3   : > { %4111 = vrsqrt.f32 %v2059_v55  ;;  %v2060_v49 = vadd.f32 1e-06, %v2052_v37  ;;  %v2006_v5 = vmul.f32 0.0078125, %v1994_v33  ;;  %v2045_v38 = vmul.f32 %v2005_v35, %v2005_v35 }
 0x7c4   : > { %v2024_v0 = vpop.xlane.xlu0 %2023  ;;  %v2077_v22 = vsub.f32 %v4970_v19, %v2005_v35 }
 0x7c5   : > { %4113 = vrsqrt.f32 %v2060_v49  ;;  %v2037_v58 = vmul.f32 0.0078125, %v2024_v0  ;;  %v2046_v43 = vmul.f32 %v2006_v5, %v2006_v5  ;;  %v2078_v28 = vsub.f32 %v4973_v40, %v2006_v5 }
 0x7c6   : > { %v2026_v32 = vpop.xlane.xlu1 %2025 }
 0x7c7   : > { %v2053_v2 = vsub.f32 %v2037_v58, %v2045_v38  ;;  %v2038_v20 = vmul.f32 0.0078125, %v2026_v32 }
 0x7c9   : > { %v2061_v4 = vadd.f32 1e-06, %v2053_v2  ;;  %v2054_v26 = vsub.f32 %v2038_v20, %v2046_v43 }
 0x7cb   : > { %4115 = vrsqrt.f32 %v2061_v4  ;;  %v2062_v18 = vadd.f32 1e-06, %v2054_v26 }
 0x7cd   : > { %v4112_v48 = vpop.eup %4111  ;;  %4117 = vrsqrt.f32 %v2062_v18 }
 0x7ce   : > { %v2087_v23 = vmul.f32 %v4112_v48, %v5035_v12 }
 0x7cf   : > { %v4114_v24 = vpop.eup %4113 }
 0x7d0   : > { %v2088_v52 = vmul.f32 %v4114_v24, %v5035_v12  ;;  %v2095_v29 = vmul.f32 %v2087_v23, %v2075_v50 }
 0x7d2   : > { %v2096_v53 = vmul.f32 %v2088_v52, %v2076_v27  ;;  %v2107_v30 = vadd.f32 %v5043_v47, %v2095_v29 }
 0x7d4   : > { %v2108_v60 = vadd.f32 %v5043_v47, %v2096_v53 }
 0x7d5   : > { %v4116_v6 = vpop.eup %4115 }
 0x7d6   : > { %v2115_v14 = vpack.c.bf16 %v2108_v60, %v2107_v30  ;;  %v2089_v8 = vmul.f32 %v4116_v6, %v5035_v12 }
 0x7d7   : > { %v4118_v21 = vpop.eup %4117 }
 0x7d8   : > { %2328 = vmatmul.mubr.bf16.vlgmr.msra.gmra.mrb[32].mxu1 %v2115_v14  ;;  %2401 = vmatmul.mubr.bf16.vlgmr.msra.gmra.mrb[40].mxu0 %v2115_v14  ;;  %v2090_v25 = vmul.f32 %v4118_v21, %v5035_v12  ;;  %v2097_v44 = vmul.f32 %v2089_v8, %v2077_v22 }
 0x7d9   : > { %2337 = vmatprep.mubr.bf16.mxu1 %v4271_v56  ;;  %2410 = vmatprep.mubr.bf16.mxu0 %v4271_v56 }
 0x7da   : > { %v2098_v31 = vmul.f32 %v2090_v25, %v2078_v28  ;;  %v2109_v41 = vadd.f32 %v5043_v47, %v2097_v44 }
 0x7dc   : > { %v2110_v11 = vadd.f32 %v5043_v47, %v2098_v31 }
 0x7de   : > { %v2116_v39 = vpack.c.bf16 %v2110_v11, %v2109_v41 }
 0x7e0   : > { %2338 = vmatmul.mubr.bf16.gmra.mrb[36].mxu1 %v2116_v39  ;;  %2411 = vmatmul.mubr.bf16.gmra.mrb[44].mxu0 %v2116_v39 }
 0x7e1   : > { %2347 = vmatprep.mubr.bf16.mxu1 %v4271_v56  ;;  %2420 = vmatprep.mubr.bf16.mxu0 %v4271_v56 }
 0x7f8   : > { %v1996_v45 = vpop.xlane.xlu0 %1995 }
 0x7f9   : > { %v2007_v62 = vmul.f32 0.0078125, %v1996_v45 }
 0x7fa   : > { %v1998_v57 = vpop.xlane.xlu1 %1997 }
 0x7fb   : > { %v2008_v13 = vmul.f32 0.0078125, %v1998_v57  ;;  %v2047_v51 = vmul.f32 %v2007_v62, %v2007_v62  ;;  %v2079_v23 = vsub.f32 %v5010_v3, %v2007_v62  ;;  %v4031_v62 = vld [vmem:[%s4355_s27 + $0x40] sm:$0xff]  }
 0x7fc   : > { %v2028_v59 = vpop.xlane.xlu0 %2027  ;;  %v4033_v57 = vld [vmem:[%s4355_s27] sm:$0xff]   ;;  %3636 = vmatprep.subr.bf16.mxu1 %v4031_v62 }
 0x7fd   : > { %v2039_v9 = vmul.f32 0.0078125, %v2028_v59  ;;  %v2048_v17 = vmul.f32 %v2008_v13, %v2008_v13  ;;  %v2080_v52 = vsub.f32 %v5013_v16, %v2008_v13  ;;  %v5075_v13 = vld [vmem:[%s4355_s27 + $0x80] sm:$0xff]   ;;  %3637 = vmatpush3.bf16.msra.mxu1 %v4033_v57  ;;  %v4037_v59 = vld [vmem:[%s4355_s27 + $0x8] sm:$0xff]  }
 0x7fe   : > { %v2030_v54 = vpop.xlane.xlu1 %2029 }
 0x7ff   : > { %v2055_v55 = vsub.f32 %v2039_v9, %v2047_v51  ;;  %v2040_v37 = vmul.f32 0.0078125, %v2030_v54  ;;  %v5085_v51 = vld [vmem:[%s4355_s27 + $0x88] sm:$0xff]   ;;  %v4039_v9 = vld [vmem:[%s4355_s27 + $0x50] sm:$0xff]  }
 0x800   : > { %v2000_v35 = vpop.xlane.xlu0 %1999  ;;  %v5090_v54 = vld [vmem:[%s4355_s27 + $0xd0] sm:$0xff]  }
 0x801   : > { %v2063_v33 = vadd.f32 1e-06, %v2055_v55  ;;  %v2056_v49 = vsub.f32 %v2040_v37, %v2048_v17  ;;  %v2009_v5 = vmul.f32 0.0078125, %v2000_v35  ;;  %v4041_v17 = vld [vmem:[%s4355_s27 + $0x10] sm:$0xff]   ;;  %v4043_v37 = vld [vmem:[%s4355_s27 + $0x58] sm:$0xff]  }
 0x802   : > { %v2002_v0 = vpop.xlane.xlu1 %2001  ;;  %v5094_v55 = vld [vmem:[%s4355_s27 + $0x90] sm:$0xff]   ;;  %v5100_v35 = vld [vmem:[%s4355_s27 + $0xd8] sm:$0xff]  }
 0x803   : > { %4119 = vrsqrt.f32 %v2063_v33  ;;  %v2064_v38 = vadd.f32 1e-06, %v2056_v49  ;;  %v2010_v58 = vmul.f32 0.0078125, %v2002_v0  ;;  %v2049_v61 = vmul.f32 %v2009_v5, %v2009_v5  ;;  %v4045_v33 = vld [vmem:[%s4355_s27 + $0x18] sm:$0xff]   ;;  %v5110_v0 = vld [vmem:[%s4355_s27 + $0xe0] sm:$0xff]  }
 0x804   : > { %v2032_v32 = vpop.xlane.xlu0 %2031  ;;  %v2081_v14 = vsub.f32 %v5022_v34, %v2009_v5  ;;  %v5104_v49 = vld [vmem:[%s4355_s27 + $0x98] sm:$0xff]   ;;  %v4047_v5 = vld [vmem:[%s4355_s27 + $0x60] sm:$0xff]  }
 0x805   : > { %4121 = vrsqrt.f32 %v2064_v38  ;;  %v2041_v43 = vmul.f32 0.0078125, %v2032_v32  ;;  %v2050_v20 = vmul.f32 %v2010_v58, %v2010_v58  ;;  %v2082_v25 = vsub.f32 %v5025_v42, %v2010_v58  ;;  %v4049_v38 = vld [vmem:[%s4355_s27 + $0x20] sm:$0xff]   ;;  %v4051_v32 = vld [vmem:[%s4355_s27 + $0x68] sm:$0xff]  }
 0x806   : > { %v2034_v2 = vpop.xlane.xlu1 %2033  ;;  %v5114_v58 = vld [vmem:[%s4355_s27 + $0xa0] sm:$0xff]  }
 0x807   : > { %v2057_v4 = vsub.f32 %v2041_v43, %v2049_v61  ;;  %v2042_v26 = vmul.f32 0.0078125, %v2034_v2  ;;  %v5120_v61 = vld [vmem:[%s4355_s27 + $0xe8] sm:$0xff]  }
 0x808   : > { %v4053_v43 = vld [vmem:[%s4355_s27 + $0x28] sm:$0xff]  }
 0x809   : > { %v2065_v18 = vadd.f32 1e-06, %v2057_v4  ;;  %v2058_v7 = vsub.f32 %v2042_v26, %v2050_v20  ;;  %v5124_v2 = vld [vmem:[%s4355_s27 + $0xa8] sm:$0xff]   ;;  %v4055_v20 = vld [vmem:[%s4355_s27 + $0x70] sm:$0xff]  }
 0x80a   : > { %v5129_v4 = vld [vmem:[%s4355_s27 + $0xf0] sm:$0xff]  }
 0x80b   : > { %4123 = vrsqrt.f32 %v2065_v18  ;;  %v2066_v48 = vadd.f32 1e-06, %v2058_v7  ;;  %v4057_v26 = vld [vmem:[%s4355_s27 + $0x30] sm:$0xff]   ;;  %v4059_v7 = vld [vmem:[%s4355_s27 + $0x78] sm:$0xff]  }
 0x80c   : > { %v5134_v18 = vld [vmem:[%s4355_s27 + $0xb0] sm:$0xff]  }
 0x80d   : > { %v4120_v50 = vpop.eup %4119  ;;  %4125 = vrsqrt.f32 %v2066_v48  ;;  %v5139_v48 = vld [vmem:[%s4355_s27 + $0xf8] sm:$0xff]  }
 0x80e   : > { %v2091_v24 = vmul.f32 %v4120_v50, %v5035_v12  ;;  %v4061_v50 = vld [vmem:[%s4355_s27 + $0x38] sm:$0xff]  }
 0x80f   : > { %v4122_v27 = vpop.eup %4121 }
 0x810   : > { %v2092_v29 = vmul.f32 %v4122_v27, %v5035_v12  ;;  %v2099_v53 = vmul.f32 %v2091_v24, %v2079_v23  ;;  %v5144_v23 = vld [vmem:[%s4355_s27 + $0xb8] sm:$0xff]   ;;  %v5149_v24 = vsub.s32 0, %v4512_v15 }
 0x811   : > { %v726_v27 = vld [vmem:[%s4360_s12 + $0x18] sm:$0xff] }
 0x812   : > { %v2100_v30 = vmul.f32 %v2092_v29, %v2080_v52  ;;  %v2111_v60 = vadd.f32 %v5043_v47, %v2099_v53  ;;  %5621 = vst [vmem:[#allocation13_spill] sm:$0xff] %v5149_v24  ;;  %v5154_v52 = vrot.slane %v4950_v10, %v5149_v24  ;;  %v4214_v29 = vld [vmem:[%s4360_s12 + $0x10] sm:$0xff] }
 0x813   : > { %v5158_v53 = vrot.slane %v4214_v29, %v5149_v24 }
 0x814   : > { %v2112_v6 = vadd.f32 %v5043_v47, %v2100_v30  ;;  %v5161_v30 = vld [vmem:[%s4360_s12 + $0x8] sm:$0xff] }
 0x815   : > { %v4124_v22 = vpop.eup %4123 }
 0x816   : > { %v2117_v8 = vpack.c.bf16 %v2112_v6, %v2111_v60  ;;  %v2093_v21 = vmul.f32 %v4124_v22, %v5035_v12  ;;  %v5165_v60 = vrot.slane %v5161_v30, %v5149_v24  ;;  %v5168_v6 = vrot.slane %v726_v27, %v5149_v24 }
 0x817   : > { %v4126_v28 = vpop.eup %4125 }
 0x818   : > { %2348 = vmatmul.mubr.bf16.gmra.mrb[40].mxu1 %v2117_v8  ;;  %2421 = vmatmul.mubr.bf16.gmra.mrb[48].mxu0 %v2117_v8  ;;  %v2094_v44 = vmul.f32 %v4126_v28, %v5035_v12  ;;  %v2101_v31 = vmul.f32 %v2093_v21, %v2081_v14  ;;  %v4032_v12 = vld [vmem:[%s4355_s27 + $0xc0] sm:$0xff]  }
 0x819   : > { %2357 = vmatprep.mubr.bf16.mxu1 %v4271_v56  ;;  %2430 = vmatprep.mubr.bf16.mxu0 %v4271_v56  ;;  %v4035_v56 = vld [vmem:[%s4355_s27 + $0x48] sm:$0xff]  }
 0x81a   : > { %v2102_v41 = vmul.f32 %v2094_v44, %v2082_v25  ;;  %v2113_v11 = vadd.f32 %v5043_v47, %v2101_v31  ;;  %3676 = vmatprep.subr.bf16.mxu0 %v4032_v12  ;;  %3638 = vmatprep.subr.bf16.mxu1 %v4035_v56 }
 0x81b   : > { %3677 = vmatpush3.bf16.msra.mxu0 %v5075_v13  ;;  %3639 = vmatpush3.bf16.msra.mxu1 %v4037_v59 }
 0x81c   : > { %v2114_v39 = vadd.f32 %v5043_v47, %v2102_v41  ;;  %v5080_v47 = vld [vmem:[%s4355_s27 + $0xc8] sm:$0xff]   ;;  %3640 = vmatprep.subr.bf16.mxu1 %v4039_v9 }
 0x81d   : > { %3678 = vmatprep.subr.bf16.mxu0 %v5080_v47 }
 0x81e   : > { %v2118_v45 = vpack.c.bf16 %v2114_v39, %v2113_v11 }
 0x81f   : > { %3679 = vmatpush3.bf16.msra.mxu0 %v5085_v51  ;;  %3641 = vmatpush3.bf16.msra.mxu1 %v4041_v17 }
 0x820   : > { %2358 = vmatmul.mubr.bf16.gmra.mrb[44].mxu1 %v2118_v45  ;;  %2431 = vmatmul.mubr.bf16.gmra.mrb[52].mxu0 %v2118_v45 }
 0x821   : > { %3680 = vmatprep.subr.bf16.mxu0 %v5090_v54  ;;  %3642 = vmatprep.subr.bf16.mxu1 %v4043_v37 }
 0x823   : > { %3681 = vmatpush3.bf16.msra.mxu0 %v5094_v55  ;;  %3643 = vmatpush3.bf16.msra.mxu1 %v4045_v33 }
 0x824   : > { %3682 = vmatprep.subr.bf16.mxu0 %v5100_v35  ;;  %3644 = vmatprep.subr.bf16.mxu1 %v4047_v5 }
 0x827   : > { %3683 = vmatpush3.bf16.msra.mxu0 %v5104_v49  ;;  %3645 = vmatpush3.bf16.msra.mxu1 %v4049_v38 }
 0x828   : > { %3684 = vmatprep.subr.bf16.mxu0 %v5110_v0  ;;  %3646 = vmatprep.subr.bf16.mxu1 %v4051_v32 }
 0x82b   : > { %3685 = vmatpush3.bf16.msra.mxu0 %v5114_v58  ;;  %3647 = vmatpush3.bf16.msra.mxu1 %v4053_v43 }
 0x82c   : > { %3686 = vmatprep.subr.bf16.mxu0 %v5120_v61  ;;  %3648 = vmatprep.subr.bf16.mxu1 %v4055_v20 }
 0x82f   : > { %3687 = vmatpush3.bf16.msra.mxu0 %v5124_v2  ;;  %3649 = vmatpush3.bf16.msra.mxu1 %v4057_v26 }
 0x830   : > { %3688 = vmatprep.subr.bf16.mxu0 %v5129_v4  ;;  %3650 = vmatprep.subr.bf16.mxu1 %v4059_v7 }
 0x833   : > { %3689 = vmatpush3.bf16.msra.mxu0 %v5134_v18  ;;  %3651 = vmatpush3.bf16.msra.mxu1 %v4061_v50 }
 0x834   : > { %3690 = vmatprep.subr.bf16.mxu0 %v5139_v48  ;;  %3956 = vmatprep.subr.bf16.mxu1 %v4032_v12 }
 0x837   : > { %3691 = vmatpush3.bf16.msra.mxu0 %v5144_v23 }
 0x8ab   : > { %v2329_v22 = vpop.f32.mrb[32].mxu1  ;;  %v2402_v14 = vpop.f32.mrb[40].mxu0 }
 0x8ac   : > { %v5171_v8 = vadd.f32 %v2329_v22, %v5154_v52  ;;  %v5174_v10 = vadd.f32 %v2402_v14, %v5158_v53  ;;  %v2331_v21 = vpop.f32.mrb[33].mxu1  ;;  %v2404_v28 = vpop.f32.mrb[41].mxu0 }
 0x8ad   : > { %v5177_v25 = vadd.f32 %v2331_v21, %v5165_v60  ;;  %v5180_v44 = vadd.f32 %v2404_v28, %v5168_v6  ;;  %v2333_v31 = vpop.f32.mrb[34].mxu1  ;;  %v2406_v41 = vpop.f32.mrb[42].mxu0 }
 0x8ae   : > { %v2441_v11 = vmul.f32 %v5171_v8, %v5171_v8  ;;  %v2443_v39 = vmul.f32 %v5174_v10, %v5174_v10  ;;  %v5187_v45 = vadd.f32 %v2333_v31, %v5154_v52  ;;  %v5190_v62 = vadd.f32 %v2406_v41, %v5158_v53  ;;  %v2335_v12 = vpop.f32.mrb[35].mxu1  ;;  %v2408_v57 = vpop.f32.mrb[43].mxu0 }
 0x8af   : > { %v2442_v56 = vmul.f32 %v5177_v25, %v5177_v25  ;;  %v2444_v59 = vmul.f32 %v5180_v44, %v5180_v44  ;;  %v5197_v9 = vadd.f32 %v2335_v12, %v5165_v60  ;;  %v5200_v17 = vadd.f32 %v2408_v57, %v5168_v6 }
 0x8b0   : > { %v2473_v37 = vmul.f32 %v2441_v11, %v5171_v8  ;;  %v2475_v33 = vmul.f32 %v2443_v39, %v5174_v10  ;;  %v2445_v5 = vmul.f32 %v5187_v45, %v5187_v45  ;;  %v2447_v38 = vmul.f32 %v5190_v62, %v5190_v62 }
 0x8b1   : > { %v2474_v32 = vmul.f32 %v2442_v56, %v5177_v25  ;;  %v2476_v43 = vmul.f32 %v2444_v59, %v5180_v44  ;;  %v2446_v20 = vmul.f32 %v5197_v9, %v5197_v9  ;;  %v2448_v26 = vmul.f32 %v5200_v17, %v5200_v17 }
 0x8b2   : > { %v2505_v7 = vmul.f32 0.044715, %v2473_v37  ;;  %v2507_v50 = vmul.f32 0.044715, %v2475_v33  ;;  %v2477_v27 = vmul.f32 %v2445_v5, %v5187_v45  ;;  %v2479_v29 = vmul.f32 %v2447_v38, %v5190_v62 }
 0x8b3   : > { %v2506_v22 = vmul.f32 0.044715, %v2474_v32  ;;  %v2508_v14 = vmul.f32 0.044715, %v2476_v43  ;;  %v2478_v21 = vmul.f32 %v2446_v20, %v5197_v9  ;;  %v2480_v28 = vmul.f32 %v2448_v26, %v5200_v17  ;;  %v2339_v31 = vpop.f32.mrb[36].mxu1  ;;  %v2412_v41 = vpop.f32.mrb[44].mxu0 }
 0x8b4   : > { %v2537_v11 = vadd.f32 %v2505_v7, %v5171_v8  ;;  %v2539_v39 = vadd.f32 %v2507_v50, %v5174_v10  ;;  %v2509_v12 = vmul.f32 0.044715, %v2477_v27  ;;  %v2511_v57 = vmul.f32 0.044715, %v2479_v29  ;;  %v2341_v56 = vpop.f32.mrb[37].mxu1  ;;  %v2414_v59 = vpop.f32.mrb[45].mxu0 }
 0x8b5   : > { %v2538_v37 = vadd.f32 %v2506_v22, %v5177_v25  ;;  %v2540_v33 = vadd.f32 %v2508_v14, %v5180_v44  ;;  %v2510_v5 = vmul.f32 0.044715, %v2478_v21  ;;  %v2512_v38 = vmul.f32 0.044715, %v2480_v28  ;;  %v2343_v32 = vpop.f32.mrb[38].mxu1  ;;  %v2416_v43 = vpop.f32.mrb[46].mxu0 }
 0x8b6   : > { %v2569_v20 = vmul.f32 0.7978846, %v2537_v11  ;;  %v2571_v26 = vmul.f32 0.7978846, %v2539_v39  ;;  %v2541_v36 = vadd.f32 %v2509_v12, %v5187_v45  ;;  %v2543_v7 = vadd.f32 %v2511_v57, %v5190_v62  ;;  %v2345_v1 = vpop.f32.mrb[39].mxu1  ;;  %v2418_v50 = vpop.f32.mrb[47].mxu0 }
 0x8b7   : > { %v2570_v27 = vmul.f32 0.7978846, %v2538_v37  ;;  %v2572_v29 = vmul.f32 0.7978846, %v2540_v33  ;;  %v2542_v24 = vadd.f32 %v2510_v5, %v5197_v9  ;;  %v2544_v22 = vadd.f32 %v2512_v38, %v5200_v17 }
 0x8b8   : > { %4127 = vtanh.f32 %v2569_v20  ;;  %v2573_v14 = vmul.f32 0.7978846, %v2541_v36  ;;  %v2575_v21 = vmul.f32 0.7978846, %v2543_v7  ;;  %v5227_v28 = vadd.f32 %v2339_v31, %v5154_v52 }
 0x8b9   : > { %4129 = vtanh.f32 %v2571_v26  ;;  %v2574_v11 = vmul.f32 0.7978846, %v2542_v24  ;;  %v2576_v39 = vmul.f32 0.7978846, %v2544_v22  ;;  %v5230_v12 = vadd.f32 %v2412_v41, %v5158_v53 }
 0x8ba   : > { %4131 = vtanh.f32 %v2570_v27  ;;  %v2449_v57 = vmul.f32 %v5227_v28, %v5227_v28  ;;  %v5235_v37 = vadd.f32 %v2341_v56, %v5165_v60  ;;  %v5238_v33 = vadd.f32 %v2414_v59, %v5168_v6 }
 0x8bb   : > { %4133 = vtanh.f32 %v2572_v29  ;;  %v2451_v36 = vmul.f32 %v5230_v12, %v5230_v12  ;;  %v5243_v24 = vadd.f32 %v2343_v32, %v5154_v52  ;;  %v5246_v31 = vadd.f32 %v2416_v43, %v5158_v53 }
 0x8bc   : > { %4135 = vtanh.f32 %v2573_v14  ;;  %v2481_v41 = vmul.f32 %v2449_v57, %v5227_v28  ;;  %v2450_v56 = vmul.f32 %v5235_v37, %v5235_v37  ;;  %v2452_v59 = vmul.f32 %v5238_v33, %v5238_v33 }
 0x8bd   : > { %4137 = vtanh.f32 %v2575_v21  ;;  %v2483_v5 = vmul.f32 %v2451_v36, %v5230_v12  ;;  %v2453_v38 = vmul.f32 %v5243_v24, %v5243_v24  ;;  %v2455_v32 = vmul.f32 %v5246_v31, %v5246_v31 }
 0x8be   : > { %4139 = vtanh.f32 %v2574_v11  ;;  %v2513_v43 = vmul.f32 0.044715, %v2481_v41  ;;  %v2482_v20 = vmul.f32 %v2450_v56, %v5235_v37  ;;  %v2484_v26 = vmul.f32 %v2452_v59, %v5238_v33 }
 0x8bf   : > { %4141 = vtanh.f32 %v2576_v39  ;;  %v2515_v7 = vmul.f32 0.044715, %v2483_v5  ;;  %v2485_v27 = vmul.f32 %v2453_v38, %v5243_v24  ;;  %v2487_v29 = vmul.f32 %v2455_v32, %v5246_v31 }
 0x8c0   : > { %v2545_v22 = vadd.f32 %v2513_v43, %v5227_v28  ;;  %v2514_v14 = vmul.f32 0.044715, %v2482_v20  ;;  %v2516_v21 = vmul.f32 0.044715, %v2484_v26  ;;  %v5264_v57 = vadd.f32 %v2345_v1, %v5165_v60 }
 0x8c1   : > { %v2547_v11 = vadd.f32 %v2515_v7, %v5230_v12  ;;  %v2517_v36 = vmul.f32 0.044715, %v2485_v27  ;;  %v2519_v41 = vmul.f32 0.044715, %v2487_v29  ;;  %v5268_v56 = vadd.f32 %v2418_v50, %v5168_v6 }
 0x8c2   : > { %v4128_v39 = vpop.eup %4127  ;;  %v2577_v59 = vmul.f32 0.7978846, %v2545_v22  ;;  %v2546_v5 = vadd.f32 %v2514_v14, %v5235_v37  ;;  %v2548_v38 = vadd.f32 %v2516_v21, %v5238_v33  ;;  %v2454_v32 = vmul.f32 %v5264_v57, %v5264_v57 }
 0x8c3   : > { %v4130_v43 = vpop.eup %4129  ;;  %v2633_v20 = vadd.f32 1.0, %v4128_v39  ;;  %v2579_v1 = vmul.f32 0.7978846, %v2547_v11  ;;  %v2549_v26 = vadd.f32 %v2517_v36, %v5243_v24  ;;  %v2551_v7 = vadd.f32 %v2519_v41, %v5246_v31 }
 0x8c4   : > { %v4132_v27 = vpop.eup %4131  ;;  %v2635_v29 = vadd.f32 1.0, %v4130_v43  ;;  %4143 = vtanh.f32 %v2577_v59  ;;  %v2578_v50 = vmul.f32 0.7978846, %v2546_v5  ;;  %v2580_v42 = vmul.f32 0.7978846, %v2548_v38 }
 0x8c5   : > { %v4134_v22 = vpop.eup %4133  ;;  %v2665_v34 = vmul.f32 0.5, %v2633_v20  ;;  %4145 = vtanh.f32 %v2579_v1  ;;  %v2581_v14 = vmul.f32 0.7978846, %v2549_v26  ;;  %v2583_v21 = vmul.f32 0.7978846, %v2551_v7 }
 0x8c6   : > { %v4136_v16 = vpop.eup %4135  ;;  %v2667_v3 = vmul.f32 0.5, %v2635_v29  ;;  %4147 = vtanh.f32 %v2578_v50  ;;  %v2486_v39 = vmul.f32 %v2454_v32, %v5264_v57  ;;  %v2456_v11 = vmul.f32 %v5268_v56, %v5268_v56 }
 0x8c7   : > { %v4138_v36 = vpop.eup %4137  ;;  %v2697_v41 = vmul.f32 %v2665_v34, %v5171_v8  ;;  %v2637_v43 = vadd.f32 1.0, %v4136_v16  ;;  %4149 = vtanh.f32 %v2580_v42  ;;  %v2634_v59 = vadd.f32 1.0, %v4132_v27 }
 0x8c8   : > { %v4140_v5 = vpop.eup %4139  ;;  %v2699_v38 = vmul.f32 %v2667_v3, %v5174_v10  ;;  %v2639_v20 = vadd.f32 1.0, %v4138_v36  ;;  %4151 = vtanh.f32 %v2581_v14  ;;  %v2518_v1 = vmul.f32 0.044715, %v2486_v39 }
 0x8c9   : > { %v4142_v26 = vpop.eup %4141  ;;  %v2669_v7 = vmul.f32 0.5, %v2637_v43  ;;  %4153 = vtanh.f32 %v2583_v21  ;;  %v2488_v32 = vmul.f32 %v2456_v11, %v5268_v56  ;;  %v2638_v29 = vadd.f32 1.0, %v4140_v5 }
 0x8ca   : > { %v2671_v50 = vmul.f32 0.5, %v2639_v20  ;;  %v2550_v40 = vadd.f32 %v2518_v1, %v5264_v57  ;;  %v2666_v19 = vmul.f32 0.5, %v2634_v59  ;;  %v2636_v34 = vadd.f32 1.0, %v4134_v22 }
 0x8cb   : > { %v2701_v16 = vmul.f32 %v2669_v7, %v5187_v45  ;;  %v2520_v42 = vmul.f32 0.044715, %v2488_v32  ;;  %v2670_v8 = vmul.f32 0.5, %v2638_v29  ;;  %v2640_v27 = vadd.f32 1.0, %v4142_v26 }
 0x8cc   : > { %v2703_v3 = vmul.f32 %v2671_v50, %v5190_v62  ;;  %v2582_v10 = vmul.f32 0.7978846, %v2550_v40  ;;  %v2698_v14 = vmul.f32 %v2666_v19, %v5177_v25  ;;  %v2668_v39 = vmul.f32 0.5, %v2636_v34 }
 0x8cd   : > { %v2729_v21 = vpack.c.bf16 %v2701_v16, %v2697_v41  ;;  %v2552_v11 = vadd.f32 %v2520_v42, %v5268_v56  ;;  %v2702_v36 = vmul.f32 %v2670_v8, %v5197_v9  ;;  %v2672_v43 = vmul.f32 0.5, %v2640_v27 }
 0x8ce   : > { %v4144_v5 = vpop.eup %4143  ;;  %v2731_v59 = vpack.c.bf16 %v2703_v3, %v2699_v38  ;;  %4155 = vtanh.f32 %v2582_v10  ;;  %v2700_v45 = vmul.f32 %v2668_v39, %v5180_v44 }
 0x8cf   : > { %v4146_v22 = vpop.eup %4145  ;;  %v2584_v20 = vmul.f32 0.7978846, %v2552_v11  ;;  %v2730_v1 = vpack.c.bf16 %v2702_v36, %v2698_v14  ;;  %v2704_v62 = vmul.f32 %v2672_v43, %v5200_v17  ;;  %v2641_v40 = vadd.f32 1.0, %v4144_v5 }
 0x8d0   : > { %v4148_v26 = vpop.eup %4147  ;;  %v2643_v19 = vadd.f32 1.0, %v4146_v22 }
 0x8d1   : > { %v4150_v25 = vpop.eup %4149  ;;  %4157 = vtanh.f32 %v2584_v20  ;;  %3033 = vmatprep.mubr.bf16.mxu1 %v2730_v1  ;;  %v2732_v41 = vpack.c.bf16 %v2704_v62, %v2700_v45  ;;  %v2673_v32 = vmul.f32 0.5, %v2641_v40  ;;  %v2642_v17 = vadd.f32 1.0, %v4148_v26 }
 0x8d2   : > { %v4152_v7 = vpop.eup %4151  ;;  %3034 = vmatmul.mubr.bf16.vlgmr.msra.gmra.mrb[48].mxu1 %v2729_v21  ;;  %v2675_v29 = vmul.f32 0.5, %v2643_v19  ;;  %v2644_v27 = vadd.f32 1.0, %v4150_v25 }
 0x8d3   : > { %v4154_v9 = vpop.eup %4153  ;;  %3098 = vmatprep.mubr.bf16.mxu0 %v2732_v41  ;;  %v2645_v38 = vadd.f32 1.0, %v4152_v7  ;;  %3964 = vmatpush3.bf16.msra.mxu1 %v5075_v13  ;;  %v2705_v16 = vmul.f32 %v2673_v32, %v5227_v28  ;;  %v2674_v14 = vmul.f32 0.5, %v2642_v17 }
 0x8d4   : > { %3099 = vmatmul.mubr.bf16.vlgmr.msra.gmra.mrb[56].mxu0 %v2731_v59  ;;  %v2647_v44 = vadd.f32 1.0, %v4154_v9  ;;  %3957 = vmatprep.subr.bf16.mxu1 %v5080_v47  ;;  %v2707_v3 = vmul.f32 %v2675_v29, %v5230_v12 }
 0x8d5   : > { %v2677_v50 = vmul.f32 0.5, %v2645_v38 }
 0x8d6   : > { %v2679_v34 = vmul.f32 0.5, %v2647_v44 }
 0x8d7   : > { %v2709_v42 = vmul.f32 %v2677_v50, %v5243_v24  ;;  %3965 = vmatpush3.bf16.msra.mxu1 %v5085_v51  ;;  %v2676_v24 = vmul.f32 0.5, %v2644_v27  ;;  %v2706_v51 = vmul.f32 %v2674_v14, %v5235_v37 }
 0x8d8   : > { %v4156_v8 = vpop.eup %4155  ;;  %v2711_v13 = vmul.f32 %v2679_v34, %v5246_v31  ;;  %3958 = vmatprep.subr.bf16.mxu1 %v5090_v54 }
 0x8d9   : > { %v2646_v10 = vadd.f32 1.0, %v4156_v8  ;;  %v2733_v47 = vpack.c.bf16 %v2709_v42, %v2705_v16  ;;  %v2708_v54 = vmul.f32 %v2676_v24, %v5238_v33 }
 0x8da   : > { %v2735_v39 = vpack.c.bf16 %v2711_v13, %v2707_v3 }
 0x8db   : > { %v4158_v21 = vpop.eup %4157  ;;  %v2678_v11 = vmul.f32 0.5, %v2646_v10  ;;  %3966 = vmatpush3.bf16.msra.mxu1 %v5094_v55 }
 0x8dc   : > { %v2648_v28 = vadd.f32 1.0, %v4158_v21  ;;  %3959 = vmatprep.subr.bf16.mxu1 %v5100_v35 }
 0x8dd   : > { %v2710_v12 = vmul.f32 %v2678_v11, %v5264_v57 }
 0x8de   : > { %v2680_v36 = vmul.f32 0.5, %v2648_v28 }
 0x8df   : > { %v2734_v31 = vpack.c.bf16 %v2710_v12, %v2706_v51  ;;  %3967 = vmatpush3.bf16.msra.mxu1 %v5104_v49 }
 0x8e0   : > { %v2712_v43 = vmul.f32 %v2680_v36, %v5268_v56  ;;  %3960 = vmatprep.subr.bf16.mxu1 %v5110_v0 }
 0x8e1   : > { %3041 = vmatprep.mubr.bf16.mxu1 %v2734_v31 }
 0x8e2   : > { %v2736_v55 = vpack.c.bf16 %v2712_v43, %v2708_v54  ;;  %3042 = vmatmul.mubr.bf16.gmra.mrb[52].mxu1 %v2733_v47 }
 0x8e3   : > { %3968 = vmatpush3.bf16.msra.mxu1 %v5114_v58 }
 0x8e4   : > { %3106 = vmatprep.mubr.bf16.mxu0 %v2736_v55  ;;  %3961 = vmatprep.subr.bf16.mxu1 %v5120_v61 }
 0x8e5   : > { %3107 = vmatmul.mubr.bf16.gmra.mrb[60].mxu0 %v2735_v39 }
 0x8e7   : > { %3969 = vmatpush3.bf16.msra.mxu1 %v5124_v2 }
 0x8e8   : > { %3962 = vmatprep.subr.bf16.mxu1 %v5129_v4 }
 0x8eb   : > { %v2349_v35 = vpop.f32.mrb[40].mxu1  ;;  %v2422_v49 = vpop.f32.mrb[48].mxu0  ;;  %3970 = vmatpush3.bf16.msra.mxu1 %v5134_v18 }
 0x8ec   : > { %v5312_v37 = vadd.f32 %v2349_v35, %v5154_v52  ;;  %v5315_v0 = vadd.f32 %v2422_v49, %v5158_v53  ;;  %v2351_v33 = vpop.f32.mrb[41].mxu1  ;;  %v2424_v58 = vpop.f32.mrb[49].mxu0  ;;  %3963 = vmatprep.subr.bf16.mxu1 %v5139_v48 }
 0x8ed   : > { %v5319_v61 = vadd.f32 %v2351_v33, %v5165_v60  ;;  %v5322_v2 = vadd.f32 %v2424_v58, %v5168_v6  ;;  %v2353_v4 = vpop.f32.mrb[42].mxu1  ;;  %v2426_v57 = vpop.f32.mrb[50].mxu0 }
 0x8ee   : > { %v2457_v18 = vmul.f32 %v5312_v37, %v5312_v37  ;;  %v2459_v56 = vmul.f32 %v5315_v0, %v5315_v0  ;;  %v5329_v5 = vadd.f32 %v2353_v4, %v5154_v52  ;;  %v5332_v59 = vadd.f32 %v2426_v57, %v5158_v53  ;;  %v2355_v48 = vpop.f32.mrb[43].mxu1  ;;  %v2428_v45 = vpop.f32.mrb[51].mxu0 }
 0x8ef   : > { %v2458_v22 = vmul.f32 %v5319_v61, %v5319_v61  ;;  %v2460_v20 = vmul.f32 %v5322_v2, %v5322_v2  ;;  %v5339_v1 = vadd.f32 %v2355_v48, %v5165_v60  ;;  %v5342_v62 = vadd.f32 %v2428_v45, %v5168_v6  ;;  %3971 = vmatpush3.bf16.msra.mxu1 %v5144_v23 }
 0x8f0   : > { %v2489_v40 = vmul.f32 %v2457_v18, %v5312_v37  ;;  %v2491_v26 = vmul.f32 %v2459_v56, %v5315_v0  ;;  %v2461_v19 = vmul.f32 %v5329_v5, %v5329_v5  ;;  %v2463_v25 = vmul.f32 %v5332_v59, %v5332_v59 }
 0x8f1   : > { %v2490_v41 = vmul.f32 %v2458_v22, %v5319_v61  ;;  %v2492_v7 = vmul.f32 %v2460_v20, %v5322_v2  ;;  %v2462_v9 = vmul.f32 %v5339_v1, %v5339_v1  ;;  %v2464_v23 = vmul.f32 %v5342_v62, %v5342_v62 }
 0x8f2   : > { %v2521_v38 = vmul.f32 0.044715, %v2489_v40  ;;  %v2523_v32 = vmul.f32 0.044715, %v2491_v26  ;;  %v2493_v44 = vmul.f32 %v2461_v19, %v5329_v5  ;;  %v2495_v29 = vmul.f32 %v2463_v25, %v5332_v59 }
 0x8f3   : > { %v2522_v17 = vmul.f32 0.044715, %v2490_v41  ;;  %v2524_v50 = vmul.f32 0.044715, %v2492_v7  ;;  %v2494_v34 = vmul.f32 %v2462_v9, %v5339_v1  ;;  %v2496_v16 = vmul.f32 %v2464_v23, %v5342_v62  ;;  %v2359_v42 = vpop.f32.mrb[44].mxu1  ;;  %v2432_v8 = vpop.f32.mrb[52].mxu0 }
 0x8f4   : > { %v2553_v27 = vadd.f32 %v2521_v38, %v5312_v37  ;;  %v2555_v3 = vadd.f32 %v2523_v32, %v5315_v0  ;;  %v2525_v13 = vmul.f32 0.044715, %v2493_v44  ;;  %v2527_v10 = vmul.f32 0.044715, %v2495_v29  ;;  %v2361_v14 = vpop.f32.mrb[45].mxu1  ;;  %v2434_v47 = vpop.f32.mrb[53].mxu0 }
 0x8f5   : > { %v2554_v39 = vadd.f32 %v2522_v17, %v5319_v61  ;;  %v2556_v21 = vadd.f32 %v2524_v50, %v5322_v2  ;;  %v2526_v11 = vmul.f32 0.044715, %v2494_v34  ;;  %v2528_v28 = vmul.f32 0.044715, %v2496_v16  ;;  %v2363_v24 = vpop.f32.mrb[46].mxu1  ;;  %v2436_v51 = vpop.f32.mrb[54].mxu0 }
 0x8f6   : > { %v2585_v12 = vmul.f32 0.7978846, %v2553_v27  ;;  %v2587_v36 = vmul.f32 0.7978846, %v2555_v3  ;;  %v2557_v31 = vadd.f32 %v2525_v13, %v5329_v5  ;;  %v2559_v54 = vadd.f32 %v2527_v10, %v5332_v59  ;;  %v2365_v43 = vpop.f32.mrb[47].mxu1  ;;  %v2438_v55 = vpop.f32.mrb[55].mxu0 }
 0x8f7   : > { %v2586_v35 = vmul.f32 0.7978846, %v2554_v39  ;;  %v2588_v49 = vmul.f32 0.7978846, %v2556_v21  ;;  %v2558_v33 = vadd.f32 %v2526_v11, %v5339_v1  ;;  %v2560_v58 = vadd.f32 %v2528_v28, %v5342_v62 }
 0x8f8   : > { %4159 = vtanh.f32 %v2585_v12  ;;  %v2589_v4 = vmul.f32 0.7978846, %v2557_v31  ;;  %v2591_v57 = vmul.f32 0.7978846, %v2559_v54  ;;  %v5370_v18 = vadd.f32 %v2359_v42, %v5154_v52 }
 0x8f9   : > { %4161 = vtanh.f32 %v2587_v36  ;;  %v2590_v56 = vmul.f32 0.7978846, %v2558_v33  ;;  %v2592_v48 = vmul.f32 0.7978846, %v2560_v58  ;;  %v5373_v45 = vadd.f32 %v2432_v8, %v5158_v53 }
 0x8fa   : > { %4163 = vtanh.f32 %v2586_v35  ;;  %v2465_v22 = vmul.f32 %v5370_v18, %v5370_v18  ;;  %v5378_v20 = vadd.f32 %v2361_v14, %v5165_v60  ;;  %v5381_v40 = vadd.f32 %v2434_v47, %v5168_v6 }
 0x8fb   : > { %4165 = vtanh.f32 %v2588_v49  ;;  %v2467_v26 = vmul.f32 %v5373_v45, %v5373_v45  ;;  %v5386_v19 = vadd.f32 %v2363_v24, %v5154_v52  ;;  %v5389_v25 = vadd.f32 %v2436_v51, %v5158_v53 }
 0x8fc   : > { %4167 = vtanh.f32 %v2589_v4  ;;  %v2497_v41 = vmul.f32 %v2465_v22, %v5370_v18  ;;  %v2466_v7 = vmul.f32 %v5378_v20, %v5378_v20  ;;  %v2468_v9 = vmul.f32 %v5381_v40, %v5381_v40 }
 0x8fd   : > { %4169 = vtanh.f32 %v2591_v57  ;;  %v2499_v23 = vmul.f32 %v2467_v26, %v5373_v45  ;;  %v2469_v38 = vmul.f32 %v5386_v19, %v5386_v19  ;;  %v2471_v52 = vmul.f32 %v5389_v25, %v5389_v25 }
 0x8fe   : > { %4171 = vtanh.f32 %v2590_v56  ;;  %v2529_v53 = vmul.f32 0.044715, %v2497_v41  ;;  %v2498_v32 = vmul.f32 %v2466_v7, %v5378_v20  ;;  %v2500_v44 = vmul.f32 %v2468_v9, %v5381_v40 }
 0x8ff   : > { %4173 = vtanh.f32 %v2592_v48  ;;  %v2531_v29 = vmul.f32 0.044715, %v2499_v23  ;;  %v2501_v17 = vmul.f32 %v2469_v38, %v5386_v19  ;;  %v2503_v50 = vmul.f32 %v2471_v52, %v5389_v25 }
 0x900   : > { %v2561_v34 = vadd.f32 %v2529_v53, %v5370_v18  ;;  %v2530_v16 = vmul.f32 0.044715, %v2498_v32  ;;  %v2532_v42 = vmul.f32 0.044715, %v2500_v44  ;;  %v5407_v8 = vadd.f32 %v2365_v43, %v5165_v60 }
 0x901   : > { %v2563_v27 = vadd.f32 %v2531_v29, %v5373_v45  ;;  %v2533_v3 = vmul.f32 0.044715, %v2501_v17  ;;  %v2535_v13 = vmul.f32 0.044715, %v2503_v50  ;;  %v5411_v10 = vadd.f32 %v2438_v55, %v5168_v6 }
 0x902   : > { %v4160_v14 = vpop.eup %4159  ;;  %v2593_v47 = vmul.f32 0.7978846, %v2561_v34  ;;  %v2562_v39 = vadd.f32 %v2530_v16, %v5378_v20  ;;  %v2564_v21 = vadd.f32 %v2532_v42, %v5381_v40  ;;  %v2470_v11 = vmul.f32 %v5407_v8, %v5407_v8 }
 0x903   : > { %v4162_v28 = vpop.eup %4161  ;;  %v2595_v24 = vmul.f32 0.7978846, %v2563_v27  ;;  %v2565_v60 = vadd.f32 %v2533_v3, %v5386_v19  ;;  %v2567_v51 = vadd.f32 %v2535_v13, %v5389_v25  ;;  %v2472_v12 = vmul.f32 %v5411_v10, %v5411_v10 }
 0x904   : > { %v4164_v6 = vpop.eup %4163  ;;  %v2651_v36 = vadd.f32 1.0, %v4162_v28  ;;  %4175 = vtanh.f32 %v2593_v47  ;;  %v2594_v31 = vmul.f32 0.7978846, %v2562_v39  ;;  %v2596_v54 = vmul.f32 0.7978846, %v2564_v21 }
 0x905   : > { %v4166_v43 = vpop.eup %4165  ;;  %4177 = vtanh.f32 %v2595_v24  ;;  %v2597_v55 = vmul.f32 0.7978846, %v2565_v60  ;;  %v2599_v35 = vmul.f32 0.7978846, %v2567_v51  ;;  %v2502_v49 = vmul.f32 %v2470_v11, %v5407_v8 }
 0x906   : > { %v4168_v33 = vpop.eup %4167  ;;  %v2683_v58 = vmul.f32 0.5, %v2651_v36  ;;  %4179 = vtanh.f32 %v2594_v31  ;;  %v2504_v4 = vmul.f32 %v2472_v12, %v5411_v10  ;;  %v2650_v57 = vadd.f32 1.0, %v4164_v6 }
 0x907   : > { %v4170_v56 = vpop.eup %4169  ;;  %4181 = vtanh.f32 %v2596_v54  ;;  %v2534_v48 = vmul.f32 0.044715, %v2502_v49  ;;  %v2649_v22 = vadd.f32 1.0, %v4160_v14  ;;  %v2653_v26 = vadd.f32 1.0, %v4168_v33 }
 0x908   : > { %v4172_v41 = vpop.eup %4171  ;;  %v5424_v7 = vmul.f32 %v2683_v58, %v5315_v0  ;;  %v2655_v9 = vadd.f32 1.0, %v4170_v56  ;;  %4183 = vtanh.f32 %v2597_v55  ;;  %v2536_v23 = vmul.f32 0.044715, %v2504_v4 }
 0x909   : > { %v4174_v38 = vpop.eup %4173  ;;  %4185 = vtanh.f32 %v2599_v35  ;;  %v2566_v52 = vadd.f32 %v2534_v48, %v5407_v8  ;;  %v2654_v53 = vadd.f32 1.0, %v4172_v41  ;;  %v2682_v32 = vmul.f32 0.5, %v2650_v57 }
 0x90a   : > { %v2687_v44 = vmul.f32 0.5, %v2655_v9  ;;  %v2568_v29 = vadd.f32 %v2536_v23, %v5411_v10  ;;  %v2681_v17 = vmul.f32 0.5, %v2649_v22  ;;  %v2685_v50 = vmul.f32 0.5, %v2653_v26 }
 0x90b   : > { %v2598_v34 = vmul.f32 0.7978846, %v2566_v52  ;;  %v2686_v16 = vmul.f32 0.5, %v2654_v53  ;;  %v2714_v42 = vmul.f32 %v2682_v32, %v5319_v61  ;;  %v2652_v0 = vadd.f32 1.0, %v4166_v43 }
 0x90c   : > { %v2719_v27 = vmul.f32 %v2687_v44, %v5332_v59  ;;  %v2600_v3 = vmul.f32 0.7978846, %v2568_v29  ;;  %v2713_v13 = vmul.f32 %v2681_v17, %v5312_v37  ;;  %v2717_v14 = vmul.f32 %v2685_v50, %v5329_v5 }
 0x90d   : > { %4187 = vtanh.f32 %v2598_v34  ;;  %v2718_v47 = vmul.f32 %v2686_v16, %v5339_v1  ;;  %v2656_v39 = vadd.f32 1.0, %v4174_v38  ;;  %v2684_v21 = vmul.f32 0.5, %v2652_v0 }
 0x90e   : > { %v4176_v11 = vpop.eup %4175  ;;  %v2739_v28 = vpack.c.bf16 %v2719_v27, %v5424_v7  ;;  %4189 = vtanh.f32 %v2600_v3  ;;  %v2737_v24 = vpack.c.bf16 %v2717_v14, %v2713_v13  ;;  %v5622_v13 = vsub.s32 2, %v4512_v15 }
 0x90f   : > { %v4178_v60 = vpop.eup %4177  ;;  %v2738_v61 = vpack.c.bf16 %v2718_v47, %v2714_v42  ;;  %v2657_v51 = vadd.f32 1.0, %v4176_v11  ;;  %v2688_v12 = vmul.f32 0.5, %v2656_v39  ;;  %v2716_v37 = vmul.f32 %v2684_v21, %v5322_v2 }
 0x910   : > { %v4180_v59 = vpop.eup %4179  ;;  %v2659_v6 = vadd.f32 1.0, %v4178_v60  ;;  %v5447_v14 = vrot.slane %v5161_v30, %v5622_v13 }
 0x911   : > { %v4182_v36 = vpop.eup %4181  ;;  %3049 = vmatprep.mubr.bf16.mxu1 %v2738_v61  ;;  %v2720_v5 = vmul.f32 %v2688_v12, %v5342_v62  ;;  %v2689_v43 = vmul.f32 0.5, %v2657_v51  ;;  %v2658_v35 = vadd.f32 1.0, %v4180_v59 }
 0x912   : > { %v4184_v1 = vpop.eup %4183  ;;  %3050 = vmatmul.mubr.bf16.gmra.mrb[56].mxu1 %v2737_v24  ;;  %v2691_v33 = vmul.f32 0.5, %v2659_v6  ;;  %v2660_v4 = vadd.f32 1.0, %v4182_v36 }
 0x913   : > { %v4186_v31 = vpop.eup %4185  ;;  %v2661_v54 = vadd.f32 1.0, %v4184_v1  ;;  %v2740_v55 = vpack.c.bf16 %v2720_v5, %v2716_v37  ;;  %v2721_v48 = vmul.f32 %v2689_v43, %v5370_v18  ;;  %v2690_v62 = vmul.f32 0.5, %v2658_v35  ;;  %v5623_v1 = vld [vmem:[#allocation7_spill] sm:$0xff] }
 0x914   : > { %v2663_v49 = vadd.f32 1.0, %v4186_v31  ;;  %v2723_v41 = vmul.f32 %v2691_v33, %v5373_v45  ;;  %v2692_v38 = vmul.f32 0.5, %v2660_v4 }
 0x915   : > { %v2693_v58 = vmul.f32 0.5, %v2661_v54  ;;  %v2722_v44 = vmul.f32 %v2690_v62, %v5378_v20 }
 0x916   : > { %v2695_v57 = vmul.f32 0.5, %v2663_v49  ;;  %v2724_v18 = vmul.f32 %v2692_v38, %v5381_v40 }
 0x917   : > { %v4188_v56 = vpop.eup %4187  ;;  %v2725_v22 = vmul.f32 %v2693_v58, %v5386_v19 }
 0x918   : > { %v4190_v2 = vpop.eup %4189  ;;  %v2662_v26 = vadd.f32 1.0, %v4188_v56  ;;  %v2727_v7 = vmul.f32 %v2695_v57, %v5389_v25 }
 0x919   : > { %v2741_v9 = vpack.c.bf16 %v2725_v22, %v2721_v48  ;;  %v2664_v23 = vadd.f32 1.0, %v4190_v2 }
 0x91a   : > { %v2694_v52 = vmul.f32 0.5, %v2662_v26  ;;  %v2743_v53 = vpack.c.bf16 %v2727_v7, %v2723_v41 }
 0x91b   : > { %v2696_v32 = vmul.f32 0.5, %v2664_v23 }
 0x91c   : > { %v2726_v29 = vmul.f32 %v2694_v52, %v5407_v8 }
 0x91d   : > { %v2728_v19 = vmul.f32 %v2696_v32, %v5411_v10 }
 0x91e   : > { %v2742_v17 = vpack.c.bf16 %v2726_v29, %v2722_v44  ;;  %v5625_v29 = vld [vmem:[#allocation9_spill] sm:$0xff] }
 0x91f   : > { %v2744_v50 = vpack.c.bf16 %v2728_v19, %v2724_v18 }
 0x920   : > { %3057 = vmatprep.mubr.bf16.mxu1 %v2742_v17 }
 0x921   : > { %3058 = vmatmul.mubr.bf16.gmra.mrb[60].mxu1 %v2741_v9 }
 0x922   : > { %3114 = vmatprep.mubr.bf16.mxu1 %v2740_v55  ;;  %v5624_v55 = vld [vmem:[#allocation8_spill] sm:$0xff] }
 0x929   : > { %3115 = vmatmul.mubr.bf16.vlgmr.msra.gmra.mrb[64].mxu1 %v2739_v28 }
 0x92a   : > { %3122 = vmatprep.mubr.bf16.mxu1 %v2744_v50  ;;  %v5626_v50 = vld [vmem:[#allocation10_spill] sm:$0xff] }
 0x931   : > { %3123 = vmatmul.mubr.bf16.gmra.mrb[68].mxu1 %v2743_v53 }
 0x9a5   : > { %v3652_v45 = vpop.f32.mrb[48].mxu1 }
 0x9a6   : > { %v3653_v25 = vpop.f32.mrb[49].mxu1 }
 0x9a7   : > { %v3692_v34 = vpop.f32.mrb[56].mxu0  ;;  %v3654_v16 = vadd.f32 %v3653_v25, %v3652_v45  ;;  %v3655_v42 = vpop.f32.mrb[50].mxu1 }
 0x9a8   : > { %v3693_v20 = vpop.f32.mrb[57].mxu0  ;;  %v3656_v0 = vpop.f32.mrb[51].mxu1 }
 0x9a9   : > { %v3694_v8 = vadd.f32 %v3693_v20, %v3692_v34  ;;  %v3695_v27 = vpop.f32.mrb[58].mxu0  ;;  %v3657_v40 = vadd.f32 %v3656_v0, %v3655_v42 }
 0x9aa   : > { %v3696_v3 = vpop.f32.mrb[59].mxu0 }
 0x9ab   : > { %v3101_v10 = vadd.f32 %v3694_v8, %v3654_v16  ;;  %v3697_v47 = vadd.f32 %v3696_v3, %v3695_v27 }
 0x9ad   : > { %v3131_v39 = vadd.f32 %v3101_v10, %v4958_v63  ;;  %v3104_v21 = vadd.f32 %v3697_v47, %v3657_v40  ;;  %v5627_v40 = vld [vmem:[#allocation11_spill] sm:$0xff]  ;;  %v5628_v47 = vld [vmem:[#allocation12_spill] sm:$0xff] }
 0x9af   : > { %v5451_v11 = vadd.f32 %v5447_v14, %v3131_v39  ;;  %v3132_v28 = vadd.f32 %v3104_v21, %v4961_v46 }
 0x9b1   : > { %3151 = vst [vmem:[#allocation2] sm:$0xff] %v5451_v11  ;;  %v5456_v24 = vadd.f32 %v5447_v14, %v3132_v28  ;;  %3164 = vadd.xlane.f32.xlu0 (!%p3520_p5), %v5451_v11  ;;  %v3188_v28 = vmul.f32 (!%p3520_p5), %v5451_v11, %v5451_v11 }
 0x9b3   : > { %3152 = vst [vmem:[#allocation2 + $0x8] sm:$0xff] %v5456_v24 }
 0x9b5   : > { %v3658_v15 = vpop.f32.mrb[52].mxu1  ;;  %3166 = vadd.xlane.f32.xlu0 (!%p3520_p5), %v5456_v24 }
 0x9b6   : > { %v3659_v60 = vpop.f32.mrb[53].mxu1 }
 0x9b7   : > { %v3660_v30 = vadd.f32 %v3659_v60, %v3658_v15  ;;  %v3661_v61 = vpop.f32.mrb[54].mxu1 }
 0x9b8   : > { %v3698_v51 = vpop.f32.mrb[60].mxu0  ;;  %v3662_v12 = vpop.f32.mrb[55].mxu1 }
 0x9b9   : > { %v3699_v63 = vpop.f32.mrb[61].mxu0  ;;  %v3663_v59 = vadd.f32 %v3662_v12, %v3661_v61 }
 0x9ba   : > { %v3700_v6 = vadd.f32 %v3699_v63, %v3698_v51  ;;  %v3701_v36 = vpop.f32.mrb[62].mxu0 }
 0x9bb   : > { %v3702_v37 = vpop.f32.mrb[63].mxu0 }
 0x9bc   : > { %v3109_v5 = vadd.f32 %v3700_v6, %v3660_v30  ;;  %v3703_v46 = vadd.f32 %v3702_v37, %v3701_v36 }
 0x9be   : > { %v3133_v31 = vadd.f32 %v3109_v5, %v5623_v1  ;;  %v3112_v54 = vadd.f32 %v3703_v46, %v3663_v59 }
 0x9c0   : > { %v5461_v43 = vadd.f32 %v5447_v14, %v3133_v31  ;;  %v3134_v35 = vadd.f32 %v3112_v54, %v5624_v55 }
 0x9c2   : > { %3153 = vst [vmem:[#allocation2 + $0x10] sm:$0xff] %v5461_v43  ;;  %v5466_v49 = vadd.f32 %v5447_v14, %v3134_v35  ;;  %3168 = vadd.xlane.f32.xlu1 (!%p3520_p5), %v5461_v43  ;;  %v3190_v60 = vmul.f32 (!%p3520_p5), %v5461_v43, %v5461_v43 }
 0x9c4   : > { %3154 = vst [vmem:[#allocation2 + $0x18] sm:$0xff] %v5466_v49  ;;  %v3191_v15 = vmul.f32 (!%p3520_p5), %v5466_v49, %v5466_v49 }
 0x9c6   : > { %3170 = vadd.xlane.f32.xlu1 (!%p3520_p5), %v5466_v49 }
 0x9e5   : > { %v3664_v33 = vpop.f32.mrb[56].mxu1 }
 0x9e6   : > { %v3665_v58 = vpop.f32.mrb[57].mxu1 }
 0x9e7   : > { %v3666_v4 = vadd.f32 %v3665_v58, %v3664_v33  ;;  %v3667_v57 = vpop.f32.mrb[58].mxu1 }
 0x9e8   : > { %v3668_v56 = vpop.f32.mrb[59].mxu1 }
 0x9e9   : > { %v3669_v48 = vadd.f32 %v3668_v56, %v3667_v57 }
 0x9f4   : > { %v3670_v22 = vpop.f32.mrb[60].mxu1 }
 0x9f5   : > { %v3671_v2 = vpop.f32.mrb[61].mxu1 }
 0x9f6   : > { %v3672_v26 = vadd.f32 %v3671_v2, %v3670_v22  ;;  %v3673_v62 = vpop.f32.mrb[62].mxu1 }
 0x9f7   : > { %v3674_v41 = vpop.f32.mrb[63].mxu1 }
 0x9f8   : > { %v3675_v7 = vadd.f32 %v3674_v41, %v3673_v62 }
 0x9fc   : > { %v3704_v9 = vpop.f32.mrb[64].mxu1 }
 0x9fd   : > { %v3705_v23 = vpop.f32.mrb[65].mxu1 }
 0x9fe   : > { %v3706_v38 = vadd.f32 %v3705_v23, %v3704_v9  ;;  %v3707_v52 = vpop.f32.mrb[66].mxu1 }
 0x9ff   : > { %v3708_v53 = vpop.f32.mrb[67].mxu1 }
 0xa00   : > { %v3117_v32 = vadd.f32 %v3706_v38, %v3666_v4  ;;  %v3709_v44 = vadd.f32 %v3708_v53, %v3707_v52 }
 0xa02   : > { %v3135_v18 = vadd.f32 %v3117_v32, %v5625_v29  ;;  %v3120_v19 = vadd.f32 %v3709_v44, %v3669_v48 }
 0xa04   : > { %v5471_v17 = vadd.f32 %v5447_v14, %v3135_v18  ;;  %v3136_v45 = vadd.f32 %v3120_v19, %v5626_v50  ;;  %v3710_v25 = vpop.f32.mrb[68].mxu1 }
 0xa05   : > { %v3711_v34 = vpop.f32.mrb[69].mxu1 }
 0xa06   : > { %3155 = vst [vmem:[#allocation2 + $0x20] sm:$0xff] %v5471_v17  ;;  %v5476_v16 = vadd.f32 %v5447_v14, %v3136_v45  ;;  %v3712_v42 = vadd.f32 %v3711_v34, %v3710_v25  ;;  %v3713_v20 = vpop.f32.mrb[70].mxu1  ;;  %3172 = vadd.xlane.f32.xlu0 (!%p3520_p5), %v5471_v17  ;;  %v3192_v61 = vmul.f32 (!%p3520_p5), %v5471_v17, %v5471_v17 }
 0xa07   : > { %v3714_v0 = vpop.f32.mrb[71].mxu1 }
 0xa08   : > { %3156 = vst [vmem:[#allocation2 + $0x28] sm:$0xff] %v5476_v16  ;;  %v3125_v8 = vadd.f32 %v3712_v42, %v3672_v26  ;;  %v3715_v27 = vadd.f32 %v3714_v0, %v3713_v20  ;;  %3174 = vadd.xlane.f32.xlu1 (!%p3520_p5), %v5476_v16  ;;  %v3193_v30 = vmul.f32 (!%p3520_p5), %v5476_v16, %v5476_v16 }
 0xa0a   : > { %v3137_v3 = vadd.f32 %v3125_v8, %v5627_v40  ;;  %v3128_v10 = vadd.f32 %v3715_v27, %v3675_v7  ;;  %3162 = sbr.rel (%p3520_p5) target bundleno = 2759 (0xac7), region = 72  ;;  %v3163_v27 = vld [vmem:[%s5599_s6] sm:$0x3] (!%p3520_p5) }
 0xa0c   : > { %v5481_v13 = vadd.f32 %v5447_v14, %v3137_v3  ;;  %v3138_v39 = vadd.f32 %v3128_v10, %v5628_v47 }
 0xa0e   : > { %3157 = vst [vmem:[#allocation2 + $0x30] sm:$0xff] %v5481_v13  ;;  %v5486_v21 = vadd.f32 %v5447_v14, %v3138_v39  ;;  %3176 = vadd.xlane.f32.xlu0 (!%p3520_p5), %v5481_v13  ;;  %v3189_v14 = vmul.f32 (!%p3520_p5), %v5456_v24, %v5456_v24  ;;  %v3194_v12 = vmul.f32 (!%p3520_p5), %v5481_v13, %v5481_v13 }
 0xa10   : > { %3158 = vst [vmem:[#allocation2 + $0x38] sm:$0xff] %v5486_v21  ;;  %3178 = vadd.xlane.f32.xlu1 (!%p3520_p5), %v5486_v21  ;;  %v3195_v51 = vmul.f32 (!%p3520_p5), %v5486_v21, %v5486_v21 }
 0xa12   : > { %3196 = vadd.xlane.f32.xlu0 %v3188_v28 }
 0xa14   : > { %3198 = vadd.xlane.f32.xlu1 %v3189_v14 }
 0xa16   : > { %3200 = vadd.xlane.f32.xlu0 %v3190_v60 }
 0xa18   : > { %3202 = vadd.xlane.f32.xlu1 %v3191_v15 }
 0xa1a   : > { %3204 = vadd.xlane.f32.xlu0 %v3192_v61  ;;  %v5629_v61 = vld [vmem:[#allocation13_spill] sm:$0xff] }
 0xa1c   : > { %3206 = vadd.xlane.f32.xlu1 %v3193_v30 }
 0xa1e   : > { %3208 = vadd.xlane.f32.xlu0 %v3194_v12 }
 0xa20   : > { %3210 = vadd.xlane.f32.xlu1 %v3195_v51  ;;  %v3263_v51 = vrot.slane %v3163_v27, %v5629_v61 }
 0xa3e   : > { %v3165_v59 = vpop.xlane.xlu0 %3164 }
 0xa3f   : > { %v5514_v31 = vmul.f32 0.0078125, %v3165_v59 }
 0xa41   : > { %v3220_v4 = vmul.f32 %v5514_v31, %v5514_v31 }
 0xa42   : > { %v3167_v36 = vpop.xlane.xlu0 %3166 }
 0xa43   : > { %v5516_v54 = vmul.f32 0.0078125, %v3167_v36 }
 0xa45   : > { %v3221_v57 = vmul.f32 %v5516_v54, %v5516_v54 }
 0xa4f   : > { %v3169_v63 = vpop.xlane.xlu1 %3168 }
 0xa50   : > { %v5518_v55 = vmul.f32 0.0078125, %v3169_v63 }
 0xa52   : > { %v3222_v62 = vmul.f32 %v5518_v55, %v5518_v55 }
 0xa53   : > { %v3171_v6 = vpop.xlane.xlu1 %3170 }
 0xa54   : > { %v5520_v35 = vmul.f32 0.0078125, %v3171_v6 }
 0xa56   : > { %v3223_v41 = vmul.f32 %v5520_v35, %v5520_v35 }
 0xa93   : > { %v3173_v5 = vpop.xlane.xlu0 %3172 }
 0xa94   : > { %v5532_v7 = vmul.f32 0.0078125, %v3173_v5  ;;  %v3253_v5 = vsub.f32 %v5456_v24, %v5516_v54  ;;  %v3254_v24 = vsub.f32 %v5461_v43, %v5518_v55 }
 0xa95   : > { %v3175_v37 = vpop.xlane.xlu1 %3174 }
 0xa96   : > { %v5526_v22 = vmul.f32 0.0078125, %v3175_v37  ;;  %v3224_v19 = vmul.f32 %v5532_v7, %v5532_v7 }
 0xa98   : > { %v3225_v44 = vmul.f32 %v5526_v22, %v5526_v22 }
 0xa9b   : > { %v3177_v1 = vpop.xlane.xlu0 %3176 }
 0xa9c   : > { %v5540_v45 = vmul.f32 0.0078125, %v3177_v1  ;;  %v5630_v1 = vld [vmem:[#allocation6_spill] sm:$0xff] }
 0xa9d   : > { %v3179_v46 = vpop.xlane.xlu1 %3178 }
 0xa9e   : > { %v5538_v50 = vmul.f32 0.0078125, %v3179_v46  ;;  %v3226_v47 = vmul.f32 %v5540_v45, %v5540_v45 }
 0xa9f   : > { %v3197_v58 = vpop.xlane.xlu0 %3196 }
 0xaa0   : > { %v3212_v48 = vmul.f32 0.0078125, %v3197_v58  ;;  %v3227_v10 = vmul.f32 %v5538_v50, %v5538_v50  ;;  %v3252_v58 = vsub.f32 %v5451_v11, %v5514_v31 }
 0xaa1   : > { %v3199_v33 = vpop.xlane.xlu1 %3198 }
 0xaa2   : > { %v3213_v56 = vmul.f32 0.0078125, %v3199_v33  ;;  %v3228_v26 = vsub.f32 %v3212_v48, %v3220_v4  ;;  %v3283_v33 = vrot.slane %v3163_v27, %v5630_v1 }
 0xaa3   : > { %v3201_v23 = vpop.xlane.xlu0 %3200 }
 0xaa4   : > { %v3229_v2 = vsub.f32 %v3213_v56, %v3221_v57  ;;  %v3236_v52 = vadd.f32 1e-06, %v3228_v26  ;;  %v3214_v32 = vmul.f32 0.0078125, %v3201_v23  ;;  %v3255_v26 = vsub.f32 %v5466_v49, %v5520_v35 }
 0xaa5   : > { %v3203_v9 = vpop.xlane.xlu1 %3202  ;;  %v3256_v49 = vsub.f32 %v5471_v17, %v5532_v7 }
 0xaa6   : > { %v3237_v38 = vadd.f32 1e-06, %v3229_v2  ;;  %v3215_v53 = vmul.f32 0.0078125, %v3203_v9  ;;  %v3230_v18 = vsub.f32 %v3214_v32, %v3222_v62 }
 0xaa7   : > { %v3205_v34 = vpop.xlane.xlu0 %3204 }
 0xaa8   : > { %4216 = vrsqrt.f32 %v3237_v38  ;;  %v3231_v29 = vsub.f32 %v3215_v53, %v3223_v41  ;;  %v3238_v20 = vadd.f32 1e-06, %v3230_v18  ;;  %v3216_v8 = vmul.f32 0.0078125, %v3205_v34 }
 0xaa9   : > { %4218 = vrsqrt.f32 %v3236_v52  ;;  %v3207_v25 = vpop.xlane.xlu1 %3206  ;;  %v3257_v52 = vsub.f32 %v5476_v16, %v5526_v22  ;;  %v3258_v16 = vsub.f32 %v5481_v13, %v5540_v45 }
 0xaaa   : > { %v3239_v42 = vadd.f32 1e-06, %v3231_v29  ;;  %v3217_v0 = vmul.f32 0.0078125, %v3207_v25  ;;  %v3232_v3 = vsub.f32 %v3216_v8, %v3224_v19  ;;  %v3259_v19 = vsub.f32 %v5486_v21, %v5538_v50 }
 0xaab   : > { %v3209_v14 = vpop.xlane.xlu0 %3208 }
 0xaac   : > { %4220 = vrsqrt.f32 %v3239_v42  ;;  %v3233_v40 = vsub.f32 %v3217_v0, %v3225_v44  ;;  %v3240_v15 = vadd.f32 1e-06, %v3232_v3  ;;  %v3218_v30 = vmul.f32 0.0078125, %v3209_v14 }
 0xaad   : > { %4222 = vrsqrt.f32 %v3238_v20  ;;  %v3211_v39 = vpop.xlane.xlu1 %3210 }
 0xaae   : > { %v3241_v28 = vadd.f32 1e-06, %v3233_v40  ;;  %v3219_v60 = vmul.f32 0.0078125, %v3211_v39  ;;  %v3234_v63 = vsub.f32 %v3218_v30, %v3226_v47 }
 0xab0   : > { %4224 = vrsqrt.f32 %v3241_v28  ;;  %v3235_v12 = vsub.f32 %v3219_v60, %v3227_v10  ;;  %v3242_v36 = vadd.f32 1e-06, %v3234_v63 }
 0xab1   : > { %4226 = vrsqrt.f32 %v3240_v15 }
 0xab2   : > { %v4217_v59 = vpop.eup %4216  ;;  %v3243_v6 = vadd.f32 1e-06, %v3235_v12 }
 0xab3   : > { %v4219_v37 = vpop.eup %4218  ;;  %v3265_v46 = vmul.f32 %v4217_v59, %v3263_v51 }
 0xab4   : > { %v3264_v4 = vmul.f32 %v4219_v37, %v3263_v51  ;;  %4228 = vrsqrt.f32 %v3243_v6 }
 0xab5   : > { %v3273_v57 = vmul.f32 %v3265_v46, %v3253_v5  ;;  %4230 = vrsqrt.f32 %v3242_v36 }
 0xab6   : > { %v4221_v56 = vpop.eup %4220  ;;  %v3272_v48 = vmul.f32 %v3264_v4, %v3252_v58 }
 0xab7   : > { %v4223_v2 = vpop.eup %4222  ;;  %v3285_v62 = vadd.f32 %v3283_v33, %v3273_v57  ;;  %v3267_v41 = vmul.f32 %v4221_v56, %v3263_v51 }
 0xab8   : > { %v3284_v54 = vadd.f32 %v3283_v33, %v3272_v48  ;;  %v3266_v9 = vmul.f32 %v4223_v2, %v3263_v51 }
 0xab9   : > { %3293 = vst [vmem:[#allocation3 + $0x8] sm:$0xff] %v3285_v62  ;;  %v3275_v23 = vmul.f32 %v3267_v41, %v3255_v26 }
 0xaba   : > { %v4225_v11 = vpop.eup %4224  ;;  %3292 = vst [vmem:[#allocation3] sm:$0xff] %v3284_v54  ;;  %v3274_v31 = vmul.f32 %v3266_v9, %v3254_v24 }
 0xabb   : > { %v4227_v38 = vpop.eup %4226  ;;  %v3287_v53 = vadd.f32 %v3283_v33, %v3275_v23  ;;  %v3269_v32 = vmul.f32 %v4225_v11, %v3263_v51 }
 0xabc   : > { %v3286_v35 = vadd.f32 %v3283_v33, %v3274_v31  ;;  %v3268_v44 = vmul.f32 %v4227_v38, %v3263_v51 }
 0xabd   : > { %3295 = vst [vmem:[#allocation3 + $0x18] sm:$0xff] %v3287_v53  ;;  %v3277_v43 = vmul.f32 %v3269_v32, %v3257_v52 }
 0xabe   : > { %v4229_v55 = vpop.eup %4228  ;;  %3294 = vst [vmem:[#allocation3 + $0x10] sm:$0xff] %v3286_v35  ;;  %v3276_v29 = vmul.f32 %v3268_v44, %v3256_v49 }
 0xabf   : > { %v4231_v18 = vpop.eup %4230  ;;  %v3289_v25 = vadd.f32 %v3283_v33, %v3277_v43  ;;  %v3271_v34 = vmul.f32 %v4229_v55, %v3263_v51 }
 0xac0   : > { %v3288_v22 = vadd.f32 %v3283_v33, %v3276_v29  ;;  %v3270_v42 = vmul.f32 %v4231_v18, %v3263_v51 }
 0xac1   : > { %3297 = vst [vmem:[#allocation3 + $0x28] sm:$0xff] %v3289_v25  ;;  %v3279_v17 = vmul.f32 %v3271_v34, %v3259_v19 }
 0xac2   : > { %3296 = vst [vmem:[#allocation3 + $0x20] sm:$0xff] %v3288_v22  ;;  %v3278_v7 = vmul.f32 %v3270_v42, %v3258_v16 }
 0xac3   : > { %v3291_v20 = vadd.f32 %v3283_v33, %v3279_v17 }
 0xac4   : > { %v3290_v0 = vadd.f32 %v3283_v33, %v3278_v7 }
 0xac5   : > { %3299 = vst [vmem:[#allocation3 + $0x38] sm:$0xff] %v3291_v20 }
 0xac6   : > { %3298 = vst [vmem:[#allocation3 + $0x30] sm:$0xff] %v3290_v0 }
 0xac7 PF: > { %p3976_p6 = scmp.eq.s32.totalorder %s4341_s18, 1  ;;  %s4272_s12 = smov [#allocation3]  }
 0xac8   : > { %s3306_s23 = sshll.u32 %s4272_s12, 4  ;;  %s3307_s23 = int_to_ptr.vmem [resolvable:$true] %s3306_s23 }
 0xac9   : > { %s4232_s25 = scalar_lea.vmem %s3307_s23, 1024  ;;  %p4239_p10 = scmp.lt.s32.totalorder %s3307_s23, %s3307_s23 }
 0xaca   : > { %p4233_p7 = scmp.ne.s32.totalorder %s3307_s23, %s4232_s25  ;;  %p4240_p11 = scmp.lt.s32.totalorder %s4232_s25, %s4232_s25 }
 0xacc   : > { %p4234_p8 = pnand %p4233_p7, %p3976_p6  ;;  %p4241_p12 = por %p4240_p11, %p4239_p10 }
 0xace   : > { %p4235_p9 = pneg %p4234_p8 }
 0xad0   : > { %p4242_p13 = pnand %p4241_p12, %p4235_p9 }
 0xad2   : > { %4245 = shalt.err (!%p4242_p13)
}
 0xad3   : > { %s4246_s29 = scalar_lea.hbm %s5604_s11, 1024 }
 0xad4   : > { %p4247_p0 = scmp.ne.s32.totalorder %s5604_s11, %s4246_s29  ;;  %p4252_p3 = scmp.lt.u32.totalorder %s4246_s29, %s5604_s11 }
 0xad6   : > { %p4248_p1 = pnand %p4247_p0, %p3976_p6 }
 0xad8   : > { %p4249_p2 = pneg %p4248_p1 }
 0xada   : > { %p4254_p4 = pnand %p4252_p3, %p4249_p2 }
 0xadc   : > { %4257 = shalt.err (!%p4254_p4)
}
 0xadd   : > { %s4273_s16 = smov 128   ;;  %s4274_s19 = smov 8  }
 0xade   : > { %3973 = dma.vmem_to_hbm [thread:$0]  (%p3976_p6), %s3307_s23, 1024, %s5604_s11, [#allocation4], %s4273_s16, %s4273_s16, %s4274_s19  }
 0xadf   : > { %4263 = dma.done.wait (%p3976_p6), [#allocation4], 1024  }
 0xae0   : > { %4265 = vsyncadd (%p3976_p6), [#allocation4], 4294966272 }
 0xae1 PF: > { %s22_s17 = sadd.s32 1, %s4268_s17  }
 0xae2   : > { %p19_p5 = scmp.ge.s32.totalorder %s22_s17, 4  }
 0xae4   :  { %21 = sbr.rel (!%p19_p5) target bundleno = 1 (0x1), region = 105 }
 0xaeb   :  { %3322 = vsyncpa [#allocation4], 1 }
 0xaec   :  { %3324 = vsyncpa [#allocation4 + $0x1], 1 }

</bundles_post_ra>
